<compile_context>
chip_gen: v5e
topology: v5e:2x2
jax: 0.10.0
libtpu: 0.0.40
codegen_flags: <defaults>
</compile_context>

<pallas_src>
import jax
import jax.numpy as jnp
from jax.experimental import pallas as pl
from jax.experimental.pallas import tpu as pltpu

_EPS = 1e-6  # torch.nn.functional.pairwise_distance default eps


def _triplet_kernel(xa_ref, xp_ref, xn_ref,
                    w1_ref, b1_ref, w2_ref, b2_ref,
                    dist_ref, ea_ref, ep_ref, en_ref):
    # Weights arrive in bf16 (cast once at parameter prep time), biases in f32.
    w1 = w1_ref[...]          # (D_in, H) bf16
    w2 = w2_ref[...]          # (H, E)   bf16
    b1 = b1_ref[...]          # (1, H)   f32
    b2 = b2_ref[...]          # (1, E)   f32

    def embed(x):
        h = jnp.dot(x.astype(jnp.bfloat16), w1,
                    preferred_element_type=jnp.float32) + b1
        h = jnp.maximum(h, 0.0)                                   # ReLU in f32
        return jnp.dot(h.astype(jnp.bfloat16), w2,
                       preferred_element_type=jnp.float32) + b2   # (TB, E) f32

    # Three small matmuls per layer instead of concatenating into a (3*TB, D) buffer:
    # same MXU pushes, no extra VMEM copy / store traffic.
    ea = embed(xa_ref[...])
    ep = embed(xp_ref[...])
    en = embed(xn_ref[...])

    ea_ref[...] = ea.astype(ea_ref.dtype)
    ep_ref[...] = ep.astype(ep_ref.dtype)
    en_ref[...] = en.astype(en_ref.dtype)

    # F.pairwise_distance(x1, x2, p=2) == ||x1 - x2 + eps||_2 per row.
    dp = ea - ep + _EPS
    dn = ea - en + _EPS
    dp2 = jnp.sum(dp * dp, axis=-1, keepdims=True)                # (TB, 1)
    dn2 = jnp.sum(dn * dn, axis=-1, keepdims=True)                # (TB, 1)
    # Fused (TB, 2) distance output: one output DMA instead of two narrow ones.
    dist_ref[...] = jnp.sqrt(jnp.concatenate([dp2, dn2], axis=-1))


def _pick_block_b(b_pad):
    block_b = 8
    for cand in (512, 256, 128, 64, 32, 16, 8):
        if b_pad % cand == 0:
            block_b = cand
            break
    # Keep >= 2 grid steps when possible: v7x has 2 TensorCores per chip, and a
    # "parallel" grid axis of length 1 leaves one idle; on v5e/v6e the extra step
    # costs only ~0.35 us.
    if b_pad // block_b == 1 and block_b >= 16:
        block_b //= 2
    return block_b


def triplet_network(xa, xp, xn, params, *, block_b=None, emb_dtype=jnp.float32):
    """Returns (dist_p, dist_n, embedded_xa, embedded_xp, embedded_xn)."""
    w1, b1, w2, b2 = params
    B, D_in = xa.shape
    H = w1.shape[1]
    E = w2.shape[1]

    # Parameter prep (once, outside the kernel): bf16 weights for the MXU
    # (no-op if already bf16), f32 (1, N) biases for lane-dense broadcast adds.
    w1 = w1.astype(jnp.bfloat16)
    w2 = w2.astype(jnp.bfloat16)
    b1 = b1.reshape(1, H).astype(jnp.float32)
    b2 = b2.reshape(1, E).astype(jnp.float32)

    emb_itemsize = jnp.dtype(emb_dtype).itemsize

    def vmem_estimate(tb):
        act_in = 2 * 3 * tb * D_in * 4                           # double-buffered inputs
        act_out = 2 * (3 * tb * E * emb_itemsize + tb * 2 * 4)   # double-buffered outputs
        weights = (D_in * H + H * E) * 2 + (H + E) * 4           # single-buffered bf16 w, f32 b
        live = 3 * tb * (H + E) * 4                              # h / e intermediates
        return act_in + act_out + weights + live

    if block_b is None:
        b_pad = ((B + 7) // 8) * 8
        block_b = _pick_block_b(b_pad)
        # Stay well inside v7x's 64 MiB physical VMEM.
        while block_b > 8 and vmem_estimate(block_b) > 40 * 1024 * 1024:
            block_b //= 2
    else:
        assert block_b % 8 == 0, block_b
        b_pad = ((B + block_b - 1) // block_b) * block_b
    nb = b_pad // block_b

    if b_pad != B:
        pad = ((0, b_pad - B), (0, 0))
        xa = jnp.pad(xa, pad)
        xp = jnp.pad(xp, pad)
        xn = jnp.pad(xn, pad)

    # Only raise the scoped-VMEM limit when the footprint actually needs it
    # (v5e defaults to 16 MiB scoped); cap under v7x's 64 MiB physical.
    est = vmem_estimate(block_b)
    vmem_limit = None
    if est > 12 * 1024 * 1024:
        vmem_limit = min(int(est * 3 // 2), 48 * 1024 * 1024)

    x_spec = pl.BlockSpec((block_b, D_in), lambda i: (i, 0))
    e_spec = pl.BlockSpec((block_b, E), lambda i: (i, 0))
    dist_spec = pl.BlockSpec((block_b, 2), lambda i: (i, 0))

    def weight_specs(pipeline_mode):
        kw = {} if pipeline_mode is None else {"pipeline_mode": pipeline_mode}
        # Constant index maps -> weights/biases stay VMEM-resident across grid steps.
        return [pl.BlockSpec(w1.shape, lambda i: (0, 0), **kw),
                pl.BlockSpec(b1.shape, lambda i: (0, 0), **kw),
                pl.BlockSpec(w2.shape, lambda i: (0, 0), **kw),
                pl.BlockSpec(b2.shape, lambda i: (0, 0), **kw)]

    out_shapes = (
        jax.ShapeDtypeStruct((b_pad, 2), jnp.float32),   # fused [dist_p, dist_n]
        jax.ShapeDtypeStruct((b_pad, E), emb_dtype),     # embedded_xa
        jax.ShapeDtypeStruct((b_pad, E), emb_dtype),     # embedded_xp
        jax.ShapeDtypeStruct((b_pad, E), emb_dtype),     # embedded_xn
    )

    def run(pipeline_mode):
        return pl.pallas_call(
            _triplet_kernel,
            out_shape=out_shapes,
            grid=(nb,),
            in_specs=[x_spec, x_spec, x_spec] + weight_specs(pipeline_mode),
            out_specs=[dist_spec, e_spec, e_spec, e_spec],
            compiler_params=pltpu.CompilerParams(
                dimension_semantics=("parallel",),
                vmem_limit_bytes=vmem_limit),
        )(xa, xp, xn, w1, b1, w2, b2)

    try:
        # Block index of weights/biases never changes -> single-buffer them so
        # double buffering doesn't pointlessly double their VMEM footprint.
        dist, ea, ep, en = run(pl.Buffered(buffer_count=1))
    except Exception:
        # Fallback for JAX versions without per-BlockSpec pipeline_mode support.
        dist, ea, ep, en = run(None)

    # Match torch: pairwise_distance returns shape (B,); drop padded rows.
    return dist[:B, 0], dist[:B, 1], ea[:B], ep[:B], en[:B]


def make_params(key, d_in, hidden, d_emb):
    """Embeddingnet params: Linear(d_in, hidden) -> ReLU -> Linear(hidden, d_emb)."""
    k1, k2, k3, k4 = jax.random.split(key, 4)
    w1 = jax.random.normal(k1, (d_in, hidden), jnp.float32) * 0.1
    b1 = jax.random.normal(k2, (1, hidden), jnp.float32) * 0.01
    w2 = jax.random.normal(k3, (hidden, d_emb), jnp.float32) * 0.1
    b2 = jax.random.normal(k4, (1, d_emb), jnp.float32) * 0.01
    return w1, b1, w2, b2


def _reference(xa, xp, xn, params):
    """Pure-JAX reference mirroring the kernel's bf16-operand / f32-accumulate matmuls."""
    w1, b1, w2, b2 = params
    w1b = w1.astype(jnp.bfloat16)
    w2b = w2.astype(jnp.bfloat16)
    b1 = b1.reshape(1, -1).astype(jnp.float32)
    b2 = b2.reshape(1, -1).astype(jnp.float32)

    def embed(x):
        h = jnp.dot(x.astype(jnp.bfloat16), w1b, preferred_element_type=jnp.float32) + b1
        h = jnp.maximum(h, 0.0)
        return jnp.dot(h.astype(jnp.bfloat16), w2b, preferred_element_type=jnp.float32) + b2

    ea, ep, en = embed(xa), embed(xp), embed(xn)
    dp = jnp.sqrt(jnp.sum((ea - ep + _EPS) ** 2, axis=-1))
    dn = jnp.sqrt(jnp.sum((ea - en + _EPS) ** 2, axis=-1))
    return dp, dn, ea, ep, en


if __name__ == "__main__":
    # Lane-dense feature dims (multiples of 128); batch sized so the block_b
    # heuristic yields >= 2 grid steps (v7x megacore) with 3*block_b >= 256 MXU rows.
    D_IN, HIDDEN, D_EMB = 128, 128, 128

    key = jax.random.PRNGKey(0)
    kxa, kxp, kxn, kparam = jax.random.split(key, 4)
    params = make_params(kparam, D_IN, HIDDEN, D_EMB)

    def check(batch):
        xa = jax.random.normal(jax.random.fold_in(kxa, batch), (batch, D_IN), jnp.float32)
        xp = jax.random.normal(jax.random.fold_in(kxp, batch), (batch, D_IN), jnp.float32)
        xn = jax.random.normal(jax.random.fold_in(kxn, batch), (batch, D_IN), jnp.float32)
        outs = jax.block_until_ready(triplet_network(xa, xp, xn, params))
        refs = _reference(xa, xp, xn, params)
        names = ("dist_p", "dist_n", "embedded_xa", "embedded_xp", "embedded_xn")
        for name, o, r in zip(names, outs, refs):
            assert o.shape == r.shape, (name, o.shape, r.shape)
            assert jnp.allclose(o, r, atol=2e-2, rtol=2e-2), name

    check(256)   # heuristic -> block_b=128, grid=2 (both v7x TCs busy)
    check(20)    # ragged batch -> padded to 24, sliced back (correctness-concern fix)

    print("KERNEL_OK")
</pallas_src>

<mosaic_0001>
module attributes {stable_mosaic.version = 11 : i64} {
  func.func @_triplet_kernel(%arg0: i32, %arg1: memref<128x128xf32, #tpu.memory_space<vmem>>, %arg2: memref<128x128xf32, #tpu.memory_space<vmem>>, %arg3: memref<128x128xf32, #tpu.memory_space<vmem>>, %arg4: memref<128x128xbf16, #tpu.memory_space<vmem>>, %arg5: memref<1x128xf32, #tpu.memory_space<vmem>>, %arg6: memref<128x128xbf16, #tpu.memory_space<vmem>>, %arg7: memref<1x128xf32, #tpu.memory_space<vmem>>, %arg8: memref<128x2xf32, #tpu.memory_space<vmem>>, %arg9: memref<128x128xf32, #tpu.memory_space<vmem>>, %arg10: memref<128x128xf32, #tpu.memory_space<vmem>>, %arg11: memref<128x128xf32, #tpu.memory_space<vmem>>) attributes {dimension_semantics = [#tpu.dimension_semantics<parallel>], iteration_bounds = array<i64: 2>, scalar_prefetch = 0 : i64, scratch_operands = 0 : i64, tpu.core_type = #tpu.core_type<tc>, window_params = [{transform_indices = @transform_0, window_bounds = array<i64: 128, 128>}, {transform_indices = @transform_1, window_bounds = array<i64: 128, 128>}, {transform_indices = @transform_2, window_bounds = array<i64: 128, 128>}, {pipeline_mode = #tpu.pipeline_mode<synchronous>, transform_indices = @transform_3, window_bounds = array<i64: 128, 128>}, {pipeline_mode = #tpu.pipeline_mode<synchronous>, transform_indices = @transform_4, window_bounds = array<i64: 1, 128>}, {pipeline_mode = #tpu.pipeline_mode<synchronous>, transform_indices = @transform_5, window_bounds = array<i64: 128, 128>}, {pipeline_mode = #tpu.pipeline_mode<synchronous>, transform_indices = @transform_6, window_bounds = array<i64: 1, 128>}, {transform_indices = @transform_7, window_bounds = array<i64: 128, 2>}, {transform_indices = @transform_8, window_bounds = array<i64: 128, 128>}, {transform_indices = @transform_9, window_bounds = array<i64: 128, 128>}, {transform_indices = @transform_10, window_bounds = array<i64: 128, 128>}]} {
    %c0 = arith.constant 0 : index
    %c0_0 = arith.constant 0 : index
    %0 = vector.load %arg4[%c0, %c0_0] : memref<128x128xbf16, #tpu.memory_space<vmem>>, vector<128x128xbf16>
    %c0_1 = arith.constant 0 : index
    %c0_2 = arith.constant 0 : index
    %1 = vector.load %arg6[%c0_1, %c0_2] : memref<128x128xbf16, #tpu.memory_space<vmem>>, vector<128x128xbf16>
    %c0_3 = arith.constant 0 : index
    %c0_4 = arith.constant 0 : index
    %2 = vector.load %arg5[%c0_3, %c0_4] : memref<1x128xf32, #tpu.memory_space<vmem>>, vector<1x128xf32>
    %c0_5 = arith.constant 0 : index
    %c0_6 = arith.constant 0 : index
    %3 = vector.load %arg7[%c0_5, %c0_6] : memref<1x128xf32, #tpu.memory_space<vmem>>, vector<1x128xf32>
    %c0_7 = arith.constant 0 : index
    %c0_8 = arith.constant 0 : index
    %4 = vector.load %arg1[%c0_7, %c0_8] : memref<128x128xf32, #tpu.memory_space<vmem>>, vector<128x128xf32>
    %5 = arith.truncf %4 : vector<128x128xf32> to vector<128x128xbf16>
    %cst = arith.constant dense<0.000000e+00> : vector<128x128xf32>
    %6 = tpu.matmul %5, %0, %cst {dimension_numbers = #tpu.dot_dimension_numbers<[1], [0], [0], [1], [0, 0, 1, 1], [], []>} : vector<128x128xbf16>, vector<128x128xbf16>, vector<128x128xf32> -> vector<128x128xf32>
    %7 = vector.broadcast %2 : vector<1x128xf32> to vector<128x128xf32>
    %8 = arith.addf %6, %7 : vector<128x128xf32>
    %cst_9 = arith.constant 0.000000e+00 : f32
    %9 = vector.broadcast %cst_9 : f32 to vector<128x128xf32>
    %10 = arith.maximumf %8, %9 : vector<128x128xf32>
    %11 = arith.truncf %10 : vector<128x128xf32> to vector<128x128xbf16>
    %cst_10 = arith.constant dense<0.000000e+00> : vector<128x128xf32>
    %12 = tpu.matmul %11, %1, %cst_10 {dimension_numbers = #tpu.dot_dimension_numbers<[1], [0], [0], [1], [0, 0, 1, 1], [], []>} : vector<128x128xbf16>, vector<128x128xbf16>, vector<128x128xf32> -> vector<128x128xf32>
    %13 = vector.broadcast %3 : vector<1x128xf32> to vector<128x128xf32>
    %14 = arith.addf %12, %13 : vector<128x128xf32>
    %c0_11 = arith.constant 0 : index
    %c0_12 = arith.constant 0 : index
    %15 = vector.load %arg2[%c0_11, %c0_12] : memref<128x128xf32, #tpu.memory_space<vmem>>, vector<128x128xf32>
    %16 = arith.truncf %15 : vector<128x128xf32> to vector<128x128xbf16>
    %cst_13 = arith.constant dense<0.000000e+00> : vector<128x128xf32>
    %17 = tpu.matmul %16, %0, %cst_13 {dimension_numbers = #tpu.dot_dimension_numbers<[1], [0], [0], [1], [0, 0, 1, 1], [], []>} : vector<128x128xbf16>, vector<128x128xbf16>, vector<128x128xf32> -> vector<128x128xf32>
    %18 = vector.broadcast %2 : vector<1x128xf32> to vector<128x128xf32>
    %19 = arith.addf %17, %18 : vector<128x128xf32>
    %cst_14 = arith.constant 0.000000e+00 : f32
    %20 = vector.broadcast %cst_14 : f32 to vector<128x128xf32>
    %21 = arith.maximumf %19, %20 : vector<128x128xf32>
    %22 = arith.truncf %21 : vector<128x128xf32> to vector<128x128xbf16>
    %cst_15 = arith.constant dense<0.000000e+00> : vector<128x128xf32>
    %23 = tpu.matmul %22, %1, %cst_15 {dimension_numbers = #tpu.dot_dimension_numbers<[1], [0], [0], [1], [0, 0, 1, 1], [], []>} : vector<128x128xbf16>, vector<128x128xbf16>, vector<128x128xf32> -> vector<128x128xf32>
    %24 = vector.broadcast %3 : vector<1x128xf32> to vector<128x128xf32>
    %25 = arith.addf %23, %24 : vector<128x128xf32>
    %c0_16 = arith.constant 0 : index
    %c0_17 = arith.constant 0 : index
    %26 = vector.load %arg3[%c0_16, %c0_17] : memref<128x128xf32, #tpu.memory_space<vmem>>, vector<128x128xf32>
    %27 = arith.truncf %26 : vector<128x128xf32> to vector<128x128xbf16>
    %cst_18 = arith.constant dense<0.000000e+00> : vector<128x128xf32>
    %28 = tpu.matmul %27, %0, %cst_18 {dimension_numbers = #tpu.dot_dimension_numbers<[1], [0], [0], [1], [0, 0, 1, 1], [], []>} : vector<128x128xbf16>, vector<128x128xbf16>, vector<128x128xf32> -> vector<128x128xf32>
    %29 = vector.broadcast %2 : vector<1x128xf32> to vector<128x128xf32>
    %30 = arith.addf %28, %29 : vector<128x128xf32>
    %cst_19 = arith.constant 0.000000e+00 : f32
    %31 = vector.broadcast %cst_19 : f32 to vector<128x128xf32>
    %32 = arith.maximumf %30, %31 : vector<128x128xf32>
    %33 = arith.truncf %32 : vector<128x128xf32> to vector<128x128xbf16>
    %cst_20 = arith.constant dense<0.000000e+00> : vector<128x128xf32>
    %34 = tpu.matmul %33, %1, %cst_20 {dimension_numbers = #tpu.dot_dimension_numbers<[1], [0], [0], [1], [0, 0, 1, 1], [], []>} : vector<128x128xbf16>, vector<128x128xbf16>, vector<128x128xf32> -> vector<128x128xf32>
    %35 = vector.broadcast %3 : vector<1x128xf32> to vector<128x128xf32>
    %36 = arith.addf %34, %35 : vector<128x128xf32>
    %c0_21 = arith.constant 0 : index
    %c0_22 = arith.constant 0 : index
    %37 = vector.load %arg9[%c0_21, %c0_22] : memref<128x128xf32, #tpu.memory_space<vmem>>, vector<128x128xf32>
    tpu.vector_store %arg9[%c0_21, %c0_22], %14 {strides = array<i32>} : memref<128x128xf32, #tpu.memory_space<vmem>>, vector<128x128xf32>,
    %c0_23 = arith.constant 0 : index
    %c0_24 = arith.constant 0 : index
    %38 = vector.load %arg10[%c0_23, %c0_24] : memref<128x128xf32, #tpu.memory_space<vmem>>, vector<128x128xf32>
    tpu.vector_store %arg10[%c0_23, %c0_24], %25 {strides = array<i32>} : memref<128x128xf32, #tpu.memory_space<vmem>>, vector<128x128xf32>,
    %c0_25 = arith.constant 0 : index
    %c0_26 = arith.constant 0 : index
    %39 = vector.load %arg11[%c0_25, %c0_26] : memref<128x128xf32, #tpu.memory_space<vmem>>, vector<128x128xf32>
    tpu.vector_store %arg11[%c0_25, %c0_26], %36 {strides = array<i32>} : memref<128x128xf32, #tpu.memory_space<vmem>>, vector<128x128xf32>,
    %40 = arith.subf %14, %25 : vector<128x128xf32>
    %cst_27 = arith.constant 9.99999997E-7 : f32
    %41 = vector.broadcast %cst_27 : f32 to vector<128x128xf32>
    %42 = arith.addf %40, %41 : vector<128x128xf32>
    %43 = arith.subf %14, %36 : vector<128x128xf32>
    %cst_28 = arith.constant 9.99999997E-7 : f32
    %44 = vector.broadcast %cst_28 : f32 to vector<128x128xf32>
    %45 = arith.addf %43, %44 : vector<128x128xf32>
    %46 = arith.mulf %42, %42 : vector<128x128xf32>
    %cst_29 = arith.constant dense<0.000000e+00> : vector<128xf32>
    %47 = vector.multi_reduction <add>, %46, %cst_29 [1] : vector<128x128xf32> to vector<128xf32>
    %48 = vector.shape_cast %47 : vector<128xf32> to vector<128x1xf32>
    %49 = arith.mulf %45, %45 : vector<128x128xf32>
    %cst_30 = arith.constant dense<0.000000e+00> : vector<128xf32>
    %50 = vector.multi_reduction <add>, %49, %cst_30 [1] : vector<128x128xf32> to vector<128xf32>
    %51 = vector.shape_cast %50 : vector<128xf32> to vector<128x1xf32>
    %52 = tpu.concatenate %48, %51 in 1 : vector<128x1xf32>, vector<128x1xf32> -> vector<128x2xf32>
    %53 = math.sqrt %52 : vector<128x2xf32>
    %c0_31 = arith.constant 0 : index
    %c0_32 = arith.constant 0 : index
    %54 = vector.load %arg8[%c0_31, %c0_32] : memref<128x2xf32, #tpu.memory_space<vmem>>, vector<128x2xf32>
    tpu.vector_store %arg8[%c0_31, %c0_32], %53 {strides = array<i32>} : memref<128x2xf32, #tpu.memory_space<vmem>>, vector<128x2xf32>,
    return
  }
  func.func @transform_0(%arg0: i32) -> (i32, i32) {
    %c0_i32 = arith.constant 0 : i32
    %c0_i32_0 = arith.constant 0 : i32
    return %arg0, %c0_i32 : i32, i32
  }
  func.func @transform_1(%arg0: i32) -> (i32, i32) {
    %c0_i32 = arith.constant 0 : i32
    %c0_i32_0 = arith.constant 0 : i32
    return %arg0, %c0_i32 : i32, i32
  }
  func.func @transform_2(%arg0: i32) -> (i32, i32) {
    %c0_i32 = arith.constant 0 : i32
    %c0_i32_0 = arith.constant 0 : i32
    return %arg0, %c0_i32 : i32, i32
  }
  func.func @transform_3(%arg0: i32) -> (i32, i32) {
    %c0_i32 = arith.constant 0 : i32
    %c0_i32_0 = arith.constant 0 : i32
    %c0_i32_1 = arith.constant 0 : i32
    return %c0_i32, %c0_i32_0 : i32, i32
  }
  func.func @transform_4(%arg0: i32) -> (i32, i32) {
    %c0_i32 = arith.constant 0 : i32
    %c0_i32_0 = arith.constant 0 : i32
    %c0_i32_1 = arith.constant 0 : i32
    return %c0_i32, %c0_i32_0 : i32, i32
  }
  func.func @transform_5(%arg0: i32) -> (i32, i32) {
    %c0_i32 = arith.constant 0 : i32
    %c0_i32_0 = arith.constant 0 : i32
    %c0_i32_1 = arith.constant 0 : i32
    return %c0_i32, %c0_i32_0 : i32, i32
  }
  func.func @transform_6(%arg0: i32) -> (i32, i32) {
    %c0_i32 = arith.constant 0 : i32
    %c0_i32_0 = arith.constant 0 : i32
    %c0_i32_1 = arith.constant 0 : i32
    return %c0_i32, %c0_i32_0 : i32, i32
  }
  func.func @transform_7(%arg0: i32) -> (i32, i32) {
    %c0_i32 = arith.constant 0 : i32
    %c0_i32_0 = arith.constant 0 : i32
    return %arg0, %c0_i32 : i32, i32
  }
  func.func @transform_8(%arg0: i32) -> (i32, i32) {
    %c0_i32 = arith.constant 0 : i32
    %c0_i32_0 = arith.constant 0 : i32
    return %arg0, %c0_i32 : i32, i32
  }
  func.func @transform_9(%arg0: i32) -> (i32, i32) {
    %c0_i32 = arith.constant 0 : i32
    %c0_i32_0 = arith.constant 0 : i32
    return %arg0, %c0_i32 : i32, i32
  }
  func.func @transform_10(%arg0: i32) -> (i32, i32) {
    %c0_i32 = arith.constant 0 : i32
    %c0_i32_0 = arith.constant 0 : i32
    return %arg0, %c0_i32 : i32, i32
  }
}

module attributes {stable_mosaic.version = 11 : i64} {
  func.func @_triplet_kernel(%arg0: i32, %arg1: memref<128x128xf32, #tpu.memory_space<vmem>>, %arg2: memref<128x128xf32, #tpu.memory_space<vmem>>, %arg3: memref<128x128xf32, #tpu.memory_space<vmem>>, %arg4: memref<128x128xbf16, #tpu.memory_space<vmem>>, %arg5: memref<1x128xf32, #tpu.memory_space<vmem>>, %arg6: memref<128x128xbf16, #tpu.memory_space<vmem>>, %arg7: memref<1x128xf32, #tpu.memory_space<vmem>>, %arg8: memref<128x2xf32, #tpu.memory_space<vmem>>, %arg9: memref<128x128xf32, #tpu.memory_space<vmem>>, %arg10: memref<128x128xf32, #tpu.memory_space<vmem>>, %arg11: memref<128x128xf32, #tpu.memory_space<vmem>>) attributes {dimension_semantics = [#tpu.dimension_semantics<parallel>], iteration_bounds = array<i64: 2>, scalar_prefetch = 0 : i64, scratch_operands = 0 : i64, tpu.core_type = #tpu.core_type<tc>, window_params = [{transform_indices = @transform_0, window_bounds = array<i64: 128, 128>}, {transform_indices = @transform_1, window_bounds = array<i64: 128, 128>}, {transform_indices = @transform_2, window_bounds = array<i64: 128, 128>}, {pipeline_mode = #tpu.pipeline_mode<synchronous>, transform_indices = @transform_3, window_bounds = array<i64: 128, 128>}, {pipeline_mode = #tpu.pipeline_mode<synchronous>, transform_indices = @transform_4, window_bounds = array<i64: 1, 128>}, {pipeline_mode = #tpu.pipeline_mode<synchronous>, transform_indices = @transform_5, window_bounds = array<i64: 128, 128>}, {pipeline_mode = #tpu.pipeline_mode<synchronous>, transform_indices = @transform_6, window_bounds = array<i64: 1, 128>}, {transform_indices = @transform_7, window_bounds = array<i64: 128, 2>}, {transform_indices = @transform_8, window_bounds = array<i64: 128, 128>}, {transform_indices = @transform_9, window_bounds = array<i64: 128, 128>}, {transform_indices = @transform_10, window_bounds = array<i64: 128, 128>}]} {
    %c0 = arith.constant 0 : index
    %c0_0 = arith.constant 0 : index
    %0 = vector.load %arg4[%c0, %c0_0] : memref<128x128xbf16, #tpu.memory_space<vmem>>, vector<128x128xbf16>
    %c0_1 = arith.constant 0 : index
    %c0_2 = arith.constant 0 : index
    %1 = vector.load %arg6[%c0_1, %c0_2] : memref<128x128xbf16, #tpu.memory_space<vmem>>, vector<128x128xbf16>
    %c0_3 = arith.constant 0 : index
    %c0_4 = arith.constant 0 : index
    %2 = vector.load %arg5[%c0_3, %c0_4] : memref<1x128xf32, #tpu.memory_space<vmem>>, vector<1x128xf32>
    %c0_5 = arith.constant 0 : index
    %c0_6 = arith.constant 0 : index
    %3 = vector.load %arg7[%c0_5, %c0_6] : memref<1x128xf32, #tpu.memory_space<vmem>>, vector<1x128xf32>
    %c0_7 = arith.constant 0 : index
    %c0_8 = arith.constant 0 : index
    %4 = vector.load %arg1[%c0_7, %c0_8] : memref<128x128xf32, #tpu.memory_space<vmem>>, vector<128x128xf32>
    %5 = arith.truncf %4 : vector<128x128xf32> to vector<128x128xbf16>
    %cst = arith.constant dense<0.000000e+00> : vector<128x128xf32>
    %6 = tpu.matmul %5, %0, %cst {dimension_numbers = #tpu.dot_dimension_numbers<[1], [0], [0], [1], [0, 0, 1, 1], [], []>} : vector<128x128xbf16>, vector<128x128xbf16>, vector<128x128xf32> -> vector<128x128xf32>
    %7 = vector.broadcast %2 : vector<1x128xf32> to vector<128x128xf32>
    %8 = arith.addf %6, %7 : vector<128x128xf32>
    %cst_9 = arith.constant 0.000000e+00 : f32
    %9 = vector.broadcast %cst_9 : f32 to vector<128x128xf32>
    %10 = arith.maximumf %8, %9 : vector<128x128xf32>
    %11 = arith.truncf %10 : vector<128x128xf32> to vector<128x128xbf16>
    %cst_10 = arith.constant dense<0.000000e+00> : vector<128x128xf32>
    %12 = tpu.matmul %11, %1, %cst_10 {dimension_numbers = #tpu.dot_dimension_numbers<[1], [0], [0], [1], [0, 0, 1, 1], [], []>} : vector<128x128xbf16>, vector<128x128xbf16>, vector<128x128xf32> -> vector<128x128xf32>
    %13 = vector.broadcast %3 : vector<1x128xf32> to vector<128x128xf32>
    %14 = arith.addf %12, %13 : vector<128x128xf32>
    %c0_11 = arith.constant 0 : index
    %c0_12 = arith.constant 0 : index
    %15 = vector.load %arg2[%c0_11, %c0_12] : memref<128x128xf32, #tpu.memory_space<vmem>>, vector<128x128xf32>
    %16 = arith.truncf %15 : vector<128x128xf32> to vector<128x128xbf16>
    %cst_13 = arith.constant dense<0.000000e+00> : vector<128x128xf32>
    %17 = tpu.matmul %16, %0, %cst_13 {dimension_numbers = #tpu.dot_dimension_numbers<[1], [0], [0], [1], [0, 0, 1, 1], [], []>} : vector<128x128xbf16>, vector<128x128xbf16>, vector<128x128xf32> -> vector<128x128xf32>
    %18 = vector.broadcast %2 : vector<1x128xf32> to vector<128x128xf32>
    %19 = arith.addf %17, %18 : vector<128x128xf32>
    %cst_14 = arith.constant 0.000000e+00 : f32
    %20 = vector.broadcast %cst_14 : f32 to vector<128x128xf32>
    %21 = arith.maximumf %19, %20 : vector<128x128xf32>
    %22 = arith.truncf %21 : vector<128x128xf32> to vector<128x128xbf16>
    %cst_15 = arith.constant dense<0.000000e+00> : vector<128x128xf32>
    %23 = tpu.matmul %22, %1, %cst_15 {dimension_numbers = #tpu.dot_dimension_numbers<[1], [0], [0], [1], [0, 0, 1, 1], [], []>} : vector<128x128xbf16>, vector<128x128xbf16>, vector<128x128xf32> -> vector<128x128xf32>
    %24 = vector.broadcast %3 : vector<1x128xf32> to vector<128x128xf32>
    %25 = arith.addf %23, %24 : vector<128x128xf32>
    %c0_16 = arith.constant 0 : index
    %c0_17 = arith.constant 0 : index
    %26 = vector.load %arg3[%c0_16, %c0_17] : memref<128x128xf32, #tpu.memory_space<vmem>>, vector<128x128xf32>
    %27 = arith.truncf %26 : vector<128x128xf32> to vector<128x128xbf16>
    %cst_18 = arith.constant dense<0.000000e+00> : vector<128x128xf32>
    %28 = tpu.matmul %27, %0, %cst_18 {dimension_numbers = #tpu.dot_dimension_numbers<[1], [0], [0], [1], [0, 0, 1, 1], [], []>} : vector<128x128xbf16>, vector<128x128xbf16>, vector<128x128xf32> -> vector<128x128xf32>
    %29 = vector.broadcast %2 : vector<1x128xf32> to vector<128x128xf32>
    %30 = arith.addf %28, %29 : vector<128x128xf32>
    %cst_19 = arith.constant 0.000000e+00 : f32
    %31 = vector.broadcast %cst_19 : f32 to vector<128x128xf32>
    %32 = arith.maximumf %30, %31 : vector<128x128xf32>
    %33 = arith.truncf %32 : vector<128x128xf32> to vector<128x128xbf16>
    %cst_20 = arith.constant dense<0.000000e+00> : vector<128x128xf32>
    %34 = tpu.matmul %33, %1, %cst_20 {dimension_numbers = #tpu.dot_dimension_numbers<[1], [0], [0], [1], [0, 0, 1, 1], [], []>} : vector<128x128xbf16>, vector<128x128xbf16>, vector<128x128xf32> -> vector<128x128xf32>
    %35 = vector.broadcast %3 : vector<1x128xf32> to vector<128x128xf32>
    %36 = arith.addf %34, %35 : vector<128x128xf32>
    %c0_21 = arith.constant 0 : index
    %c0_22 = arith.constant 0 : index
    %37 = vector.load %arg9[%c0_21, %c0_22] : memref<128x128xf32, #tpu.memory_space<vmem>>, vector<128x128xf32>
    tpu.vector_store %arg9[%c0_21, %c0_22], %14 {strides = array<i32>} : memref<128x128xf32, #tpu.memory_space<vmem>>, vector<128x128xf32>,
    %c0_23 = arith.constant 0 : index
    %c0_24 = arith.constant 0 : index
    %38 = vector.load %arg10[%c0_23, %c0_24] : memref<128x128xf32, #tpu.memory_space<vmem>>, vector<128x128xf32>
    tpu.vector_store %arg10[%c0_23, %c0_24], %25 {strides = array<i32>} : memref<128x128xf32, #tpu.memory_space<vmem>>, vector<128x128xf32>,
    %c0_25 = arith.constant 0 : index
    %c0_26 = arith.constant 0 : index
    %39 = vector.load %arg11[%c0_25, %c0_26] : memref<128x128xf32, #tpu.memory_space<vmem>>, vector<128x128xf32>
    tpu.vector_store %arg11[%c0_25, %c0_26], %36 {strides = array<i32>} : memref<128x128xf32, #tpu.memory_space<vmem>>, vector<128x128xf32>,
    %40 = arith.subf %14, %25 : vector<128x128xf32>
    %cst_27 = arith.constant 9.99999997E-7 : f32
    %41 = vector.broadcast %cst_27 : f32 to vector<128x128xf32>
    %42 = arith.addf %40, %41 : vector<128x128xf32>
    %43 = arith.subf %14, %36 : vector<128x128xf32>
    %cst_28 = arith.constant 9.99999997E-7 : f32
    %44 = vector.broadcast %cst_28 : f32 to vector<128x128xf32>
    %45 = arith.addf %43, %44 : vector<128x128xf32>
    %46 = arith.mulf %42, %42 : vector<128x128xf32>
    %cst_29 = arith.constant dense<0.000000e+00> : vector<128xf32>
    %47 = vector.multi_reduction <add>, %46, %cst_29 [1] : vector<128x128xf32> to vector<128xf32>
    %48 = vector.shape_cast %47 : vector<128xf32> to vector<128x1xf32>
    %49 = arith.mulf %45, %45 : vector<128x128xf32>
    %cst_30 = arith.constant dense<0.000000e+00> : vector<128xf32>
    %50 = vector.multi_reduction <add>, %49, %cst_30 [1] : vector<128x128xf32> to vector<128xf32>
    %51 = vector.shape_cast %50 : vector<128xf32> to vector<128x1xf32>
    %52 = tpu.concatenate %48, %51 in 1 : vector<128x1xf32>, vector<128x1xf32> -> vector<128x2xf32>
    %53 = math.sqrt %52 : vector<128x2xf32>
    %c0_31 = arith.constant 0 : index
    %c0_32 = arith.constant 0 : index
    %54 = vector.load %arg8[%c0_31, %c0_32] : memref<128x2xf32, #tpu.memory_space<vmem>>, vector<128x2xf32>
    tpu.vector_store %arg8[%c0_31, %c0_32], %53 {strides = array<i32>} : memref<128x2xf32, #tpu.memory_space<vmem>>, vector<128x2xf32>,
    return
  }
  func.func @transform_0(%arg0: i32) -> (i32, i32) {
    %c0_i32 = arith.constant 0 : i32
    %c0_i32_0 = arith.constant 0 : i32
    return %arg0, %c0_i32 : i32, i32
  }
  func.func @transform_1(%arg0: i32) -> (i32, i32) {
    %c0_i32 = arith.constant 0 : i32
    %c0_i32_0 = arith.constant 0 : i32
    return %arg0, %c0_i32 : i32, i32
  }
  func.func @transform_2(%arg0: i32) -> (i32, i32) {
    %c0_i32 = arith.constant 0 : i32
    %c0_i32_0 = arith.constant 0 : i32
    return %arg0, %c0_i32 : i32, i32
  }
  func.func @transform_3(%arg0: i32) -> (i32, i32) {
    %c0_i32 = arith.constant 0 : i32
    %c0_i32_0 = arith.constant 0 : i32
    %c0_i32_1 = arith.constant 0 : i32
    return %c0_i32, %c0_i32_0 : i32, i32
  }
  func.func @transform_4(%arg0: i32) -> (i32, i32) {
    %c0_i32 = arith.constant 0 : i32
    %c0_i32_0 = arith.constant 0 : i32
    %c0_i32_1 = arith.constant 0 : i32
    return %c0_i32, %c0_i32_0 : i32, i32
  }
  func.func @transform_5(%arg0: i32) -> (i32, i32) {
    %c0_i32 = arith.constant 0 : i32
    %c0_i32_0 = arith.constant 0 : i32
    %c0_i32_1 = arith.constant 0 : i32
    return %c0_i32, %c0_i32_0 : i32, i32
  }
  func.func @transform_6(%arg0: i32) -> (i32, i32) {
    %c0_i32 = arith.constant 0 : i32
    %c0_i32_0 = arith.constant 0 : i32
    %c0_i32_1 = arith.constant 0 : i32
    return %c0_i32, %c0_i32_0 : i32, i32
  }
  func.func @transform_7(%arg0: i32) -> (i32, i32) {
    %c0_i32 = arith.constant 0 : i32
    %c0_i32_0 = arith.constant 0 : i32
    return %arg0, %c0_i32 : i32, i32
  }
  func.func @transform_8(%arg0: i32) -> (i32, i32) {
    %c0_i32 = arith.constant 0 : i32
    %c0_i32_0 = arith.constant 0 : i32
    return %arg0, %c0_i32 : i32, i32
  }
  func.func @transform_9(%arg0: i32) -> (i32, i32) {
    %c0_i32 = arith.constant 0 : i32
    %c0_i32_0 = arith.constant 0 : i32
    return %arg0, %c0_i32 : i32, i32
  }
  func.func @transform_10(%arg0: i32) -> (i32, i32) {
    %c0_i32 = arith.constant 0 : i32
    %c0_i32_0 = arith.constant 0 : i32
    return %arg0, %c0_i32 : i32, i32
  }
}

</mosaic_0001>

<bundles_post_ra>
// kernel: tpu_custom_call.1
= control target key start
LH: loop header
LB: loop body
LE: loop exit
PB: predicated region body
PF: predicated region fallthrough
CT: control target
= control target key end

     0   :  { %s3121_s0 = inlined_call_operand.hbm [shape: f32[256,128], index: 0, kind: input, shape index: {}]   ;;  %s3122_s1 = inlined_call_operand.hbm [shape: f32[256,128], index: 1, kind: input, shape index: {}]   ;;  %s3123_s2 = inlined_call_operand.hbm [shape: f32[256,128], index: 2, kind: input, shape index: {}]   ;;  %s3124_s3 = inlined_call_operand.hbm [shape: bf16[128,128], index: 3, kind: input, shape index: {}]   ;;  %s3125_s4 = inlined_call_operand.vmem [shape: f32[1,128], index: 4, kind: input, shape index: {}]   ;;  %s3126_s5 = inlined_call_operand.hbm [shape: bf16[128,128], index: 5, kind: input, shape index: {}]   ;;  %s3127_s6 = inlined_call_operand.vmem [shape: f32[1,128], index: 6, kind: input, shape index: {}]   ;;  %s3128_s7 = inlined_call_operand.vmem [shape: f32[256,2], index: 7, kind: output, shape index: {0}]   ;;  %s3129_s8 = inlined_call_operand.hbm [shape: f32[256,128], index: 8, kind: output, shape index: {1}]   ;;  %s3130_s9 = inlined_call_operand.hbm [shape: f32[256,128], index: 9, kind: output, shape index: {2}]   ;;  %s3131_s10 = inlined_call_operand.hbm [shape: f32[256,128], index: 10, kind: output, shape index: {3}]  }
   0x1   :  { %3149 = sst [smem:[#allocation26_spill]] %s3122_s1 }
   0x2   :  { %3150 = sst [smem:[#allocation27_spill]] %s3124_s3 }
   0x3   :  { %3151 = sst [smem:[#allocation28_spill]] %s3126_s5 }
   0x4   :  { %3152 = sst [smem:[#allocation29_spill]] %s3129_s8 }
   0x5   :  { %3153 = sst [smem:[#allocation30_spill]] %s3131_s10 }
   0x6   :  { %16 = vsyncpa [#allocation3], 0 }
   0x7   :  { %18 = vsyncpa [#allocation3 + $0x1], 0 }
   0x8   :  { %19 = vsyncpa [#allocation6], 0 }
   0x9   :  { %21 = vsyncpa [#allocation6 + $0x1], 0 }
   0xa   :  { %22 = vsyncpa [#allocation9], 0 }
   0xb   :  { %23 = vsyncpa [#allocation4], 0 }
   0xc   :  { %25 = vsyncpa [#allocation4 + $0x1], 0 }
   0xd   :  { %26 = vsyncpa [#allocation13], 0 }
   0xe   :  { %28 = vsyncpa [#allocation13 + $0x1], 0  ;;  %s2445_s13 = smov 0   ;;  %s2447_s14 = smov 0  }
   0xf   :  { %s2449_s15 = smov 0   ;;  %s2451_s16 = smov 0  }
  0x10 LB: > { %3154 = sst [smem:[#allocation20_spill]] %s2368_s13  ;;  %s2466_s17 = sadd.s32 4294967295, %s2380_s16   ;;  %s2380_s16 = sphi %s2451_s16, %s3183_s16   ;;  %s2376_s15 = sphi %s2449_s15, %s3187_s15   ;;  %s2372_s14 = sphi %s2447_s14, %s3186_s14   ;;  %s2368_s13 = sphi %s2445_s13, %s3185_s13  }
  0x11   : > { %3155 = sst [smem:[#allocation21_spill]] %s2380_s16  ;;  %s3132_s18 = sadd.s32 4294967294, %s2380_s16  }
  0x12   : > { %p54_p0 = scmp.ne.s32.totalorder %s2372_s14, %s2368_s13  ;;  %p3146_p1 = scmp.eq.s32.totalorder %s2466_s17, 0 }
  0x13   : > { %p240_p2 = scmp.eq.s32.totalorder %s2466_s17, 1  ;;  %p246_p3 = scmp.eq.s32.totalorder %s3132_s18, 1 }
  0x14   : > { %p2477_p4 = por %p3146_p1, %p54_p0  ;;  %p1832_p5 = scmp.ge.s32.totalorder %s2380_s16, 1 }
  0x15   : > { %p2482_p6 = por %p246_p3, %p54_p0  ;;  %p305_p7 = scmp.lt.s32.totalorder %s2380_s16, 3 }
  0x16   : > { %s3159_s3 = sld [smem:[#allocation27_spill]]  ;;  %s2382_s25 = smov [#allocation8]  }
  0x17   : > { %s3157_s20 = scalar_select %p2482_p6, 1, 0 }
  0x18   : > { %p2490_p8 = pnand %p1832_p5, %p305_p7  ;;  %s318_s26 = sshll.u32 %s2382_s25, 4  ;;  %s319_s26 = int_to_ptr.vmem [resolvable:$true] %s318_s26 }
  0x19   : > { %3158 = sst [smem:[#allocation22_spill]] %s3157_s20  ;;  %s2504_s28 = sadd.s32 1, %s2380_s16  }
  0x1a   : > { %p1989_p9 = pneg %p2490_p8  ;;  %3162 = sst [smem:[#allocation23_spill]] %s2504_s28 }
  0x1b   : > { %s3133_s29 = smov 64   ;;  %s3134_s30 = smov 4  }
  0x1c   : > { %s316_s23 = sshll.u32 %s3159_s3, 4  ;;  %p2498_p10 = pnand %p1989_p9, %p3146_p1  ;;  %s317_s23 = int_to_ptr.hbm [resolvable:$true] %s316_s23 }
  0x1d   : > { %s38_s11 = ssub.s32 %s2380_s16, %s2504_s28  ;;  %s41_s12 = sadd.s32 1, %s2376_s15 }
  0x1e   : > { %1992 = dma.hbm_to_vmem [thread:$0]  (!%p2498_p10), %s317_s23, 1024, %s319_s26, [#allocation9], %s3133_s29, %s3133_s29, %s3134_s30  }
  0x1f   : > { %p39_p12 = scmp.eq.s32.totalorder %s38_s11, 0  ;;  %p48_p13 = scmp.ne.s32.totalorder %s2376_s15, %s2372_s14 }
  0x20   : > { %p49_p0 = scmp.eq.s32.totalorder %s2380_s16, 0  ;;  %p2018_p3 = scmp.lt.s32.totalorder %s2380_s16, 2 }
  0x21   : > { %s2519_s21 = scalar_select %p39_p12, %s2376_s15, %s41_s12  }
  0x22   : > { %p50_p5 = por %p49_p0, %p48_p13  ;;  %p2523_p7 = por %p240_p2, %p48_p13 }
  0x23   : > { %3163 = sst [smem:[#allocation24_spill]] %s2519_s21  ;;  %s3138_s25 = sand.u32 1, %s2376_s15  }
  0x24   : > { %s3164_s22 = scalar_select %p2523_p7, 1, 0 }
  0x25   : > { %s2529_s18 = sshll.u32 %s2380_s16, 7  ;;  %s2533_s23 = sshll.u32 %s3138_s25, 7 }
  0x26   : > { %3165 = sst [smem:[#allocation25_spill]] %s3164_s22  ;;  %p2535_p9 = pnand %p2018_p3, %p50_p5 }
  0x27   : > { %s374_s11 = sand.u32 1, %s2380_s16   ;;  %s3167_s1 = sld [smem:[#allocation26_spill]] }
  0x28   : > { %s378_s3 = scalar_lea.vmem [#allocation5], %s2533_s23  ;;  %s3168_s5 = sld [smem:[#allocation28_spill]] }
  0x29   : > { %s386_s21 = sshll.u32 %s378_s3, 4  ;;  %s2548_s8 = scalar_lea.sflag [#allocation6], %s374_s11  ;;  %s387_s21 = int_to_ptr.vmem [resolvable:$true] %s386_s21 }
  0x2a   : > { %p2130_p12 = pneg %p2535_p9 }
  0x2d   : > { %s383_s30 = scalar_lea.hbm %s3167_s1, %s2529_s18 }
  0x2e   : > { %s384_s28 = sshll.u32 %s383_s30, 4  ;;  %s333_s13 = sshll.u32 %s3168_s5, 4  ;;  %s385_s28 = int_to_ptr.hbm [resolvable:$true] %s384_s28  ;;  %s334_s13 = int_to_ptr.hbm [resolvable:$true] %s333_s13 }
  0x2f   : > { %s2126_s10 = sshra.s32 %s385_s28, 4  ;;  %s2133_s30 = scalar_lea.hbm %s3167_s1, 256  ;;  %s2127_s10 = int_to_ptr.hbm [resolvable:$true] %s2126_s10 }
  0x30   : > { %s2128_s22 = scalar_lea.hbm %s2127_s10, 128  ;;  %p2134_p3 = scmp.lt.s32.totalorder %s2127_s10, %s3167_s1 }
  0x31   : > { %p2129_p2 = scmp.ne.s32.totalorder %s2127_s10, %s2128_s22  ;;  %p2135_p5 = scmp.lt.s32.totalorder %s2133_s30, %s2128_s22 }
  0x33   : > { %p2131_p13 = pnand %p2130_p12, %p2129_p2  ;;  %p2136_p11 = por %p2135_p5, %p2134_p3 }
  0x35   : > { %p2132_p0 = pneg %p2131_p13 }
  0x37   : > { %p2137_p1 = pnand %p2136_p11, %p2132_p0 }
  0x39   : > { %2140 = shalt.err (!%p2137_p1)
}
  0x3a   : > { %s3147_s20 = smov 128   ;;  %s2386_s25 = smov 8  }
  0x3b   : > { %2002 = dma.hbm_to_vmem [thread:$0]  (!%p2535_p9), %s385_s28, 2048, %s387_s21, %s2548_s8, %s3147_s20, %s3147_s20, %s2386_s25  }
  0x3c   : > { %s2387_s10 = smov [#allocation10]   ;;  %s3169_s22 = smov 4  }
  0x3d   : > { %s335_s16 = sshll.u32 %s2387_s10, 4  ;;  %s3170_s11 = smov 64   ;;  %s336_s16 = int_to_ptr.vmem [resolvable:$true] %s335_s16 }
  0x3e   : > { %1995 = dma.hbm_to_vmem [thread:$0]  (!%p2498_p10), %s334_s13, 1024, %s336_s16, [#allocation9], %s3170_s11, %s3170_s11, %s3169_s22  }
  0x3f   : > { %s361_s30 = scalar_lea.hbm %s3121_s0, %s2529_s18  ;;  %s356_s12 = scalar_lea.vmem [#allocation2], %s2533_s23 }
  0x40   : > { %s364_s1 = sshll.u32 %s356_s12, 4  ;;  %s362_s5 = sshll.u32 %s361_s30, 4  ;;  %s365_s1 = int_to_ptr.vmem [resolvable:$true] %s364_s1  ;;  %s363_s5 = int_to_ptr.hbm [resolvable:$true] %s362_s5 }
  0x41   : > { %s3171_s28 = sand.u32 1, %s2376_s15   ;;  %s2186_s20 = sshra.s32 %s363_s5, 4  ;;  %s2187_s20 = int_to_ptr.hbm [resolvable:$true] %s2186_s20 }
  0x42   : > { %s353_s21 = scalar_lea.sflag [#allocation3], %s3171_s28  ;;  %s2188_s10 = scalar_lea.hbm %s2187_s20, 128 }
  0x43   : > { %p2189_p1 = scmp.ne.s32.totalorder %s2187_s20, %s2188_s10  ;;  %s2193_s16 = scalar_lea.hbm %s3121_s0, 256 }
  0x44   : > { %p2194_p10 = scmp.lt.s32.totalorder %s2187_s20, %s3121_s0  ;;  %p2195_p13 = scmp.lt.s32.totalorder %s2193_s16, %s2188_s10 }
  0x45   : > { %p2191_p11 = pnand %p2189_p1, %p2130_p12 }
  0x46   : > { %p2196_p0 = por %p2195_p13, %p2194_p10 }
  0x47   : > { %p2192_p2 = pneg %p2191_p11 }
  0x49   : > { %p2197_p3 = pnand %p2196_p0, %p2192_p2 }
  0x4b   : > { %2200 = shalt.err (!%p2197_p3)
}
  0x4c   : > { %s3172_s3 = smov 128   ;;  %s405_s12 = scalar_lea.hbm %s3123_s2, %s2529_s18 }
  0x4d   : > { %1999 = dma.hbm_to_vmem [thread:$0]  (!%p2535_p9), %s363_s5, 2048, %s365_s1, %s353_s21, %s3172_s3, %s3172_s3, %s2386_s25  }
  0x4e   : > { %s400_s28 = scalar_lea.vmem [#allocation7], %s2533_s23  ;;  %s406_s20 = sshll.u32 %s405_s12, 4  ;;  %s407_s20 = int_to_ptr.hbm [resolvable:$true] %s406_s20 }
  0x4f   : > { %s408_s13 = sshll.u32 %s400_s28, 4  ;;  %s2216_s10 = sshra.s32 %s407_s20, 4  ;;  %s409_s13 = int_to_ptr.vmem [resolvable:$true] %s408_s13  ;;  %s2217_s10 = int_to_ptr.hbm [resolvable:$true] %s2216_s10 }
  0x50   : > { %s2218_s27 = scalar_lea.hbm %s2217_s10, 128  ;;  %s2223_s1 = scalar_lea.hbm %s3123_s2, 256 }
  0x51   : > { %p2219_p5 = scmp.ne.s32.totalorder %s2217_s10, %s2218_s27  ;;  %p2224_p2 = scmp.lt.s32.totalorder %s2217_s10, %s3123_s2 }
  0x52   : > { %p2225_p10 = scmp.lt.s32.totalorder %s2223_s1, %s2218_s27 }
  0x53   : > { %p2221_p1 = pnand %p2219_p5, %p2130_p12 }
  0x54   : > { %p2226_p13 = por %p2225_p10, %p2224_p2 }
  0x55   : > { %p2222_p11 = pneg %p2221_p1 }
  0x57   : > { %p2227_p0 = pnand %p2226_p13, %p2222_p11 }
  0x59   : > { %2230 = shalt.err (!%p2227_p0)
}
  0x5a   : > { %2005 = dma.hbm_to_vmem [thread:$0]  (!%p2535_p9), %s407_s20, 2048, %s409_s13, %s2548_s8, %s3172_s3, %s3172_s3, %s2386_s25  }
  0x5b   : > { %420 = sbr.rel (%p2490_p8) target bundleno = 752 (0x2f0), region = 48  ;;  %s2616_s18 = sand.u32 (!%p2490_p8), 1, %s2372_s14  }
  0x5c   : > { %s2619_s23 = sshll.u32 (!%p2490_p8), %s2616_s18, 7  ;;  %s423_s11 = scalar_lea.sflag (!%p2490_p8), [#allocation3], %s2616_s18 }
  0x5d   : > { %s2623_s29 = scalar_lea.vmem (!%p2490_p8), [#allocation2], %s2619_s23 }
  0x60   : > { %2347 = dma.done.wait (%p2477_p4), %s423_s11, 2048  }
  0x61   : > { %2349 = vsyncadd (%p2477_p4), %s423_s11, 4294965248  ;;  %s432_s8 = sand.u32 1, %s2466_s17   ;;  %s2633_s26 = scalar_lea.vmem [#allocation5], %s2619_s23 }
  0x62   : > { %s433_s24 = scalar_lea.sflag [#allocation6], %s432_s8 }
  0x63   : > { %2351 = dma.done.wait (%p2477_p4), %s433_s24, 4096  }
  0x64   : > { %2353 = vsyncadd (%p2477_p4), %s433_s24, 4294963200  ;;  %s2640_s25 = scalar_lea.vmem [#allocation7], %s2619_s23  ;;  %p3173_p8 = scmp.eq.s32.totalorder %s2466_s17, 0 }
  0x66   : > { %2355 = dma.done.wait (%p3173_p8), [#allocation9], 2048   ;;  %p3174_p9 = pmov %p3173_p8 }
  0x67   : > { %v1941_v0 = vld [vmem:[#allocation8 + $0x38] sm:$0xff]  ;;  %v1940_v1 = vld [vmem:[#allocation8 + $0x30] sm:$0xff]  ;;  %v1939_v2 = vld [vmem:[#allocation8 + $0x28] sm:$0xff]  ;;  %s2743_s28 = scalar_lea.vmem [#allocation11], %s2619_s23  ;;  %s2832_s13 = scalar_lea.vmem [#allocation14], %s2619_s23  ;;  %vm1313_vm0 = vcmask 7168  }
  0x68   : > { %2357 = vsyncadd (%p3174_p9), [#allocation9], 4294965248  ;;  %640 = vmatpush.bf16.msra.mxu0 %v1941_v0  ;;  %1953 = vmatpush.bf16.msra.mxu2 %v1941_v0  ;;  %v1938_v3 = vld [vmem:[#allocation8 + $0x20] sm:$0xff]  ;;  %v1937_v4 = vld [vmem:[#allocation8 + $0x18] sm:$0xff]  ;;  %s2846_s20 = scalar_lea.vmem [#allocation12], %s2619_s23  ;;  %s1854_s10 = sshll.u32 %s2466_s17, 4 }
  0x69   : > { %v1936_v5 = vld [vmem:[#allocation8 + $0x10] sm:$0xff]  ;;  %v1935_v6 = vld [vmem:[#allocation8 + $0x8] sm:$0xff]  ;;  %v1934_v7 = vld [vmem:[#allocation8] sm:$0xff]  ;;  %p523_p4 = scmp.lt.s32.totalorder %s1854_s10, 31  ;;  %s2944_s16 = sshll.u32 %s2466_s17, 7  ;;  %vm1522_vm1 = vcmask 15360  }
  0x6a   : > { %v565_v8 = vld [vmem:[%s2623_s29] sm:$0xff]  ;;  %v566_v9 = vld [vmem:[%s2623_s29 + $0x8] sm:$0xff]  ;;  %v567_v14 = vld [vmem:[%s2623_s29 + $0x10] sm:$0xff]  ;;  %s1587_s11 = scalar_lea.hbm %s3130_s9, %s2944_s16  ;;  %s3176_s3 = sld [smem:[#allocation30_spill]] }
  0x6b   : > { %v573_v10 = vld [vmem:[%s2623_s29 + $0x40] sm:$0xff]  ;;  %v574_v11 = vld [vmem:[%s2623_s29 + $0x48] sm:$0xff]  ;;  %v581_v12 = vpack.c.bf16 %v566_v9, %v565_v8  ;;  %v568_v15 = vld [vmem:[%s2623_s29 + $0x18] sm:$0xff]  ;;  %s3189_s10 = smov (!%p523_p4, %s1854_s10), 31  ;;  %s2972_s12 = scalar_lea.sflag [#allocation13], %s432_s8 }
  0x6c   : > { %641 = vmatpush.bf16.msra.mxu0 %v1940_v1  ;;  %1954 = vmatpush.bf16.msra.mxu2 %v1940_v1  ;;  %v585_v13 = vpack.c.bf16 %v574_v11, %v573_v10  ;;  %v575_v16 = vld [vmem:[%s2623_s29 + $0x50] sm:$0xff]  ;;  %v576_v17 = vld [vmem:[%s2623_s29 + $0x58] sm:$0xff]  ;;  %v582_v18 = vpack.c.bf16 %v568_v15, %v567_v14  ;;  %v569_v20 = vld [vmem:[%s2623_s29 + $0x20] sm:$0xff]  ;;  %s1855_s27 = sshll.u32 %s3189_s10, 3  ;;  %s2266_s1 = scalar_lea.hbm %s3130_s9, 256 }
  0x6d   : > { %v586_v19 = vpack.c.bf16 %v576_v17, %v575_v16  ;;  %v570_v21 = vld [vmem:[%s2623_s29 + $0x28] sm:$0xff]  ;;  %v577_v22 = vld [vmem:[%s2623_s29 + $0x60] sm:$0xff]  ;;  %v571_v26 = vld [vmem:[%s2623_s29 + $0x30] sm:$0xff]  ;;  %s2949_s5 = scalar_lea.vmem %s3128_s7, %s1855_s27 }
  0x6e   : > { %v578_v23 = vld [vmem:[%s2623_s29 + $0x68] sm:$0xff]  ;;  %v583_v24 = vpack.c.bf16 %v570_v21, %v569_v20  ;;  %v572_v27 = vld [vmem:[%s2623_s29 + $0x38] sm:$0xff]  ;;  %v579_v28 = vld [vmem:[%s2623_s29 + $0x70] sm:$0xff] }
  0x6f   : > { %v587_v25 = vpack.c.bf16 %v578_v23, %v577_v22  ;;  %v580_v29 = vld [vmem:[%s2623_s29 + $0x78] sm:$0xff]  ;;  %v584_v30 = vpack.c.bf16 %v572_v27, %v571_v26  ;;  %v813_v32 = vld [vmem:[%s2633_s26] sm:$0xff]  ;;  %v814_v33 = vld [vmem:[%s2633_s26 + $0x8] sm:$0xff]  ;;  %s1588_s29 = sshll.u32 %s2846_s20, 4  ;;  %s1589_s29 = int_to_ptr.vmem [resolvable:$true] %s1588_s29 }
  0x70   : > { %642 = vmatpush.bf16.msra.mxu0 %v1939_v2  ;;  %1955 = vmatpush.bf16.msra.mxu2 %v1939_v2  ;;  %v588_v31 = vpack.c.bf16 %v580_v29, %v579_v28  ;;  %v959_v34 = vld [vmem:[%s2640_s25] sm:$0xff]  ;;  %v960_v35 = vld [vmem:[%s2640_s25 + $0x8] sm:$0xff]  ;;  %v829_v36 = vpack.c.bf16 %v814_v33, %v813_v32  ;;  %v1949_v38 = vld [vmem:[#allocation10 + $0x38] sm:$0xff]  ;;  %s1604_s30 = scalar_lea.hbm %s3176_s3, %s2944_s16 }
  0x71   : > { %v975_v37 = vpack.c.bf16 %v960_v35, %v959_v34  ;;  %764 = vmatpush.bf16.msra.mxu1 %v1949_v38  ;;  %1961 = vmatpush.bf16.msra.mxu3 %v1949_v38  ;;  %v815_v39 = vld [vmem:[%s2633_s26 + $0x10] sm:$0xff]  ;;  %v816_v40 = vld [vmem:[%s2633_s26 + $0x18] sm:$0xff]  ;;  %v1947_v46 = vld [vmem:[#allocation10 + $0x28] sm:$0xff] }
  0x72   : > { %v961_v41 = vld [vmem:[%s2640_s25 + $0x10] sm:$0xff]  ;;  %v962_v42 = vld [vmem:[%s2640_s25 + $0x18] sm:$0xff]  ;;  %v830_v43 = vpack.c.bf16 %v816_v40, %v815_v39  ;;  %v1946_v47 = vld [vmem:[#allocation10 + $0x20] sm:$0xff] }
  0x73   : > { %v976_v44 = vpack.c.bf16 %v962_v42, %v961_v41  ;;  %v1948_v45 = vld [vmem:[#allocation10 + $0x30] sm:$0xff]  ;;  %v817_v48 = vld [vmem:[%s2633_s26 + $0x20] sm:$0xff]  ;;  %v818_v49 = vld [vmem:[%s2633_s26 + $0x28] sm:$0xff] }
  0x74   : > { %643 = vmatpush.bf16.msra.mxu0 %v1938_v3  ;;  %1956 = vmatpush.bf16.msra.mxu2 %v1938_v3  ;;  %v963_v50 = vld [vmem:[%s2640_s25 + $0x20] sm:$0xff]  ;;  %v964_v51 = vld [vmem:[%s2640_s25 + $0x28] sm:$0xff]  ;;  %v1945_v52 = vld [vmem:[#allocation10 + $0x18] sm:$0xff]  ;;  %v831_v53 = vpack.c.bf16 %v818_v49, %v817_v48 }
  0x75   : > { %765 = vmatpush.bf16.msra.mxu1 %v1948_v45  ;;  %1962 = vmatpush.bf16.msra.mxu3 %v1948_v45  ;;  %v977_v54 = vpack.c.bf16 %v964_v51, %v963_v50  ;;  %v1944_v55 = vld [vmem:[#allocation10 + $0x10] sm:$0xff]  ;;  %v1943_v56 = vld [vmem:[#allocation10 + $0x8] sm:$0xff]  ;;  %v1942_v57 = vld [vmem:[#allocation10] sm:$0xff] }
  0x76   : > { %v819_v58 = vld [vmem:[%s2633_s26 + $0x30] sm:$0xff]  ;;  %v820_v59 = vld [vmem:[%s2633_s26 + $0x38] sm:$0xff]  ;;  %v825_v34 = vld [vmem:[%s2633_s26 + $0x60] sm:$0xff] }
  0x77   : > { %v965_v60 = vld [vmem:[%s2640_s25 + $0x30] sm:$0xff]  ;;  %v966_v61 = vld [vmem:[%s2640_s25 + $0x38] sm:$0xff]  ;;  %v832_v62 = vpack.c.bf16 %v820_v59, %v819_v58  ;;  %v826_v35 = vld [vmem:[%s2633_s26 + $0x68] sm:$0xff] }
  0x78   : > { %644 = vmatpush.bf16.msra.mxu0 %v1937_v4  ;;  %1957 = vmatpush.bf16.msra.mxu2 %v1937_v4  ;;  %v978_v63 = vpack.c.bf16 %v966_v61, %v965_v60  ;;  %v823_v14 = vld [vmem:[%s2633_s26 + $0x50] sm:$0xff]  ;;  %v824_v15 = vld [vmem:[%s2633_s26 + $0x58] sm:$0xff]  ;;  %v835_v42 = vpack.c.bf16 %v826_v35, %v825_v34 }
  0x79   : > { %766 = vmatpush.bf16.msra.mxu1 %v1947_v46  ;;  %1963 = vmatpush.bf16.msra.mxu3 %v1947_v46  ;;  %v969_v16 = vld [vmem:[%s2640_s25 + $0x50] sm:$0xff]  ;;  %v970_v17 = vld [vmem:[%s2640_s25 + $0x58] sm:$0xff]  ;;  %v834_v22 = vpack.c.bf16 %v824_v15, %v823_v14 }
  0x7a   : > { %v980_v23 = vpack.c.bf16 %v970_v17, %v969_v16 }
  0x7c   : > { %645 = vmatpush.bf16.msra.mxu0 %v1936_v5  ;;  %1958 = vmatpush.bf16.msra.mxu2 %v1936_v5 }
  0x7d   : > { %767 = vmatpush.bf16.msra.mxu1 %v1946_v47  ;;  %1964 = vmatpush.bf16.msra.mxu3 %v1946_v47 }
  0x80   : > { %646 = vmatpush.bf16.msra.mxu0 %v1935_v6  ;;  %1959 = vmatpush.bf16.msra.mxu2 %v1935_v6 }
  0x81   : > { %768 = vmatpush.bf16.msra.mxu1 %v1945_v52  ;;  %1965 = vmatpush.bf16.msra.mxu3 %v1945_v52 }
  0x84   : > { %647 = vmatpush.bf16.msra.mxu0 %v1934_v7  ;;  %1960 = vmatpush.bf16.msra.mxu2 %v1934_v7 }
  0x85   : > { %769 = vmatpush.bf16.msra.mxu1 %v1944_v55  ;;  %1966 = vmatpush.bf16.msra.mxu3 %v1944_v55 }
  0x87   : > { %648 = vmatmul.bf16.vlgmr.msra.gmra.mxu0 %v581_v12  ;;  %668 = vmatmul.bf16.vlgmr.msra.gmra.mxu2 %v585_v13 }
  0x88   : > { %837 = vmatpush.bf16.msrb.mxu2 %v1941_v0  ;;  %983 = vmatpush.bf16.msrb.mxu0 %v1941_v0  ;;  %v821_v0 = vld [vmem:[%s2633_s26 + $0x40] sm:$0xff] }
  0x89   : > { %770 = vmatpush.bf16.msra.mxu1 %v1943_v56  ;;  %1967 = vmatpush.bf16.msra.mxu3 %v1943_v56 }
  0x8c   : > { %838 = vmatpush.bf16.msrb.mxu2 %v1940_v1  ;;  %984 = vmatpush.bf16.msrb.mxu0 %v1940_v1  ;;  %v822_v1 = vld [vmem:[%s2633_s26 + $0x48] sm:$0xff] }
  0x8d   : > { %771 = vmatpush.bf16.msra.mxu1 %v1942_v57  ;;  %1968 = vmatpush.bf16.msra.mxu3 %v1942_v57 }
  0x90   : > { %839 = vmatpush.bf16.msrb.mxu2 %v1939_v2  ;;  %985 = vmatpush.bf16.msrb.mxu0 %v1939_v2  ;;  %v967_v2 = vld [vmem:[%s2640_s25 + $0x40] sm:$0xff] }
  0x91   : > { %910 = vmatpush.bf16.msrb.mxu3 %v1949_v38  ;;  %1056 = vmatpush.bf16.msrb.mxu1 %v1949_v38 }
  0x94   : > { %840 = vmatpush.bf16.msrb.mxu2 %v1938_v3  ;;  %986 = vmatpush.bf16.msrb.mxu0 %v1938_v3  ;;  %v968_v3 = vld [vmem:[%s2640_s25 + $0x48] sm:$0xff] }
  0x95   : > { %911 = vmatpush.bf16.msrb.mxu3 %v1948_v45  ;;  %1057 = vmatpush.bf16.msrb.mxu1 %v1948_v45 }
  0x97   : > { %653 = vmatmul.bf16.gmra.mxu0 %v582_v18  ;;  %673 = vmatmul.bf16.gmra.mxu2 %v586_v19 }
  0x98   : > { %841 = vmatpush.bf16.msrb.mxu2 %v1937_v4  ;;  %987 = vmatpush.bf16.msrb.mxu0 %v1937_v4  ;;  %v833_v4 = vpack.c.bf16 %v822_v1, %v821_v0 }
  0x99   : > { %912 = vmatpush.bf16.msrb.mxu3 %v1947_v46  ;;  %1058 = vmatpush.bf16.msrb.mxu1 %v1947_v46 }
  0x9c   : > { %842 = vmatpush.bf16.msrb.mxu2 %v1936_v5  ;;  %988 = vmatpush.bf16.msrb.mxu0 %v1936_v5  ;;  %v979_v5 = vpack.c.bf16 %v968_v3, %v967_v2 }
  0x9d   : > { %913 = vmatpush.bf16.msrb.mxu3 %v1946_v47  ;;  %1059 = vmatpush.bf16.msrb.mxu1 %v1946_v47 }
  0xa0   : > { %843 = vmatpush.bf16.msrb.mxu2 %v1935_v6  ;;  %989 = vmatpush.bf16.msrb.mxu0 %v1935_v6 }
  0xa1   : > { %914 = vmatpush.bf16.msrb.mxu3 %v1945_v52  ;;  %1060 = vmatpush.bf16.msrb.mxu1 %v1945_v52 }
  0xa4   : > { %844 = vmatpush.bf16.msrb.mxu2 %v1934_v7  ;;  %990 = vmatpush.bf16.msrb.mxu0 %v1934_v7  ;;  %v2685_v7 = vld [vmem:[%s3125_s4] ss:$0 sm:$0xff] }
  0xa5   : > { %915 = vmatpush.bf16.msrb.mxu3 %v1944_v55  ;;  %1061 = vmatpush.bf16.msrb.mxu1 %v1944_v55  ;;  %v828_v55 = vld [vmem:[%s2633_s26 + $0x78] sm:$0xff] }
  0xa7   : > { %658 = vmatmul.bf16.gmra.mxu0 %v583_v24  ;;  %678 = vmatmul.bf16.gmra.mxu2 %v587_v25 }
  0xa9   : > { %916 = vmatpush.bf16.msrb.mxu3 %v1943_v56  ;;  %1062 = vmatpush.bf16.msrb.mxu1 %v1943_v56  ;;  %v973_v56 = vld [vmem:[%s2640_s25 + $0x70] sm:$0xff] }
  0xad   : > { %1063 = vmatpush.bf16.msrb.mxu1 %v1942_v57  ;;  %917 = vmatpush.bf16.msrb.mxu3 %v1942_v57  ;;  %v974_v57 = vld [vmem:[%s2640_s25 + $0x78] sm:$0xff] }
  0xb7   : > { %663 = vmatmul.bf16.gmra.mxu0 %v584_v30  ;;  %683 = vmatmul.bf16.gmra.mxu2 %v588_v31 }
  0xc7   : > { %845 = vmatmul.bf16.vlgmr.msrb.gmra.mxu2 %v829_v36  ;;  %991 = vmatmul.bf16.vlgmr.msrb.gmra.mxu0 %v975_v37  ;;  %v971_v36 = vld [vmem:[%s2640_s25 + $0x60] sm:$0xff]  ;;  %v972_v37 = vld [vmem:[%s2640_s25 + $0x68] sm:$0xff] }
  0xd7   : > { %850 = vmatmul.bf16.gmra.mxu2 %v830_v43  ;;  %996 = vmatmul.bf16.gmra.mxu0 %v976_v44  ;;  %v981_v43 = vpack.c.bf16 %v972_v37, %v971_v36 }
  0xe7   : > { %855 = vmatmul.bf16.gmra.mxu2 %v831_v53  ;;  %1001 = vmatmul.bf16.gmra.mxu0 %v977_v54  ;;  %v827_v54 = vld [vmem:[%s2633_s26 + $0x70] sm:$0xff]  ;;  %s2959_s26 = sshll.u32 %s1587_s11, 4  ;;  %s1591_s26 = int_to_ptr.hbm [resolvable:$true] %s2959_s26 }
  0xf7   : > { %860 = vmatmul.bf16.gmra.mxu2 %v832_v62  ;;  %1006 = vmatmul.bf16.gmra.mxu0 %v978_v63  ;;  %v836_v62 = vpack.c.bf16 %v828_v55, %v827_v54  ;;  %v982_v63 = vpack.c.bf16 %v974_v57, %v973_v56 }
 0x104   : > { %v649_v6 = vpop.f32.mrf.mxu0 }
 0x105   : > { %v650_v8 = vadd.f32 %v2685_v7, %v649_v6 }
 0x107   : > { %865 = vmatmul.bf16.gmra.mxu2 %v833_v4  ;;  %1011 = vmatmul.bf16.gmra.mxu0 %v979_v5  ;;  %v689_v11 = vmax.f32 %v650_v8, 0.0 }
 0x10a   : > { %v669_v9 = vpop.f32.mrf.mxu2 }
 0x10b   : > { %v670_v18 = vadd.f32 %v2685_v7, %v669_v9 }
 0x10c   : > { %v651_v10 = vpop.f32.mrf.mxu0 }
 0x10d   : > { %v652_v12 = vadd.f32 %v2685_v7, %v651_v10  ;;  %v697_v25 = vmax.f32 %v670_v18, 0.0 }
 0x10f   : > { %v690_v13 = vmax.f32 %v652_v12, 0.0 }
 0x111   : > { %v705_v19 = vpack.c.bf16 %v690_v13, %v689_v11 }
 0x112   : > { %v671_v20 = vpop.f32.mrf.mxu2 }
 0x113   : > { %v672_v21 = vadd.f32 %v2685_v7, %v671_v20  ;;  %772 = vmatmul.bf16.vlgmr.msra.gmra.mxu1 %v705_v19 }
 0x114   : > { %v654_v24 = vpop.f32.mrf.mxu0 }
 0x115   : > { %v698_v26 = vmax.f32 %v672_v21, 0.0  ;;  %v655_v28 = vadd.f32 %v2685_v7, %v654_v24 }
 0x117   : > { %870 = vmatmul.bf16.gmra.mxu2 %v834_v22  ;;  %1016 = vmatmul.bf16.gmra.mxu0 %v980_v23  ;;  %v709_v27 = vpack.c.bf16 %v698_v26, %v697_v25  ;;  %v691_v31 = vmax.f32 %v655_v28, 0.0 }
 0x119   : > { %792 = vmatmul.bf16.vlgmr.msra.gmra.mxu3 %v709_v27 }
 0x11a   : > { %v674_v29 = vpop.f32.mrf.mxu2 }
 0x11b   : > { %v675_v38 = vadd.f32 %v2685_v7, %v674_v29 }
 0x11c   : > { %v656_v30 = vpop.f32.mrf.mxu0 }
 0x11d   : > { %v657_v32 = vadd.f32 %v2685_v7, %v656_v30  ;;  %v699_v45 = vmax.f32 %v675_v38, 0.0 }
 0x11f   : > { %v692_v33 = vmax.f32 %v657_v32, 0.0 }
 0x121   : > { %v706_v39 = vpack.c.bf16 %v692_v33, %v691_v31 }
 0x122   : > { %v676_v40 = vpop.f32.mrf.mxu2 }
 0x123   : > { %v677_v41 = vadd.f32 %v2685_v7, %v676_v40  ;;  %777 = vmatmul.bf16.gmra.mxu1 %v706_v39 }
 0x124   : > { %v659_v44 = vpop.f32.mrf.mxu0 }
 0x125   : > { %v700_v46 = vmax.f32 %v677_v41, 0.0  ;;  %v660_v48 = vadd.f32 %v2685_v7, %v659_v44 }
 0x127   : > { %875 = vmatmul.bf16.gmra.mxu2 %v835_v42  ;;  %1021 = vmatmul.bf16.gmra.mxu0 %v981_v43  ;;  %v710_v47 = vpack.c.bf16 %v700_v46, %v699_v45  ;;  %v693_v51 = vmax.f32 %v660_v48, 0.0 }
 0x129   : > { %797 = vmatmul.bf16.gmra.mxu3 %v710_v47 }
 0x12a   : > { %v679_v49 = vpop.f32.mrf.mxu2 }
 0x12b   : > { %v680_v58 = vadd.f32 %v2685_v7, %v679_v49 }
 0x12c   : > { %v661_v50 = vpop.f32.mrf.mxu0 }
 0x12d   : > { %v662_v52 = vadd.f32 %v2685_v7, %v661_v50  ;;  %v701_v1 = vmax.f32 %v680_v58, 0.0 }
 0x12f   : > { %v694_v53 = vmax.f32 %v662_v52, 0.0 }
 0x131   : > { %v707_v59 = vpack.c.bf16 %v694_v53, %v693_v51 }
 0x132   : > { %v681_v60 = vpop.f32.mrf.mxu2 }
 0x133   : > { %v682_v61 = vadd.f32 %v2685_v7, %v681_v60  ;;  %782 = vmatmul.bf16.gmra.mxu1 %v707_v59 }
 0x134   : > { %v664_v0 = vpop.f32.mrf.mxu0 }
 0x135   : > { %v702_v2 = vmax.f32 %v682_v61, 0.0  ;;  %v665_v4 = vadd.f32 %v2685_v7, %v664_v0 }
 0x137   : > { %880 = vmatmul.bf16.gmra.mxu2 %v836_v62  ;;  %1026 = vmatmul.bf16.gmra.mxu0 %v982_v63  ;;  %v711_v3 = vpack.c.bf16 %v702_v2, %v701_v1  ;;  %v695_v8 = vmax.f32 %v665_v4, 0.0 }
 0x139   : > { %802 = vmatmul.bf16.gmra.mxu3 %v711_v3 }
 0x13a   : > { %v684_v5 = vpop.f32.mrf.mxu2 }
 0x13b   : > { %v685_v11 = vadd.f32 %v2685_v7, %v684_v5 }
 0x13c   : > { %v666_v6 = vpop.f32.mrf.mxu0 }
 0x13d   : > { %v667_v9 = vadd.f32 %v2685_v7, %v666_v6  ;;  %v703_v16 = vmax.f32 %v685_v11, 0.0 }
 0x13f   : > { %v696_v10 = vmax.f32 %v667_v9, 0.0 }
 0x141   : > { %v708_v12 = vpack.c.bf16 %v696_v10, %v695_v8 }
 0x142   : > { %v686_v13 = vpop.f32.mrf.mxu2 }
 0x143   : > { %v687_v14 = vadd.f32 %v2685_v7, %v686_v13  ;;  %787 = vmatmul.bf16.gmra.mxu1 %v708_v12 }
 0x144   : > { %v992_v15 = vpop.f32.mrf.mxu0 }
 0x145   : > { %v704_v17 = vmax.f32 %v687_v14, 0.0  ;;  %v993_v19 = vadd.f32 %v2685_v7, %v992_v15 }
 0x147   : > { %v712_v18 = vpack.c.bf16 %v704_v17, %v703_v16  ;;  %v1032_v22 = vmax.f32 %v993_v19, 0.0  ;;  %v2736_v17 = vld [vmem:[%s3127_s6] ss:$0 sm:$0xff] }
 0x149   : > { %807 = vmatmul.bf16.gmra.mxu3 %v712_v18 }
 0x14a   : > { %v846_v20 = vpop.f32.mrf.mxu2 }
 0x14b   : > { %v847_v25 = vadd.f32 %v2685_v7, %v846_v20 }
 0x14c   : > { %v994_v21 = vpop.f32.mrf.mxu0 }
 0x14d   : > { %v995_v23 = vadd.f32 %v2685_v7, %v994_v21  ;;  %v886_v30 = vmax.f32 %v847_v25, 0.0 }
 0x14f   : > { %v1033_v24 = vmax.f32 %v995_v23, 0.0 }
 0x151   : > { %v1048_v26 = vpack.c.bf16 %v1033_v24, %v1032_v22 }
 0x152   : > { %v848_v27 = vpop.f32.mrf.mxu2 }
 0x153   : > { %v849_v28 = vadd.f32 %v2685_v7, %v848_v27  ;;  %1064 = vmatmul.bf16.vlgmr.msrb.gmra.mxu1 %v1048_v26 }
 0x154   : > { %v997_v29 = vpop.f32.mrf.mxu0 }
 0x155   : > { %v887_v31 = vmax.f32 %v849_v28, 0.0  ;;  %v998_v33 = vadd.f32 %v2685_v7, %v997_v29 }
 0x157   : > { %v902_v32 = vpack.c.bf16 %v887_v31, %v886_v30  ;;  %v1034_v36 = vmax.f32 %v998_v33, 0.0 }
 0x159   : > { %918 = vmatmul.bf16.vlgmr.msrb.gmra.mxu3 %v902_v32 }
 0x15a   : > { %v851_v34 = vpop.f32.mrf.mxu2 }
 0x15b   : > { %v852_v39 = vadd.f32 %v2685_v7, %v851_v34 }
 0x15c   : > { %v999_v35 = vpop.f32.mrf.mxu0 }
 0x15d   : > { %v1000_v37 = vadd.f32 %v2685_v7, %v999_v35  ;;  %v888_v44 = vmax.f32 %v852_v39, 0.0 }
 0x15f   : > { %v1035_v38 = vmax.f32 %v1000_v37, 0.0 }
 0x161   : > { %v1049_v40 = vpack.c.bf16 %v1035_v38, %v1034_v36 }
 0x162   : > { %v853_v41 = vpop.f32.mrf.mxu2 }
 0x163   : > { %v854_v42 = vadd.f32 %v2685_v7, %v853_v41  ;;  %1069 = vmatmul.bf16.gmra.mxu1 %v1049_v40 }
 0x164   : > { %v1002_v43 = vpop.f32.mrf.mxu0 }
 0x165   : > { %v889_v45 = vmax.f32 %v854_v42, 0.0  ;;  %v1003_v47 = vadd.f32 %v2685_v7, %v1002_v43 }
 0x167   : > { %v903_v46 = vpack.c.bf16 %v889_v45, %v888_v44  ;;  %v1036_v50 = vmax.f32 %v1003_v47, 0.0 }
 0x169   : > { %923 = vmatmul.bf16.gmra.mxu3 %v903_v46 }
 0x16a   : > { %v856_v48 = vpop.f32.mrf.mxu2 }
 0x16b   : > { %v857_v53 = vadd.f32 %v2685_v7, %v856_v48 }
 0x16c   : > { %v1004_v49 = vpop.f32.mrf.mxu0 }
 0x16d   : > { %v1005_v51 = vadd.f32 %v2685_v7, %v1004_v49  ;;  %v890_v58 = vmax.f32 %v857_v53, 0.0 }
 0x16f   : > { %v1037_v52 = vmax.f32 %v1005_v51, 0.0 }
 0x171   : > { %v1050_v54 = vpack.c.bf16 %v1037_v52, %v1036_v50 }
 0x172   : > { %v858_v55 = vpop.f32.mrf.mxu2 }
 0x173   : > { %v859_v56 = vadd.f32 %v2685_v7, %v858_v55  ;;  %1074 = vmatmul.bf16.gmra.mxu1 %v1050_v54 }
 0x174   : > { %v1007_v57 = vpop.f32.mrf.mxu0 }
 0x175   : > { %v891_v59 = vmax.f32 %v859_v56, 0.0  ;;  %v1008_v61 = vadd.f32 %v2685_v7, %v1007_v57 }
 0x177   : > { %v904_v60 = vpack.c.bf16 %v891_v59, %v890_v58  ;;  %v1038_v0 = vmax.f32 %v1008_v61, 0.0 }
 0x179   : > { %928 = vmatmul.bf16.gmra.mxu3 %v904_v60 }
 0x17a   : > { %v861_v62 = vpop.f32.mrf.mxu2 }
 0x17b   : > { %v862_v3 = vadd.f32 %v2685_v7, %v861_v62 }
 0x17c   : > { %v1009_v63 = vpop.f32.mrf.mxu0 }
 0x17d   : > { %v1010_v1 = vadd.f32 %v2685_v7, %v1009_v63  ;;  %v892_v9 = vmax.f32 %v862_v3, 0.0 }
 0x17f   : > { %v1039_v2 = vmax.f32 %v1010_v1, 0.0 }
 0x181   : > { %v1051_v4 = vpack.c.bf16 %v1039_v2, %v1038_v0 }
 0x182   : > { %v863_v5 = vpop.f32.mrf.mxu2 }
 0x183   : > { %v864_v6 = vadd.f32 %v2685_v7, %v863_v5  ;;  %1079 = vmatmul.bf16.gmra.mxu1 %v1051_v4 }
 0x184   : > { %v1012_v8 = vpop.f32.mrf.mxu0 }
 0x185   : > { %v893_v10 = vmax.f32 %v864_v6, 0.0  ;;  %v1013_v12 = vadd.f32 %v2685_v7, %v1012_v8 }
 0x187   : > { %v905_v11 = vpack.c.bf16 %v893_v10, %v892_v9  ;;  %v1040_v15 = vmax.f32 %v1013_v12, 0.0 }
 0x189   : > { %933 = vmatmul.bf16.gmra.mxu3 %v905_v11 }
 0x18a   : > { %v866_v13 = vpop.f32.mrf.mxu2 }
 0x18b   : > { %v867_v20 = vadd.f32 %v2685_v7, %v866_v13 }
 0x18c   : > { %v1014_v14 = vpop.f32.mrf.mxu0 }
 0x18d   : > { %v1015_v16 = vadd.f32 %v2685_v7, %v1014_v14  ;;  %v894_v26 = vmax.f32 %v867_v20, 0.0 }
 0x18f   : > { %v1041_v18 = vmax.f32 %v1015_v16, 0.0 }
 0x190   : > { %v773_v19 = vpop.f32.mrf.mxu1 }
 0x191   : > { %v2740_v21 = vadd.f32 %v2736_v17, %v773_v19  ;;  %v1052_v22 = vpack.c.bf16 %v1041_v18, %v1040_v15 }
 0x192   : > { %v868_v23 = vpop.f32.mrf.mxu2 }
 0x193   : > { %1105 = vst [vmem:[%s2743_s28] sm:$0xff] %v2740_v21  ;;  %v869_v24 = vadd.f32 %v2685_v7, %v868_v23  ;;  %1084 = vmatmul.bf16.gmra.mxu1 %v1052_v22 }
 0x194   : > { %v1017_v25 = vpop.f32.mrf.mxu0 }
 0x195   : > { %v895_v27 = vmax.f32 %v869_v24, 0.0  ;;  %v1018_v30 = vadd.f32 %v2685_v7, %v1017_v25 }
 0x197   : > { %v906_v28 = vpack.c.bf16 %v895_v27, %v894_v26  ;;  %v1042_v35 = vmax.f32 %v1018_v30, 0.0 }
 0x198   : > { %v775_v29 = vpop.f32.mrf.mxu1 }
 0x199   : > { %v2750_v31 = vadd.f32 %v2736_v17, %v775_v29  ;;  %938 = vmatmul.bf16.gmra.mxu3 %v906_v28 }
 0x19a   : > { %v871_v32 = vpop.f32.mrf.mxu2 }
 0x19b   : > { %1106 = vst [vmem:[%s2743_s28 + $0x8] sm:$0xff] %v2750_v31  ;;  %v872_v40 = vadd.f32 %v2685_v7, %v871_v32 }
 0x19c   : > { %v793_v33 = vpop.f32.mrf.mxu3  ;;  %v1019_v34 = vpop.f32.mrf.mxu0 }
 0x19d   : > { %v2755_v36 = vadd.f32 %v2736_v17, %v793_v33  ;;  %v1020_v37 = vadd.f32 %v2685_v7, %v1019_v34  ;;  %v896_v47 = vmax.f32 %v872_v40, 0.0 }
 0x19f   : > { %1113 = vst [vmem:[%s2743_s28 + $0x40] sm:$0xff] %v2755_v36  ;;  %v1043_v38 = vmax.f32 %v1020_v37, 0.0 }
 0x1a0   : > { %v778_v39 = vpop.f32.mrf.mxu1 }
 0x1a1   : > { %v2762_v41 = vadd.f32 %v2736_v17, %v778_v39  ;;  %v1053_v42 = vpack.c.bf16 %v1043_v38, %v1042_v35 }
 0x1a2   : > { %v873_v43 = vpop.f32.mrf.mxu2 }
 0x1a3   : > { %1107 = vst [vmem:[%s2743_s28 + $0x10] sm:$0xff] %v2762_v41  ;;  %v874_v44 = vadd.f32 %v2685_v7, %v873_v43  ;;  %1089 = vmatmul.bf16.gmra.mxu1 %v1053_v42 }
 0x1a4   : > { %v795_v45 = vpop.f32.mrf.mxu3  ;;  %v1022_v46 = vpop.f32.mrf.mxu0 }
 0x1a5   : > { %v897_v48 = vmax.f32 %v874_v44, 0.0  ;;  %v2768_v49 = vadd.f32 %v2736_v17, %v795_v45  ;;  %v1023_v52 = vadd.f32 %v2685_v7, %v1022_v46 }
 0x1a7   : > { %1114 = vst [vmem:[%s2743_s28 + $0x48] sm:$0xff] %v2768_v49  ;;  %v907_v50 = vpack.c.bf16 %v897_v48, %v896_v47  ;;  %v1044_v57 = vmax.f32 %v1023_v52, 0.0 }
 0x1a8   : > { %v780_v51 = vpop.f32.mrf.mxu1 }
 0x1a9   : > { %v2774_v53 = vadd.f32 %v2736_v17, %v780_v51  ;;  %943 = vmatmul.bf16.gmra.mxu3 %v907_v50 }
 0x1aa   : > { %v876_v54 = vpop.f32.mrf.mxu2 }
 0x1ab   : > { %1108 = vst [vmem:[%s2743_s28 + $0x18] sm:$0xff] %v2774_v53  ;;  %v877_v62 = vadd.f32 %v2685_v7, %v876_v54 }
 0x1ac   : > { %v798_v55 = vpop.f32.mrf.mxu3  ;;  %v1024_v56 = vpop.f32.mrf.mxu0 }
 0x1ad   : > { %v2779_v58 = vadd.f32 %v2736_v17, %v798_v55  ;;  %v1025_v59 = vadd.f32 %v2685_v7, %v1024_v56  ;;  %v898_v5 = vmax.f32 %v877_v62, 0.0 }
 0x1af   : > { %1115 = vst [vmem:[%s2743_s28 + $0x50] sm:$0xff] %v2779_v58  ;;  %v1045_v60 = vmax.f32 %v1025_v59, 0.0 }
 0x1b0   : > { %v783_v61 = vpop.f32.mrf.mxu1 }
 0x1b1   : > { %v2786_v63 = vadd.f32 %v2736_v17, %v783_v61  ;;  %v1054_v0 = vpack.c.bf16 %v1045_v60, %v1044_v57 }
 0x1b2   : > { %v878_v1 = vpop.f32.mrf.mxu2 }
 0x1b3   : > { %1109 = vst [vmem:[%s2743_s28 + $0x20] sm:$0xff] %v2786_v63  ;;  %v879_v2 = vadd.f32 %v2685_v7, %v878_v1  ;;  %1094 = vmatmul.bf16.gmra.mxu1 %v1054_v0 }
 0x1b4   : > { %v800_v3 = vpop.f32.mrf.mxu3  ;;  %v1027_v4 = vpop.f32.mrf.mxu0 }
 0x1b5   : > { %v899_v6 = vmax.f32 %v879_v2, 0.0  ;;  %v2792_v8 = vadd.f32 %v2736_v17, %v800_v3  ;;  %v1028_v11 = vadd.f32 %v2685_v7, %v1027_v4 }
 0x1b7   : > { %1116 = vst [vmem:[%s2743_s28 + $0x58] sm:$0xff] %v2792_v8  ;;  %v908_v9 = vpack.c.bf16 %v899_v6, %v898_v5  ;;  %v1046_v16 = vmax.f32 %v1028_v11, 0.0 }
 0x1b8   : > { %v785_v10 = vpop.f32.mrf.mxu1 }
 0x1b9   : > { %v2798_v12 = vadd.f32 %v2736_v17, %v785_v10  ;;  %948 = vmatmul.bf16.gmra.mxu3 %v908_v9 }
 0x1ba   : > { %v881_v13 = vpop.f32.mrf.mxu2 }
 0x1bb   : > { %1110 = vst [vmem:[%s2743_s28 + $0x28] sm:$0xff] %v2798_v12  ;;  %v882_v23 = vadd.f32 %v2685_v7, %v881_v13 }
 0x1bc   : > { %v803_v14 = vpop.f32.mrf.mxu3  ;;  %v1029_v15 = vpop.f32.mrf.mxu0 }
 0x1bd   : > { %v2803_v18 = vadd.f32 %v2736_v17, %v803_v14  ;;  %v1030_v19 = vadd.f32 %v2685_v7, %v1029_v15  ;;  %v900_v29 = vmax.f32 %v882_v23, 0.0 }
 0x1bf   : > { %1117 = vst [vmem:[%s2743_s28 + $0x60] sm:$0xff] %v2803_v18  ;;  %v1047_v20 = vmax.f32 %v1030_v19, 0.0 }
 0x1c0   : > { %v788_v22 = vpop.f32.mrf.mxu1 }
 0x1c1   : > { %v2810_v24 = vadd.f32 %v2736_v17, %v788_v22  ;;  %v1055_v25 = vpack.c.bf16 %v1047_v20, %v1046_v16 }
 0x1c2   : > { %v883_v26 = vpop.f32.mrf.mxu2 }
 0x1c3   : > { %1111 = vst [vmem:[%s2743_s28 + $0x30] sm:$0xff] %v2810_v24  ;;  %v884_v27 = vadd.f32 %v2685_v7, %v883_v26  ;;  %1099 = vmatmul.bf16.gmra.mxu1 %v1055_v25 }
 0x1c4   : > { %v805_v28 = vpop.f32.mrf.mxu3 }
 0x1c5   : > { %v901_v30 = vmax.f32 %v884_v27, 0.0  ;;  %v2816_v32 = vadd.f32 %v2736_v17, %v805_v28 }
 0x1c7   : > { %1118 = vst [vmem:[%s2743_s28 + $0x68] sm:$0xff] %v2816_v32  ;;  %v909_v33 = vpack.c.bf16 %v901_v30, %v900_v29 }
 0x1c8   : > { %v790_v34 = vpop.f32.mrf.mxu1 }
 0x1c9   : > { %v2821_v35 = vadd.f32 %v2736_v17, %v790_v34  ;;  %953 = vmatmul.bf16.gmra.mxu3 %v909_v33 }
 0x1cb   : > { %1112 = vst [vmem:[%s2743_s28 + $0x38] sm:$0xff] %v2821_v35 }
 0x1cc   : > { %v808_v7 = vpop.f32.mrf.mxu3 }
 0x1cd   : > { %v2826_v37 = vadd.f32 %v2736_v17, %v808_v7 }
 0x1cf   : > { %1119 = vst [vmem:[%s2743_s28 + $0x70] sm:$0xff] %v2826_v37 }
 0x1d0   : > { %v1065_v38 = vpop.f32.mrf.mxu1 }
 0x1d1   : > { %v1066_v39 = vadd.f32 %v2736_v17, %v1065_v38 }
 0x1d3   : > { %1137 = vst [vmem:[%s2832_s13] sm:$0xff] %v1066_v39  ;;  %v1185_v40 = vsub.f32 %v2740_v21, %v1066_v39 }
 0x1d4   : > { %v810_v42 = vpop.f32.mrf.mxu3 }
 0x1d5   : > { %v2837_v43 = vadd.f32 %v2736_v17, %v810_v42  ;;  %v1201_v44 = vadd.f32 1e-06, %v1185_v40 }
 0x1d7   : > { %1120 = vst [vmem:[%s2743_s28 + $0x78] sm:$0xff] %v2837_v43  ;;  %v1265_v45 = vmul.f32 %v1201_v44, %v1201_v44 }
 0x1d8   : > { %v1067_v46 = vpop.f32.mrf.mxu1 }
 0x1d9   : > { %v1068_v47 = vadd.f32 %v2736_v17, %v1067_v46  ;;  %1281 = vadd.xlane.f32.xlu1 %v1265_v45 }
 0x1db   : > { %1138 = vst [vmem:[%s2832_s13 + $0x8] sm:$0xff] %v1068_v47  ;;  %v1186_v48 = vsub.f32 %v2750_v31, %v1068_v47 }
 0x1dc   : > { %v919_v50 = vpop.f32.mrf.mxu3 }
 0x1dd   : > { %v920_v51 = vadd.f32 %v2736_v17, %v919_v50  ;;  %v1202_v52 = vadd.f32 1e-06, %v1186_v48 }
 0x1df   : > { %1121 = vst [vmem:[%s2846_s20] sm:$0xff] %v920_v51  ;;  %v1266_v54 = vmul.f32 %v1202_v52, %v1202_v52  ;;  %v1153_v55 = vsub.f32 %v2740_v21, %v920_v51 }
 0x1e0   : > { %v1070_v56 = vpop.f32.mrf.mxu1 }
 0x1e1   : > { %v1071_v57 = vadd.f32 %v2736_v17, %v1070_v56  ;;  %1283 = vadd.xlane.f32.xlu2 %v1266_v54  ;;  %v1169_v59 = vadd.f32 1e-06, %v1153_v55 }
 0x1e3   : > { %1139 = vst [vmem:[%s2832_s13 + $0x10] sm:$0xff] %v1071_v57  ;;  %v1217_v60 = vmul.f32 %v1169_v59, %v1169_v59  ;;  %v1187_v61 = vsub.f32 %v2762_v41, %v1071_v57 }
 0x1e4   : > { %v921_v62 = vpop.f32.mrf.mxu3 }
 0x1e5   : > { %v922_v0 = vadd.f32 %v2736_v17, %v921_v62  ;;  %1233 = vadd.xlane.f32.xlu0 %v1217_v60  ;;  %v1203_v1 = vadd.f32 1e-06, %v1187_v61 }
 0x1e7   : > { %1122 = vst [vmem:[%s2846_s20 + $0x8] sm:$0xff] %v922_v0  ;;  %v1267_v21 = vmul.f32 %v1203_v1, %v1203_v1  ;;  %v1154_v5 = vsub.f32 %v2750_v31, %v922_v0 }
 0x1e8   : > { %v1072_v2 = vpop.f32.mrf.mxu1 }
 0x1e9   : > { %v1073_v3 = vadd.f32 %v2736_v17, %v1072_v2  ;;  %v1170_v13 = vadd.f32 1e-06, %v1154_v5 }
 0x1eb   : > { %1140 = vst [vmem:[%s2832_s13 + $0x18] sm:$0xff] %v1073_v3  ;;  %v1188_v4 = vsub.f32 %v2774_v53, %v1073_v3  ;;  %v1218_v19 = vmul.f32 %v1170_v13, %v1170_v13 }
 0x1ec   : > { %v924_v6 = vpop.f32.mrf.mxu3 }
 0x1ed   : > { %v925_v9 = vadd.f32 %v2736_v17, %v924_v6  ;;  %1285 = vadd.xlane.f32.xlu0 %v1267_v21  ;;  %v1204_v10 = vadd.f32 1e-06, %v1188_v4 }
 0x1ef   : > { %1123 = vst [vmem:[%s2846_s20 + $0x10] sm:$0xff] %v925_v9  ;;  %v1268_v11 = vmul.f32 %v1204_v10, %v1204_v10  ;;  %v1155_v14 = vsub.f32 %v2762_v41, %v925_v9 }
 0x1f0   : > { %v1075_v15 = vpop.f32.mrf.mxu1 }
 0x1f1   : > { %v1076_v16 = vadd.f32 %v2736_v17, %v1075_v15  ;;  %1287 = vadd.xlane.f32.xlu1 %v1268_v11  ;;  %v1171_v20 = vadd.f32 1e-06, %v1155_v14 }
 0x1f3   : > { %1141 = vst [vmem:[%s2832_s13 + $0x20] sm:$0xff] %v1076_v16  ;;  %v1189_v31 = vsub.f32 %v2786_v63, %v1076_v16  ;;  %v1219_v27 = vmul.f32 %v1171_v20, %v1171_v20 }
 0x1f4   : > { %v926_v22 = vpop.f32.mrf.mxu3 }
 0x1f5   : > { %v927_v23 = vadd.f32 %v2736_v17, %v926_v22  ;;  %1235 = vadd.xlane.f32.xlu0 %v1218_v19  ;;  %v1205_v25 = vadd.f32 1e-06, %v1189_v31 }
 0x1f7   : > { %1124 = vst [vmem:[%s2846_s20 + $0x18] sm:$0xff] %v927_v23  ;;  %v1269_v26 = vmul.f32 %v1205_v25, %v1205_v25  ;;  %v1156_v41 = vsub.f32 %v2774_v53, %v927_v23 }
 0x1f8   : > { %v1077_v28 = vpop.f32.mrf.mxu1 }
 0x1f9   : > { %v1078_v29 = vadd.f32 %v2736_v17, %v1077_v28  ;;  %1289 = vadd.xlane.f32.xlu2 %v1269_v26  ;;  %1237 = vadd.xlane.f32.xlu1 %v1219_v27  ;;  %v1172_v30 = vadd.f32 1e-06, %v1156_v41 }
 0x1fb   : > { %1142 = vst [vmem:[%s2832_s13 + $0x28] sm:$0xff] %v1078_v29  ;;  %v1190_v33 = vsub.f32 %v2798_v12, %v1078_v29  ;;  %v1220_v39 = vmul.f32 %v1172_v30, %v1172_v30 }
 0x1fc   : > { %v929_v34 = vpop.f32.mrf.mxu3 }
 0x1fd   : > { %v930_v7 = vadd.f32 %v2736_v17, %v929_v34  ;;  %v1206_v38 = vadd.f32 1e-06, %v1190_v33 }
 0x1ff   : > { %1125 = vst [vmem:[%s2846_s20 + $0x20] sm:$0xff] %v930_v7  ;;  %v1270_v40 = vmul.f32 %v1206_v38, %v1206_v38  ;;  %v1157_v53 = vsub.f32 %v2786_v63, %v930_v7 }
 0x200   : > { %v1080_v42 = vpop.f32.mrf.mxu1 }
 0x201   : > { %v1081_v44 = vadd.f32 %v2736_v17, %v1080_v42  ;;  %1239 = vadd.xlane.f32.xlu1 %v1220_v39  ;;  %1291 = vadd.xlane.f32.xlu0 %v1270_v40  ;;  %v1173_v45 = vadd.f32 1e-06, %v1157_v53 }
 0x203   : > { %1143 = vst [vmem:[%s2832_s13 + $0x30] sm:$0xff] %v1081_v44  ;;  %v1221_v46 = vmul.f32 %v1173_v45, %v1173_v45  ;;  %v1191_v47 = vsub.f32 %v2810_v24, %v1081_v44 }
 0x204   : > { %v931_v48 = vpop.f32.mrf.mxu3 }
 0x205   : > { %v932_v50 = vadd.f32 %v2736_v17, %v931_v48  ;;  %1241 = vadd.xlane.f32.xlu2 %v1221_v46  ;;  %v1207_v51 = vadd.f32 1e-06, %v1191_v47 }
 0x207   : > { %1126 = vst [vmem:[%s2846_s20 + $0x28] sm:$0xff] %v932_v50  ;;  %v1271_v52 = vmul.f32 %v1207_v51, %v1207_v51  ;;  %v1158_v63 = vsub.f32 %v2798_v12, %v932_v50 }
 0x208   : > { %v1082_v54 = vpop.f32.mrf.mxu1 }
 0x209   : > { %v1083_v55 = vadd.f32 %v2736_v17, %v1082_v54  ;;  %1293 = vadd.xlane.f32.xlu1 %v1271_v52  ;;  %v1174_v56 = vadd.f32 1e-06, %v1158_v63 }
 0x20b   : > { %1144 = vst [vmem:[%s2832_s13 + $0x38] sm:$0xff] %v1083_v55  ;;  %v1222_v57 = vmul.f32 %v1174_v56, %v1174_v56  ;;  %v1192_v59 = vsub.f32 %v2821_v35, %v1083_v55 }
 0x20c   : > { %v934_v60 = vpop.f32.mrf.mxu3 }
 0x20d   : > { %v935_v61 = vadd.f32 %v2736_v17, %v934_v60  ;;  %1243 = vadd.xlane.f32.xlu2 %v1222_v57  ;;  %v1208_v62 = vadd.f32 1e-06, %v1192_v59 }
 0x20f   : > { %1127 = vst [vmem:[%s2846_s20 + $0x30] sm:$0xff] %v935_v61  ;;  %v1159_v0 = vsub.f32 %v2810_v24, %v935_v61  ;;  %v1272_v3 = vmul.f32 %v1208_v62, %v1208_v62 }
 0x210   : > { %v1085_v12 = vpop.f32.mrf.mxu1 }
 0x211   : > { %v1086_v1 = vadd.f32 %v2736_v17, %v1085_v12  ;;  %v1175_v2 = vadd.f32 1e-06, %v1159_v0 }
 0x213   : > { %1145 = vst [vmem:[%s2832_s13 + $0x40] sm:$0xff] %v1086_v1  ;;  %v1223_v21 = vmul.f32 %v1175_v2, %v1175_v2  ;;  %v1193_v4 = vsub.f32 %v2755_v36, %v1086_v1 }
 0x214   : > { %v936_v5 = vpop.f32.mrf.mxu3 }
 0x215   : > { %v937_v6 = vadd.f32 %v2736_v17, %v936_v5  ;;  %1295 = vadd.xlane.f32.xlu2 %v1272_v3  ;;  %1245 = vadd.xlane.f32.xlu0 %v1223_v21  ;;  %v1209_v24 = vadd.f32 1e-06, %v1193_v4 }
 0x217   : > { %1128 = vst [vmem:[%s2846_s20 + $0x38] sm:$0xff] %v937_v6  ;;  %v1160_v9 = vsub.f32 %v2821_v35, %v937_v6  ;;  %v1273_v15 = vmul.f32 %v1209_v24, %v1209_v24 }
 0x218   : > { %v1087_v10 = vpop.f32.mrf.mxu1 }
 0x219   : > { %v1088_v11 = vadd.f32 %v2736_v17, %v1087_v10  ;;  %v1176_v13 = vadd.f32 1e-06, %v1160_v9 }
 0x21b   : > { %1146 = vst [vmem:[%s2832_s13 + $0x48] sm:$0xff] %v1088_v11  ;;  %v1224_v14 = vmul.f32 %v1176_v13, %v1176_v13  ;;  %v1194_v16 = vsub.f32 %v2768_v49, %v1088_v11 }
 0x21c   : > { %v939_v19 = vpop.f32.mrf.mxu3 }
 0x21d   : > { %v940_v31 = vadd.f32 %v2736_v17, %v939_v19  ;;  %1247 = vadd.xlane.f32.xlu1 %v1224_v14  ;;  %1297 = vadd.xlane.f32.xlu0 %v1273_v15  ;;  %v1210_v20 = vadd.f32 1e-06, %v1194_v16 }
 0x21f   : > { %1129 = vst [vmem:[%s2846_s20 + $0x40] sm:$0xff] %v940_v31  ;;  %v1161_v35 = vsub.f32 %v2755_v36, %v940_v31  ;;  %v1274_v27 = vmul.f32 %v1210_v20, %v1210_v20 }
 0x220   : > { %v1090_v22 = vpop.f32.mrf.mxu1 }
 0x221   : > { %v1091_v23 = vadd.f32 %v2736_v17, %v1090_v22  ;;  %v1177_v25 = vadd.f32 1e-06, %v1161_v35 }
 0x223   : > { %1147 = vst [vmem:[%s2832_s13 + $0x50] sm:$0xff] %v1091_v23  ;;  %v1225_v26 = vmul.f32 %v1177_v25, %v1177_v25  ;;  %v1195_v41 = vsub.f32 %v2779_v58, %v1091_v23 }
 0x224   : > { %v941_v28 = vpop.f32.mrf.mxu3 }
 0x225   : > { %v942_v29 = vadd.f32 %v2736_v17, %v941_v28  ;;  %1249 = vadd.xlane.f32.xlu2 %v1225_v26  ;;  %1299 = vadd.xlane.f32.xlu1 %v1274_v27  ;;  %v1211_v30 = vadd.f32 1e-06, %v1195_v41 }
 0x227   : > { %1130 = vst [vmem:[%s2846_s20 + $0x48] sm:$0xff] %v942_v29  ;;  %v1162_v36 = vsub.f32 %v2768_v49, %v942_v29  ;;  %v1275_v38 = vmul.f32 %v1211_v30, %v1211_v30 }
 0x228   : > { %v1092_v33 = vpop.f32.mrf.mxu1 }
 0x229   : > { %v1093_v34 = vadd.f32 %v2736_v17, %v1092_v33  ;;  %v1178_v7 = vadd.f32 1e-06, %v1162_v36 }
 0x22b   : > { %1148 = vst [vmem:[%s2832_s13 + $0x58] sm:$0xff] %v1093_v34  ;;  %v1226_v39 = vmul.f32 %v1178_v7, %v1178_v7  ;;  %v1196_v40 = vsub.f32 %v2792_v8, %v1093_v34 }
 0x22c   : > { %v944_v53 = vpop.f32.mrf.mxu3 }
 0x22d   : > { %v945_v42 = vadd.f32 %v2736_v17, %v944_v53  ;;  %1301 = vadd.xlane.f32.xlu2 %v1275_v38  ;;  %1251 = vadd.xlane.f32.xlu0 %v1226_v39  ;;  %v1212_v49 = vadd.f32 1e-06, %v1196_v40 }
 0x22f   : > { %1131 = vst [vmem:[%s2846_s20 + $0x50] sm:$0xff] %v945_v42  ;;  %v1163_v44 = vsub.f32 %v2779_v58, %v945_v42  ;;  %v1276_v50 = vmul.f32 %v1212_v49, %v1212_v49 }
 0x230   : > { %v1095_v45 = vpop.f32.mrf.mxu1 }
 0x231   : > { %v1096_v46 = vadd.f32 %v2736_v17, %v1095_v45  ;;  %v1179_v47 = vadd.f32 1e-06, %v1163_v44 }
 0x233   : > { %1149 = vst [vmem:[%s2832_s13 + $0x60] sm:$0xff] %v1096_v46  ;;  %v1227_v48 = vmul.f32 %v1179_v47, %v1179_v47  ;;  %v1197_v51 = vsub.f32 %v2803_v18, %v1096_v46 }
 0x234   : > { %v946_v52 = vpop.f32.mrf.mxu3 }
 0x235   : > { %v947_v63 = vadd.f32 %v2736_v17, %v946_v52  ;;  %1253 = vadd.xlane.f32.xlu1 %v1227_v48  ;;  %1303 = vadd.xlane.f32.xlu0 %v1276_v50  ;;  %v1213_v54 = vadd.f32 1e-06, %v1197_v51 }
 0x237   : > { %1132 = vst [vmem:[%s2846_s20 + $0x58] sm:$0xff] %v947_v63  ;;  %v1164_v58 = vsub.f32 %v2792_v8, %v947_v63  ;;  %v1277_v60 = vmul.f32 %v1213_v54, %v1213_v54 }
 0x238   : > { %v1097_v55 = vpop.f32.mrf.mxu1 }
 0x239   : > { %v1098_v56 = vadd.f32 %v2736_v17, %v1097_v55  ;;  %v1180_v57 = vadd.f32 1e-06, %v1164_v58 }
 0x23b   : > { %1150 = vst [vmem:[%s2832_s13 + $0x68] sm:$0xff] %v1098_v56  ;;  %v1228_v59 = vmul.f32 %v1180_v57, %v1180_v57  ;;  %v1198_v31 = vsub.f32 %v2816_v32, %v1098_v56 }
 0x23c   : > { %v949_v61 = vpop.f32.mrf.mxu3 }
 0x23d   : > { %v950_v62 = vadd.f32 %v2736_v17, %v949_v61  ;;  %1255 = vadd.xlane.f32.xlu2 %v1228_v59  ;;  %1305 = vadd.xlane.f32.xlu1 %v1277_v60  ;;  %v1214_v22 = vadd.f32 1e-06, %v1198_v31 }
 0x23f   : > { %1133 = vst [vmem:[%s2846_s20 + $0x60] sm:$0xff] %v950_v62  ;;  %v1165_v0 = vsub.f32 %v2803_v18, %v950_v62  ;;  %v1278_v28 = vmul.f32 %v1214_v22, %v1214_v22 }
 0x240   : > { %v1100_v8 = vpop.f32.mrf.mxu1 }
 0x241   : > { %v1101_v12 = vadd.f32 %v2736_v17, %v1100_v8  ;;  %v1181_v1 = vadd.f32 1e-06, %v1165_v0 }
 0x243   : > { %1151 = vst [vmem:[%s2832_s13 + $0x70] sm:$0xff] %v1101_v12  ;;  %v1229_v2 = vmul.f32 %v1181_v1, %v1181_v1 }
 0x244   : > { %v951_v3 = vpop.f32.mrf.mxu3 }
 0x245   : > { %v952_v21 = vadd.f32 %v2736_v17, %v951_v3  ;;  %1257 = vadd.xlane.f32.xlu0 %v1229_v2 }
 0x247   : > { %1134 = vst [vmem:[%s2846_s20 + $0x68] sm:$0xff] %v952_v21  ;;  %v1166_v4 = vsub.f32 %v2816_v32, %v952_v21  ;;  %v1199_v32 = vsub.f32 %v2826_v37, %v1101_v12 }
 0x248   : > { %v1102_v5 = vpop.f32.mrf.mxu1 }
 0x249   : > { %v1103_v6 = vadd.f32 %v2736_v17, %v1102_v5  ;;  %v1182_v9 = vadd.f32 1e-06, %v1166_v4 }
 0x24b   : > { %1152 = vst [vmem:[%s2832_s13 + $0x78] sm:$0xff] %v1103_v6  ;;  %v1230_v18 = vmul.f32 %v1182_v9, %v1182_v9  ;;  %v1200_v24 = vsub.f32 %v2837_v43, %v1103_v6 }
 0x24c   : > { %v954_v10 = vpop.f32.mrf.mxu3  ;;  %v1282_v25 = vpop.xlane.xlu1 %1281 }
 0x24d   : > { %v955_v11 = vadd.f32 %v2736_v17, %v954_v10  ;;  %1259 = vadd.xlane.f32.xlu1 %v1230_v18  ;;  %v1216_v14 = vadd.f32 1e-06, %v1200_v24 }
 0x24f   : > { %1135 = vst [vmem:[%s2846_s20 + $0x70] sm:$0xff] %v955_v11  ;;  %v1167_v13 = vsub.f32 %v2826_v37, %v955_v11  ;;  %v1280_v19 = vmul.f32 %v1216_v14, %v1216_v14 }
 0x251   : > { %v1183_v15 = vadd.f32 1e-06, %v1167_v13 }
 0x253   : > { %v1231_v16 = vmul.f32 %v1183_v15, %v1183_v15 }
 0x254   : > { %v956_v35 = vpop.f32.mrf.mxu3  ;;  %v1284_v40 = vpop.xlane.xlu2 %1283 }
 0x255   : > { %v957_v20 = vadd.f32 %v2736_v17, %v956_v35  ;;  %1261 = vadd.xlane.f32.xlu2 %v1231_v16  ;;  %1311 = vadd.xlane.f32.xlu1 %v1280_v19  ;;  %v1215_v17 = vadd.f32 1e-06, %v1199_v32 }
 0x257   : > { %1136 = vst [vmem:[%s2846_s20 + $0x78] sm:$0xff] %v957_v20  ;;  %v1168_v23 = vsub.f32 %v2837_v43, %v957_v20  ;;  %v1279_v34 = vmul.f32 %v1215_v17, %v1215_v17  ;;  %s2260_s20 = sshra.s32 %s1591_s26, 4  ;;  %s2261_s20 = int_to_ptr.hbm [resolvable:$true] %s2260_s20 }
 0x258   : > { %v1234_v26 = vpop.xlane.xlu0 %1233  ;;  %s2262_s10 = scalar_lea.hbm %s2261_s20, 128  ;;  %p2267_p1 = scmp.lt.s32.totalorder %s2261_s20, %s3130_s9 }
 0x259   : > { %v1314_v27 = vsel %vm1313_vm0, %v1234_v26, %v1282_v25  ;;  %v1184_v41 = vadd.f32 1e-06, %v1168_v23  ;;  %p2263_p12 = scmp.ne.s32.totalorder %s2261_s20, %s2262_s10  ;;  %p2268_p11 = scmp.lt.s32.totalorder %s2266_s1, %s2262_s10 }
 0x25a   : > { %2064 = vrsqrt.f32 %v1314_v27  ;;  %vm1337_vm2 = vcmp.eq.f32.partialorder %v1314_v27, inf  ;;  %v1340_v49 = vand.u32 2147483648, %v1314_v27  ;;  %vm1339_vm3 = vcmp.eq.f32.partialorder %v1314_v27, 0.0 }
 0x25b   : > { %v1232_v29 = vmul.f32 %v1184_v41, %v1184_v41  ;;  %p2264_p3 = pnand %p2263_p12, %p2523_p7  ;;  %p2269_p2 = por %p2268_p11, %p2267_p1 }
 0x25d   : > { %1307 = vadd.xlane.f32.xlu2 %v1278_v28  ;;  %1263 = vadd.xlane.f32.xlu0 %v1232_v29  ;;  %p2265_p5 = pneg %p2264_p3 }
 0x25f   : > { %p2270_p10 = pnand %p2269_p2, %p2265_p5 }
 0x260   : > { %v2065_v30 = vpop.eup %2064  ;;  %v1286_v36 = vpop.xlane.xlu0 %1285 }
 0x261   : > { %v1331_v33 = vmul.f32 %v2065_v30, %v1314_v27 }
 0x263   : > { %v1332_v43 = vmul.f32 %v2065_v30, %v1331_v33 }
 0x264   : > { %v1288_v7 = vpop.xlane.xlu1 %1287 }
 0x265   : > { %v1333_v38 = vmul.f32 0.5, %v1332_v43  ;;  %1309 = vadd.xlane.f32.xlu0 %v1279_v34 }
 0x267   : > { %v1334_v39 = vsub.f32 1.5, %v1333_v38 }
 0x268   : > { %v1236_v53 = vpop.xlane.xlu0 %1235 }
 0x269   : > { %v1335_v37 = vmul.f32 %v2065_v30, %v1334_v39  ;;  %v2940_v42 = vsel %vm1313_vm0, %v1236_v53, %v1284_v40 }
 0x26a   : > { %2066 = vrsqrt.f32 %v2940_v42 }
 0x26b   : > { %v1336_v44 = vmul.f32 %v1335_v37, %v1314_v27 }
 0x26c   : > { %v1238_v45 = vpop.xlane.xlu1 %1237  ;;  %v1290_v51 = vpop.xlane.xlu2 %1289 }
 0x26d   : > { %v1338_v46 = vsel %vm1337_vm2, %v1314_v27, %v1336_v44  ;;  %v2956_v47 = vsel %vm1313_vm0, %v1238_v45, %v1286_v36 }
 0x26e   : > { %v1341_v48 = vsel %vm1339_vm3, %v1340_v49, %v1338_v46  ;;  %2068 = vrsqrt.f32 %v2956_v47 }
 0x26f   : > { %1523 = vst.msk [vmem:[%s2949_s5] sm:$0xff] %vm1522_vm1, %v1341_v48 }
 0x270   : > { %v2067_v50 = vpop.eup %2066 }
 0x271   : > { %v1343_v52 = vmul.f32 %v2067_v50, %v2940_v42 }
 0x272   : > { %2273 = shalt.err (!%p2270_p10)
}
 0x273   : > { %s2388_s17 = smov 128   ;;  %s2389_s8 = smov 8   ;;  %v1344_v63 = vmul.f32 %v2067_v50, %v1343_v52 }
 0x274   : > { %1984 = dma.vmem_to_hbm [thread:$0]  (%p2523_p7), %s1589_s29, 2048, %s1591_s26, %s2972_s12, %s2388_s17, %s2388_s17, %s2389_s8   ;;  %v2069_v58 = vpop.eup %2068  ;;  %v1240_v54 = vpop.xlane.xlu1 %1239 }
 0x275   : > { %s2988_s11 = sshll.u32 %s1604_s30, 4  ;;  %s3177_s20 = sld [smem:[#allocation29_spill]]  ;;  %v1345_v55 = vmul.f32 0.5, %v1344_v63  ;;  %v1355_v56 = vmul.f32 %v2069_v58, %v2956_v47  ;;  %v2998_v57 = vsel %vm1313_vm0, %v1240_v54, %v1288_v7  ;;  %s1608_s11 = int_to_ptr.hbm [resolvable:$true] %s2988_s11 }
 0x276   : > { %s1571_s27 = sshll.u32 %s2743_s28, 4  ;;  %2070 = vrsqrt.f32 %v2998_v57  ;;  %s1545_s29 = scalar_lea.sflag [#allocation4], %s2616_s18  ;;  %s1572_s27 = int_to_ptr.vmem [resolvable:$true] %s1571_s27 }
 0x27b   : > { %s1570_s10 = scalar_lea.hbm %s3177_s20, %s2944_s16  ;;  %s2294_s1 = scalar_lea.hbm %s3177_s20, 256 }
 0x27c   : > { %s1573_s22 = sshll.u32 %s1570_s10, 4  ;;  %s1574_s22 = int_to_ptr.hbm [resolvable:$true] %s1573_s22 }
 0x27d   : > { %s2288_s26 = sshra.s32 %s1574_s22, 4  ;;  %s2289_s26 = int_to_ptr.hbm [resolvable:$true] %s2288_s26 }
 0x27e   : > { %s2290_s30 = scalar_lea.hbm %s2289_s26, 128  ;;  %p2295_p9 = scmp.lt.s32.totalorder %s2289_s26, %s3177_s20 }
 0x27f   : > { %p2291_p13 = scmp.ne.s32.totalorder %s2289_s26, %s2290_s30  ;;  %p2296_p4 = scmp.lt.s32.totalorder %s2294_s1, %s2290_s30 }
 0x281   : > { %p2292_p0 = pnand %p2291_p13, %p2523_p7  ;;  %p2297_p12 = por %p2296_p4, %p2295_p9 }
 0x283   : > { %p2293_p8 = pneg %p2292_p0 }
 0x285   : > { %p2298_p3 = pnand %p2297_p12, %p2293_p8 }
 0x287   : > { %2301 = shalt.err (!%p2298_p3)
}
 0x288   : > { %1983 = dma.vmem_to_hbm [thread:$0]  (%p2523_p7), %s1572_s27, 2048, %s1574_s22, %s1545_s29, %s2388_s17, %s2388_s17, %s2389_s8   ;;  %v1346_v59 = vsub.f32 1.5, %v1345_v55  ;;  %v1356_v60 = vmul.f32 %v2069_v58, %v1355_v56  ;;  %v1242_v61 = vpop.xlane.xlu2 %1241 }
 0x289   : > { %s1605_s18 = sshll.u32 %s2832_s13, 4  ;;  %v3017_v8 = vsel %vm1313_vm0, %v1242_v61, %v1290_v51  ;;  %s2316_s25 = sshra.s32 %s1608_s11, 4  ;;  %s1606_s18 = int_to_ptr.vmem [resolvable:$true] %s1605_s18  ;;  %s2317_s25 = int_to_ptr.hbm [resolvable:$true] %s2316_s25 }
 0x28a   : > { %v1347_v62 = vmul.f32 %v2067_v50, %v1346_v59  ;;  %v1357_v0 = vmul.f32 0.5, %v1356_v60  ;;  %s2318_s19 = scalar_lea.hbm %s2317_s25, 128  ;;  %s2322_s22 = scalar_lea.hbm %s3176_s3, 256 }
 0x28b   : > { %p2319_p5 = scmp.ne.s32.totalorder %s2317_s25, %s2318_s19  ;;  %p2323_p2 = scmp.lt.s32.totalorder %s2317_s25, %s3176_s3 }
 0x28c   : > { %p2324_p10 = scmp.lt.s32.totalorder %s2322_s22, %s2318_s19 }
 0x28d   : > { %p2320_p1 = pnand %p2319_p5, %p2523_p7 }
 0x28e   : > { %p2325_p13 = por %p2324_p10, %p2323_p2 }
 0x28f   : > { %p2321_p11 = pneg %p2320_p1 }
 0x291   : > { %p2326_p0 = pnand %p2325_p13, %p2321_p11 }
 0x293   : > { %2329 = shalt.err (!%p2326_p0)
}
 0x294   : > { %1985 = dma.vmem_to_hbm [thread:$0]  (%p2523_p7), %s1606_s18, 2048, %s1608_s11, %s2972_s12, %s2388_s17, %s2388_s17, %s2389_s8   ;;  %2072 = vrsqrt.f32 %v3017_v8  ;;  %v1348_v12 = vmul.f32 %v1347_v62, %v2940_v42  ;;  %v1358_v1 = vsub.f32 1.5, %v1357_v0  ;;  %v2071_v2 = vpop.eup %2070  ;;  %vm1349_vm4 = vcmp.eq.f32.partialorder %v2940_v42, inf  ;;  %v1292_v11 = vpop.xlane.xlu0 %1291 }
 0x295   : > { %v1352_v3 = vand.u32 2147483648, %v2940_v42  ;;  %vm1351_vm5 = vcmp.eq.f32.partialorder %v2940_v42, 0.0  ;;  %v1367_v5 = vmul.f32 %v2071_v2, %v2998_v57  ;;  %vm1361_vm6 = vcmp.eq.f32.partialorder %v2956_v47, inf  ;;  %v1244_v13 = vpop.xlane.xlu2 %1243  ;;  %v1294_v28 = vpop.xlane.xlu1 %1293 }
 0x296   : > { %v1350_v21 = vsel %vm1349_vm4, %v2940_v42, %v1348_v12  ;;  %v1359_v4 = vmul.f32 %v2069_v58, %v1358_v1  ;;  %vm1363_vm7 = vcmp.eq.f32.partialorder %v2956_v47, 0.0  ;;  %v1364_v10 = vand.u32 2147483648, %v2956_v47 }
 0x297   : > { %v1353_v6 = vsel %vm1351_vm5, %v1352_v3, %v1350_v21  ;;  %v1368_v18 = vmul.f32 %v2071_v2, %v1367_v5  ;;  %v1319_v19 = vsel %vm1313_vm0, %v1244_v13, %v1292_v11  ;;  %vm1373_vm8 = vcmp.eq.f32.partialorder %v2998_v57, inf }
 0x298   : > { %1524 = vst.msk [vmem:[%s2949_s5 + $0x8] sm:$0xff] %vm1522_vm1, %v1353_v6  ;;  %v1360_v9 = vmul.f32 %v1359_v4, %v2956_v47  ;;  %2074 = vrsqrt.f32 %v1319_v19  ;;  %vm1375_vm9 = vcmp.eq.f32.partialorder %v2998_v57, 0.0  ;;  %v1376_v41 = vand.u32 2147483648, %v2998_v57 }
 0x299   : > { %v1369_v15 = vmul.f32 0.5, %v1368_v18  ;;  %vm1385_vm10 = vcmp.eq.f32.partialorder %v3017_v8, inf  ;;  %v1388_v7 = vand.u32 2147483648, %v3017_v8  ;;  %vm1387_vm11 = vcmp.eq.f32.partialorder %v3017_v8, 0.0 }
 0x29a   : > { %v2073_v24 = vpop.eup %2072  ;;  %v1362_v14 = vsel %vm1361_vm6, %v2956_v47, %v1360_v9  ;;  %vm1397_vm12 = vcmp.eq.f32.partialorder %v1319_v19, inf  ;;  %v1400_v50 = vand.u32 2147483648, %v1319_v19  ;;  %vm1399_vm13 = vcmp.eq.f32.partialorder %v1319_v19, 0.0 }
 0x29b   : > { %v1379_v16 = vmul.f32 %v2073_v24, %v3017_v8  ;;  %v1365_v31 = vsel %vm1363_vm7, %v1364_v10, %v1362_v14  ;;  %v1370_v35 = vsub.f32 1.5, %v1369_v15 }
 0x29c   : > { %1525 = vst.msk [vmem:[%s2949_s5 + $0x10] sm:$0xff] %vm1522_vm1, %v1365_v31  ;;  %v1246_v29 = vpop.xlane.xlu0 %1245 }
 0x29d   : > { %v1380_v20 = vmul.f32 %v2073_v24, %v1379_v16  ;;  %v1371_v22 = vmul.f32 %v2071_v2, %v1370_v35  ;;  %v1320_v36 = vsel %vm1313_vm0, %v1246_v29, %v1294_v28  ;;  %v1296_v42 = vpop.xlane.xlu2 %1295  ;;  %v1248_v44 = vpop.xlane.xlu1 %1247 }
 0x29e   : > { %v2075_v27 = vpop.eup %2074  ;;  %2076 = vrsqrt.f32 %v1320_v36  ;;  %v1321_v46 = vsel %vm1313_vm0, %v1248_v44, %v1296_v42  ;;  %vm1409_vm14 = vcmp.eq.f32.partialorder %v1320_v36, inf  ;;  %v1412_v0 = vand.u32 2147483648, %v1320_v36 }
 0x29f   : > { %v1381_v23 = vmul.f32 0.5, %v1380_v20  ;;  %v1372_v25 = vmul.f32 %v1371_v22, %v2998_v57  ;;  %v1391_v30 = vmul.f32 %v2075_v27, %v1319_v19  ;;  %2078 = vrsqrt.f32 %v1321_v46 }
 0x2a0   : > { %vm1411_vm15 = vcmp.eq.f32.partialorder %v1320_v36, 0.0  ;;  %vm1421_vm2 = vcmp.eq.f32.partialorder %v1321_v46, inf  ;;  %v1424_v10 = vand.u32 2147483648, %v1321_v46  ;;  %vm1423_vm3 = vcmp.eq.f32.partialorder %v1321_v46, 0.0 }
 0x2a1   : > { %v1382_v26 = vsub.f32 1.5, %v1381_v23  ;;  %v1374_v32 = vsel %vm1373_vm8, %v2998_v57, %v1372_v25  ;;  %v1392_v34 = vmul.f32 %v2075_v27, %v1391_v30 }
 0x2a2   : > { %v1377_v33 = vsel %vm1375_vm9, %v1376_v41, %v1374_v32 }
 0x2a3   : > { %v1383_v17 = vmul.f32 %v2073_v24, %v1382_v26  ;;  %1526 = vst.msk [vmem:[%s2949_s5 + $0x18] sm:$0xff] %vm1522_vm1, %v1377_v33  ;;  %v1393_v39 = vmul.f32 0.5, %v1392_v34 }
 0x2a4   : > { %v2077_v37 = vpop.eup %2076  ;;  %v1298_v55 = vpop.xlane.xlu0 %1297 }
 0x2a5   : > { %v1384_v43 = vmul.f32 %v1383_v17, %v3017_v8  ;;  %v1394_v53 = vsub.f32 1.5, %v1393_v39  ;;  %v1403_v45 = vmul.f32 %v2077_v37, %v1320_v36  ;;  %v2079_v54 = vpop.eup %2078  ;;  %v1250_v56 = vpop.xlane.xlu2 %1249 }
 0x2a6   : > { %v1415_v59 = vmul.f32 %v2079_v54, %v1321_v46  ;;  %v1322_v60 = vsel %vm1313_vm0, %v1250_v56, %v1298_v55  ;;  %v1300_v21 = vpop.xlane.xlu1 %1299 }
 0x2a7   : > { %v1386_v38 = vsel %vm1385_vm10, %v3017_v8, %v1384_v43  ;;  %v1395_v49 = vmul.f32 %v2075_v27, %v1394_v53  ;;  %v1404_v48 = vmul.f32 %v2077_v37, %v1403_v45  ;;  %2080 = vrsqrt.f32 %v1322_v60 }
 0x2a8   : > { %v1389_v40 = vsel %vm1387_vm11, %v1388_v7, %v1386_v38  ;;  %v1416_v62 = vmul.f32 %v2079_v54, %v1415_v59  ;;  %vm1433_vm4 = vcmp.eq.f32.partialorder %v1322_v60, inf  ;;  %v1436_v26 = vand.u32 2147483648, %v1322_v60 }
 0x2a9   : > { %1527 = vst.msk [vmem:[%s2949_s5 + $0x20] sm:$0xff] %vm1522_vm1, %v1389_v40  ;;  %v1396_v47 = vmul.f32 %v1395_v49, %v1319_v19  ;;  %v1405_v52 = vmul.f32 0.5, %v1404_v48  ;;  %vm1435_vm5 = vcmp.eq.f32.partialorder %v1322_v60, 0.0 }
 0x2aa   : > { %v1417_v12 = vmul.f32 0.5, %v1416_v62 }
 0x2ab   : > { %v1398_v51 = vsel %vm1397_vm12, %v1319_v19, %v1396_v47  ;;  %v1406_v58 = vsub.f32 1.5, %v1405_v52 }
 0x2ac   : > { %v1401_v63 = vsel %vm1399_vm13, %v1400_v50, %v1398_v51  ;;  %v1418_v2 = vsub.f32 1.5, %v1417_v12  ;;  %v1252_v4 = vpop.xlane.xlu0 %1251 }
 0x2ad   : > { %1528 = vst.msk [vmem:[%s2949_s5 + $0x28] sm:$0xff] %vm1522_vm1, %v1401_v63  ;;  %v1407_v57 = vmul.f32 %v2077_v37, %v1406_v58  ;;  %v2081_v3 = vpop.eup %2080  ;;  %v1323_v9 = vsel %vm1313_vm0, %v1252_v4, %v1300_v21  ;;  %v1302_v19 = vpop.xlane.xlu2 %1301 }
 0x2ae   : > { %v1419_v5 = vmul.f32 %v2079_v54, %v1418_v2  ;;  %v1427_v6 = vmul.f32 %v2081_v3, %v1322_v60  ;;  %2082 = vrsqrt.f32 %v1323_v9  ;;  %v1254_v31 = vpop.xlane.xlu1 %1253  ;;  %vm1445_vm6 = vcmp.eq.f32.partialorder %v1323_v9, inf }
 0x2af   : > { %v1408_v61 = vmul.f32 %v1407_v57, %v1320_v36  ;;  %v1324_v22 = vsel %vm1313_vm0, %v1254_v31, %v1302_v19  ;;  %v1448_v38 = vand.u32 2147483648, %v1323_v9  ;;  %vm1447_vm7 = vcmp.eq.f32.partialorder %v1323_v9, 0.0 }
 0x2b0   : > { %v1420_v18 = vmul.f32 %v1419_v5, %v1321_v46  ;;  %v1428_v24 = vmul.f32 %v2081_v3, %v1427_v6  ;;  %2084 = vrsqrt.f32 %v1324_v22  ;;  %vm1457_vm8 = vcmp.eq.f32.partialorder %v1324_v22, inf }
 0x2b1   : > { %v1410_v8 = vsel %vm1409_vm14, %v1320_v36, %v1408_v61  ;;  %v1460_v51 = vand.u32 2147483648, %v1324_v22  ;;  %vm1459_vm9 = vcmp.eq.f32.partialorder %v1324_v22, 0.0 }
 0x2b2   : > { %v1413_v1 = vsel %vm1411_vm15, %v1412_v0, %v1410_v8  ;;  %v1422_v11 = vsel %vm1421_vm2, %v1321_v46, %v1420_v18  ;;  %v1429_v13 = vmul.f32 0.5, %v1428_v24 }
 0x2b3   : > { %1529 = vst.msk [vmem:[%s2949_s5 + $0x30] sm:$0xff] %vm1522_vm1, %v1413_v1  ;;  %v1425_v14 = vsel %vm1423_vm3, %v1424_v10, %v1422_v11 }
 0x2b4   : > { %1530 = vst.msk [vmem:[%s2949_s5 + $0x38] sm:$0xff] %vm1522_vm1, %v1425_v14  ;;  %v1430_v15 = vsub.f32 1.5, %v1429_v13  ;;  %v2083_v16 = vpop.eup %2082  ;;  %v1304_v17 = vpop.xlane.xlu0 %1303 }
 0x2b5   : > { %v1439_v20 = vmul.f32 %v2083_v16, %v1323_v9  ;;  %v1256_v30 = vpop.xlane.xlu2 %1255 }
 0x2b6   : > { %v1431_v35 = vmul.f32 %v2081_v3, %v1430_v15  ;;  %v2085_v32 = vpop.eup %2084  ;;  %v1325_v43 = vsel %vm1313_vm0, %v1256_v30, %v1304_v17  ;;  %v1306_v44 = vpop.xlane.xlu1 %1305 }
 0x2b7   : > { %v1440_v25 = vmul.f32 %v2083_v16, %v1439_v20  ;;  %v1451_v33 = vmul.f32 %v2085_v32, %v1324_v22  ;;  %2086 = vrsqrt.f32 %v1325_v43  ;;  %vm1469_vm10 = vcmp.eq.f32.partialorder %v1325_v43, inf }
 0x2b8   : > { %v1432_v23 = vmul.f32 %v1431_v35, %v1322_v60  ;;  %v1472_v61 = vand.u32 2147483648, %v1325_v43  ;;  %vm1471_vm11 = vcmp.eq.f32.partialorder %v1325_v43, 0.0 }
 0x2b9   : > { %v1441_v41 = vmul.f32 0.5, %v1440_v25  ;;  %v1452_v7 = vmul.f32 %v2085_v32, %v1451_v33 }
 0x2ba   : > { %v1434_v27 = vsel %vm1433_vm4, %v1322_v60, %v1432_v23 }
 0x2bb   : > { %v1437_v28 = vsel %vm1435_vm5, %v1436_v26, %v1434_v27  ;;  %v1442_v29 = vsub.f32 1.5, %v1441_v41  ;;  %v1453_v40 = vmul.f32 0.5, %v1452_v7 }
 0x2bc   : > { %1531 = vst.msk [vmem:[%s2949_s5 + $0x40] sm:$0xff] %vm1522_vm1, %v1437_v28  ;;  %v1258_v49 = vpop.xlane.xlu0 %1257 }
 0x2bd   : > { %v1443_v36 = vmul.f32 %v2083_v16, %v1442_v29  ;;  %v1454_v37 = vsub.f32 1.5, %v1453_v40  ;;  %v2087_v42 = vpop.eup %2086  ;;  %v1326_v47 = vsel %vm1313_vm0, %v1258_v49, %v1306_v44 }
 0x2be   : > { %v1463_v46 = vmul.f32 %v2087_v42, %v1325_v43  ;;  %2088 = vrsqrt.f32 %v1326_v47  ;;  %vm1481_vm12 = vcmp.eq.f32.partialorder %v1326_v47, inf  ;;  %v1484_v4 = vand.u32 2147483648, %v1326_v47 }
 0x2bf   : > { %v1444_v34 = vmul.f32 %v1443_v36, %v1323_v9  ;;  %v1455_v45 = vmul.f32 %v2085_v32, %v1454_v37  ;;  %vm1483_vm13 = vcmp.eq.f32.partialorder %v1326_v47, 0.0 }
 0x2c0   : > { %v1464_v50 = vmul.f32 %v2087_v42, %v1463_v46  ;;  %v1260_v8 = vpop.xlane.xlu1 %1259 }
 0x2c1   : > { %v1446_v39 = vsel %vm1445_vm6, %v1323_v9, %v1444_v34  ;;  %v1456_v48 = vmul.f32 %v1455_v45, %v1324_v22 }
 0x2c2   : > { %v1449_v53 = vsel %vm1447_vm7, %v1448_v38, %v1446_v39  ;;  %v1465_v63 = vmul.f32 0.5, %v1464_v50 }
 0x2c3   : > { %1532 = vst.msk [vmem:[%s2949_s5 + $0x48] sm:$0xff] %vm1522_vm1, %v1449_v53  ;;  %v1458_v52 = vsel %vm1457_vm8, %v1324_v22, %v1456_v48 }
 0x2c4   : > { %v1461_v58 = vsel %vm1459_vm9, %v1460_v51, %v1458_v52  ;;  %v1466_v54 = vsub.f32 1.5, %v1465_v63  ;;  %v2089_v55 = vpop.eup %2088 }
 0x2c5   : > { %1533 = vst.msk [vmem:[%s2949_s5 + $0x50] sm:$0xff] %vm1522_vm1, %v1461_v58  ;;  %v1475_v57 = vmul.f32 %v2089_v55, %v1326_v47 }
 0x2c6   : > { %v1467_v56 = vmul.f32 %v2087_v42, %v1466_v54 }
 0x2c7   : > { %v1476_v60 = vmul.f32 %v2089_v55, %v1475_v57 }
 0x2c8   : > { %v1468_v59 = vmul.f32 %v1467_v56, %v1325_v43  ;;  %v1262_v2 = vpop.xlane.xlu2 %1261  ;;  %v1312_v9 = vpop.xlane.xlu1 %1311 }
 0x2c9   : > { %v1477_v0 = vmul.f32 0.5, %v1476_v60 }
 0x2ca   : > { %v1470_v62 = vsel %vm1469_vm10, %v1325_v43, %v1468_v59 }
 0x2cb   : > { %v1473_v12 = vsel %vm1471_vm11, %v1472_v61, %v1470_v62  ;;  %v1478_v1 = vsub.f32 1.5, %v1477_v0 }
 0x2cc   : > { %1534 = vst.msk [vmem:[%s2949_s5 + $0x58] sm:$0xff] %vm1522_vm1, %v1473_v12 }
 0x2cd   : > { %v1479_v3 = vmul.f32 %v2089_v55, %v1478_v1 }
 0x2cf   : > { %v1480_v21 = vmul.f32 %v1479_v3, %v1326_v47 }
 0x2d0   : > { %v1308_v18 = vpop.xlane.xlu2 %1307  ;;  %v1264_v24 = vpop.xlane.xlu0 %1263 }
 0x2d1   : > { %v1482_v5 = vsel %vm1481_vm12, %v1326_v47, %v1480_v21  ;;  %v1327_v10 = vsel %vm1313_vm0, %v1260_v8, %v1308_v18  ;;  %v1329_v11 = vsel %vm1313_vm0, %v1264_v24, %v1312_v9 }
 0x2d2   : > { %v1485_v6 = vsel %vm1483_vm13, %v1484_v4, %v1482_v5  ;;  %2090 = vrsqrt.f32 %v1327_v10  ;;  %vm1493_vm14 = vcmp.eq.f32.partialorder %v1327_v10, inf  ;;  %vm1495_vm15 = vcmp.eq.f32.partialorder %v1327_v10, 0.0 }
 0x2d3   : > { %1535 = vst.msk [vmem:[%s2949_s5 + $0x60] sm:$0xff] %vm1522_vm1, %v1485_v6  ;;  %2092 = vrsqrt.f32 %v1329_v11  ;;  %v1496_v30 = vand.u32 2147483648, %v1327_v10  ;;  %v1520_v43 = vand.u32 2147483648, %v1329_v11  ;;  %vm1519_vm2 = vcmp.eq.f32.partialorder %v1329_v11, 0.0 }
 0x2d8   : > { %v2091_v13 = vpop.eup %2090  ;;  %v1310_v14 = vpop.xlane.xlu0 %1309 }
 0x2d9   : > { %v2093_v15 = vpop.eup %2092  ;;  %v1487_v16 = vmul.f32 %v2091_v13, %v1327_v10  ;;  %v1328_v19 = vsel %vm1313_vm0, %v1262_v2, %v1310_v14  ;;  %vm1517_vm0 = vcmp.eq.f32.partialorder %v1329_v11, inf }
 0x2da   : > { %v1511_v31 = vmul.f32 %v2093_v15, %v1329_v11  ;;  %2094 = vrsqrt.f32 %v1328_v19  ;;  %vm1505_vm3 = vcmp.eq.f32.partialorder %v1328_v19, inf  ;;  %v1508_v42 = vand.u32 2147483648, %v1328_v19 }
 0x2db   : > { %v1488_v35 = vmul.f32 %v2091_v13, %v1487_v16  ;;  %vm1507_vm4 = vcmp.eq.f32.partialorder %v1328_v19, 0.0 }
 0x2dc   : > { %v1512_v20 = vmul.f32 %v2093_v15, %v1511_v31 }
 0x2dd   : > { %v1489_v22 = vmul.f32 0.5, %v1488_v35 }
 0x2de   : > { %v1513_v23 = vmul.f32 0.5, %v1512_v20 }
 0x2df   : > { %v1490_v25 = vsub.f32 1.5, %v1489_v22 }
 0x2e0   : > { %v2095_v26 = vpop.eup %2094  ;;  %v1514_v27 = vsub.f32 1.5, %v1513_v23 }
 0x2e1   : > { %v1491_v41 = vmul.f32 %v2091_v13, %v1490_v25  ;;  %v1499_v28 = vmul.f32 %v2095_v26, %v1328_v19 }
 0x2e2   : > { %v1515_v29 = vmul.f32 %v2093_v15, %v1514_v27 }
 0x2e3   : > { %v1492_v32 = vmul.f32 %v1491_v41, %v1327_v10  ;;  %v1500_v17 = vmul.f32 %v2095_v26, %v1499_v28 }
 0x2e4   : > { %v1516_v36 = vmul.f32 %v1515_v29, %v1329_v11 }
 0x2e5   : > { %v1494_v33 = vsel %vm1493_vm14, %v1327_v10, %v1492_v32  ;;  %v1501_v34 = vmul.f32 0.5, %v1500_v17 }
 0x2e6   : > { %v1497_v7 = vsel %vm1495_vm15, %v1496_v30, %v1494_v33  ;;  %v1518_v38 = vsel %vm1517_vm0, %v1329_v11, %v1516_v36 }
 0x2e7   : > { %1536 = vst.msk [vmem:[%s2949_s5 + $0x68] sm:$0xff] %vm1522_vm1, %v1497_v7  ;;  %v1521_v39 = vsel %vm1519_vm2, %v1520_v43, %v1518_v38  ;;  %v1502_v40 = vsub.f32 1.5, %v1501_v34 }
 0x2e8   : > { %1538 = vst.msk [vmem:[%s2949_s5 + $0x78] sm:$0xff] %vm1522_vm1, %v1521_v39 }
 0x2e9   : > { %v1503_v53 = vmul.f32 %v2095_v26, %v1502_v40 }
 0x2eb   : > { %v1504_v37 = vmul.f32 %v1503_v53, %v1328_v19 }
 0x2ed   : > { %v1506_v44 = vsel %vm1505_vm3, %v1328_v19, %v1504_v37 }
 0x2ee   : > { %v1509_v49 = vsel %vm1507_vm4, %v1508_v42, %v1506_v44 }
 0x2ef   : > { %1537 = vst.msk [vmem:[%s2949_s5 + $0x70] sm:$0xff] %vm1522_vm1, %v1509_v49 }
 0x2f0 PF: > { %s3178_s24 = sld [smem:[#allocation20_spill]] }
 0x2f1   : > { %s3180_s17 = sld [smem:[#allocation21_spill]] }
 0x2f6   : > { %s1630_s8 = sand.u32 1, %s3178_s24  }
 0x2f7   : > { %p3181_p7 = scmp.ge.s32.totalorder %s3180_s17, 2  ;;  %s1631_s11 = scalar_lea.sflag [#allocation4], %s1630_s8 }
 0x2f9   : > { %p2007_p8 = pnand %p3181_p7, %p2482_p6 }
 0x2fb   : > { %p2008_p9 = pneg %p2007_p8 }
 0x2fd   : > { %2359 = dma.done.wait (%p2008_p9), %s1631_s11, 2048  }
 0x2fe   : > { %2361 = vsyncadd (%p2008_p9), %s1631_s11, 4294965248  ;;  %s3182_s26 = sadd.s32 4294967294, %s3180_s17  }
 0x2ff   : > { %s1640_s30 = sand.u32 1, %s3182_s26  }
 0x300   : > { %s1641_s28 = scalar_lea.sflag [#allocation13], %s1640_s30 }
 0x301   : > { %2363 = dma.done.wait (%p2008_p9), %s1641_s28, 4096  }
 0x302   : > { %2365 = vsyncadd (%p2008_p9), %s1641_s28, 4294963200  ;;  %s3183_s16 = sld [smem:[#allocation23_spill]]  ;;  %s3185_s13 = smov %s2372_s14 }
 0x303   : > { %s3184_s5 = sld [smem:[#allocation24_spill]]  ;;  %s3186_s14 = smov %s2376_s15 }
 0x308   : > { %p31_p4 = scmp.ge.s32.totalorder %s3183_s16, 4  }
 0x309   : > { %s3187_s15 = smov %s3184_s5 }
 0x30a   :  { %33 = sbr.rel (!%p31_p4) target bundleno = 16 (0x10), region = 169 }
 0x30f   :  { %1657 = vsyncpa [#allocation3], 1 }
 0x310   :  { %1659 = vsyncpa [#allocation3 + $0x1], 1 }
 0x311   :  { %1660 = vsyncpa [#allocation6], 1 }
 0x312   :  { %1662 = vsyncpa [#allocation6 + $0x1], 1 }
 0x313   :  { %1663 = vsyncpa [#allocation9], 1 }
 0x314   :  { %1664 = vsyncpa [#allocation4], 1 }
 0x315   :  { %1666 = vsyncpa [#allocation4 + $0x1], 1 }
 0x316   :  { %1667 = vsyncpa [#allocation13], 1 }
 0x317   :  { %1669 = vsyncpa [#allocation13 + $0x1], 1 }

// kernel: tpu_custom_call.1
= control target key start
LH: loop header
LB: loop body
LE: loop exit
PB: predicated region body
PF: predicated region fallthrough
CT: control target
= control target key end

     0   :  { %s3121_s0 = inlined_call_operand.hbm [shape: f32[256,128], index: 0, kind: input, shape index: {}]   ;;  %s3122_s1 = inlined_call_operand.hbm [shape: f32[256,128], index: 1, kind: input, shape index: {}]   ;;  %s3123_s2 = inlined_call_operand.hbm [shape: f32[256,128], index: 2, kind: input, shape index: {}]   ;;  %s3124_s3 = inlined_call_operand.hbm [shape: bf16[128,128], index: 3, kind: input, shape index: {}]   ;;  %s3125_s4 = inlined_call_operand.vmem [shape: f32[1,128], index: 4, kind: input, shape index: {}]   ;;  %s3126_s5 = inlined_call_operand.hbm [shape: bf16[128,128], index: 5, kind: input, shape index: {}]   ;;  %s3127_s6 = inlined_call_operand.vmem [shape: f32[1,128], index: 6, kind: input, shape index: {}]   ;;  %s3128_s7 = inlined_call_operand.vmem [shape: f32[256,2], index: 7, kind: output, shape index: {0}]   ;;  %s3129_s8 = inlined_call_operand.hbm [shape: f32[256,128], index: 8, kind: output, shape index: {1}]   ;;  %s3130_s9 = inlined_call_operand.hbm [shape: f32[256,128], index: 9, kind: output, shape index: {2}]   ;;  %s3131_s10 = inlined_call_operand.hbm [shape: f32[256,128], index: 10, kind: output, shape index: {3}]  }
   0x1   :  { %3149 = sst [smem:[#allocation26_spill]] %s3122_s1 }
   0x2   :  { %3150 = sst [smem:[#allocation27_spill]] %s3124_s3 }
   0x3   :  { %3151 = sst [smem:[#allocation28_spill]] %s3126_s5 }
   0x4   :  { %3152 = sst [smem:[#allocation29_spill]] %s3129_s8 }
   0x5   :  { %3153 = sst [smem:[#allocation30_spill]] %s3131_s10 }
   0x6   :  { %16 = vsyncpa [#allocation3], 0 }
   0x7   :  { %18 = vsyncpa [#allocation3 + $0x1], 0 }
   0x8   :  { %19 = vsyncpa [#allocation6], 0 }
   0x9   :  { %21 = vsyncpa [#allocation6 + $0x1], 0 }
   0xa   :  { %22 = vsyncpa [#allocation9], 0 }
   0xb   :  { %23 = vsyncpa [#allocation4], 0 }
   0xc   :  { %25 = vsyncpa [#allocation4 + $0x1], 0 }
   0xd   :  { %26 = vsyncpa [#allocation13], 0 }
   0xe   :  { %28 = vsyncpa [#allocation13 + $0x1], 0  ;;  %s2445_s13 = smov 0   ;;  %s2447_s14 = smov 0  }
   0xf   :  { %s2449_s15 = smov 0   ;;  %s2451_s16 = smov 0  }
  0x10 LB: > { %3154 = sst [smem:[#allocation20_spill]] %s2368_s13  ;;  %s2466_s17 = sadd.s32 4294967295, %s2380_s16   ;;  %s2380_s16 = sphi %s2451_s16, %s3183_s16   ;;  %s2376_s15 = sphi %s2449_s15, %s3187_s15   ;;  %s2372_s14 = sphi %s2447_s14, %s3186_s14   ;;  %s2368_s13 = sphi %s2445_s13, %s3185_s13  }
  0x11   : > { %3155 = sst [smem:[#allocation21_spill]] %s2380_s16  ;;  %s3132_s18 = sadd.s32 4294967294, %s2380_s16  }
  0x12   : > { %p54_p0 = scmp.ne.s32.totalorder %s2372_s14, %s2368_s13  ;;  %p3146_p1 = scmp.eq.s32.totalorder %s2466_s17, 0 }
  0x13   : > { %p240_p2 = scmp.eq.s32.totalorder %s2466_s17, 1  ;;  %p246_p3 = scmp.eq.s32.totalorder %s3132_s18, 1 }
  0x14   : > { %p2477_p4 = por %p3146_p1, %p54_p0  ;;  %p1832_p5 = scmp.ge.s32.totalorder %s2380_s16, 1 }
  0x15   : > { %p2482_p6 = por %p246_p3, %p54_p0  ;;  %p305_p7 = scmp.lt.s32.totalorder %s2380_s16, 3 }
  0x16   : > { %s3159_s3 = sld [smem:[#allocation27_spill]]  ;;  %s2382_s25 = smov [#allocation8]  }
  0x17   : > { %s3157_s20 = scalar_select %p2482_p6, 1, 0 }
  0x18   : > { %p2490_p8 = pnand %p1832_p5, %p305_p7  ;;  %s318_s26 = sshll.u32 %s2382_s25, 4  ;;  %s319_s26 = int_to_ptr.vmem [resolvable:$true] %s318_s26 }
  0x19   : > { %3158 = sst [smem:[#allocation22_spill]] %s3157_s20  ;;  %s2504_s28 = sadd.s32 1, %s2380_s16  }
  0x1a   : > { %p1989_p9 = pneg %p2490_p8  ;;  %3162 = sst [smem:[#allocation23_spill]] %s2504_s28 }
  0x1b   : > { %s3133_s29 = smov 64   ;;  %s3134_s30 = smov 4  }
  0x1c   : > { %s316_s23 = sshll.u32 %s3159_s3, 4  ;;  %p2498_p10 = pnand %p1989_p9, %p3146_p1  ;;  %s317_s23 = int_to_ptr.hbm [resolvable:$true] %s316_s23 }
  0x1d   : > { %s38_s11 = ssub.s32 %s2380_s16, %s2504_s28  ;;  %s41_s12 = sadd.s32 1, %s2376_s15 }
  0x1e   : > { %1992 = dma.hbm_to_vmem [thread:$0]  (!%p2498_p10), %s317_s23, 1024, %s319_s26, [#allocation9], %s3133_s29, %s3133_s29, %s3134_s30  }
  0x1f   : > { %p39_p12 = scmp.eq.s32.totalorder %s38_s11, 0  ;;  %p48_p13 = scmp.ne.s32.totalorder %s2376_s15, %s2372_s14 }
  0x20   : > { %p49_p0 = scmp.eq.s32.totalorder %s2380_s16, 0  ;;  %p2018_p3 = scmp.lt.s32.totalorder %s2380_s16, 2 }
  0x21   : > { %s2519_s21 = scalar_select %p39_p12, %s2376_s15, %s41_s12  }
  0x22   : > { %p50_p5 = por %p49_p0, %p48_p13  ;;  %p2523_p7 = por %p240_p2, %p48_p13 }
  0x23   : > { %3163 = sst [smem:[#allocation24_spill]] %s2519_s21  ;;  %s3138_s25 = sand.u32 1, %s2376_s15  }
  0x24   : > { %s3164_s22 = scalar_select %p2523_p7, 1, 0 }
  0x25   : > { %s2529_s18 = sshll.u32 %s2380_s16, 7  ;;  %s2533_s23 = sshll.u32 %s3138_s25, 7 }
  0x26   : > { %3165 = sst [smem:[#allocation25_spill]] %s3164_s22  ;;  %p2535_p9 = pnand %p2018_p3, %p50_p5 }
  0x27   : > { %s374_s11 = sand.u32 1, %s2380_s16   ;;  %s3167_s1 = sld [smem:[#allocation26_spill]] }
  0x28   : > { %s378_s3 = scalar_lea.vmem [#allocation5], %s2533_s23  ;;  %s3168_s5 = sld [smem:[#allocation28_spill]] }
  0x29   : > { %s386_s21 = sshll.u32 %s378_s3, 4  ;;  %s2548_s8 = scalar_lea.sflag [#allocation6], %s374_s11  ;;  %s387_s21 = int_to_ptr.vmem [resolvable:$true] %s386_s21 }
  0x2a   : > { %p2130_p12 = pneg %p2535_p9 }
  0x2d   : > { %s383_s30 = scalar_lea.hbm %s3167_s1, %s2529_s18 }
  0x2e   : > { %s384_s28 = sshll.u32 %s383_s30, 4  ;;  %s333_s13 = sshll.u32 %s3168_s5, 4  ;;  %s385_s28 = int_to_ptr.hbm [resolvable:$true] %s384_s28  ;;  %s334_s13 = int_to_ptr.hbm [resolvable:$true] %s333_s13 }
  0x2f   : > { %s2126_s10 = sshra.s32 %s385_s28, 4  ;;  %s2133_s30 = scalar_lea.hbm %s3167_s1, 256  ;;  %s2127_s10 = int_to_ptr.hbm [resolvable:$true] %s2126_s10 }
  0x30   : > { %s2128_s22 = scalar_lea.hbm %s2127_s10, 128  ;;  %p2134_p3 = scmp.lt.s32.totalorder %s2127_s10, %s3167_s1 }
  0x31   : > { %p2129_p2 = scmp.ne.s32.totalorder %s2127_s10, %s2128_s22  ;;  %p2135_p5 = scmp.lt.s32.totalorder %s2133_s30, %s2128_s22 }
  0x33   : > { %p2131_p13 = pnand %p2130_p12, %p2129_p2  ;;  %p2136_p11 = por %p2135_p5, %p2134_p3 }
  0x35   : > { %p2132_p0 = pneg %p2131_p13 }
  0x37   : > { %p2137_p1 = pnand %p2136_p11, %p2132_p0 }
  0x39   : > { %2140 = shalt.err (!%p2137_p1)
}
  0x3a   : > { %s3147_s20 = smov 128   ;;  %s2386_s25 = smov 8  }
  0x3b   : > { %2002 = dma.hbm_to_vmem [thread:$0]  (!%p2535_p9), %s385_s28, 2048, %s387_s21, %s2548_s8, %s3147_s20, %s3147_s20, %s2386_s25  }
  0x3c   : > { %s2387_s10 = smov [#allocation10]   ;;  %s3169_s22 = smov 4  }
  0x3d   : > { %s335_s16 = sshll.u32 %s2387_s10, 4  ;;  %s3170_s11 = smov 64   ;;  %s336_s16 = int_to_ptr.vmem [resolvable:$true] %s335_s16 }
  0x3e   : > { %1995 = dma.hbm_to_vmem [thread:$0]  (!%p2498_p10), %s334_s13, 1024, %s336_s16, [#allocation9], %s3170_s11, %s3170_s11, %s3169_s22  }
  0x3f   : > { %s361_s30 = scalar_lea.hbm %s3121_s0, %s2529_s18  ;;  %s356_s12 = scalar_lea.vmem [#allocation2], %s2533_s23 }
  0x40   : > { %s364_s1 = sshll.u32 %s356_s12, 4  ;;  %s362_s5 = sshll.u32 %s361_s30, 4  ;;  %s365_s1 = int_to_ptr.vmem [resolvable:$true] %s364_s1  ;;  %s363_s5 = int_to_ptr.hbm [resolvable:$true] %s362_s5 }
  0x41   : > { %s3171_s28 = sand.u32 1, %s2376_s15   ;;  %s2186_s20 = sshra.s32 %s363_s5, 4  ;;  %s2187_s20 = int_to_ptr.hbm [resolvable:$true] %s2186_s20 }
  0x42   : > { %s353_s21 = scalar_lea.sflag [#allocation3], %s3171_s28  ;;  %s2188_s10 = scalar_lea.hbm %s2187_s20, 128 }
  0x43   : > { %p2189_p1 = scmp.ne.s32.totalorder %s2187_s20, %s2188_s10  ;;  %s2193_s16 = scalar_lea.hbm %s3121_s0, 256 }
  0x44   : > { %p2194_p10 = scmp.lt.s32.totalorder %s2187_s20, %s3121_s0  ;;  %p2195_p13 = scmp.lt.s32.totalorder %s2193_s16, %s2188_s10 }
  0x45   : > { %p2191_p11 = pnand %p2189_p1, %p2130_p12 }
  0x46   : > { %p2196_p0 = por %p2195_p13, %p2194_p10 }
  0x47   : > { %p2192_p2 = pneg %p2191_p11 }
  0x49   : > { %p2197_p3 = pnand %p2196_p0, %p2192_p2 }
  0x4b   : > { %2200 = shalt.err (!%p2197_p3)
}
  0x4c   : > { %s3172_s3 = smov 128   ;;  %s405_s12 = scalar_lea.hbm %s3123_s2, %s2529_s18 }
  0x4d   : > { %1999 = dma.hbm_to_vmem [thread:$0]  (!%p2535_p9), %s363_s5, 2048, %s365_s1, %s353_s21, %s3172_s3, %s3172_s3, %s2386_s25  }
  0x4e   : > { %s400_s28 = scalar_lea.vmem [#allocation7], %s2533_s23  ;;  %s406_s20 = sshll.u32 %s405_s12, 4  ;;  %s407_s20 = int_to_ptr.hbm [resolvable:$true] %s406_s20 }
  0x4f   : > { %s408_s13 = sshll.u32 %s400_s28, 4  ;;  %s2216_s10 = sshra.s32 %s407_s20, 4  ;;  %s409_s13 = int_to_ptr.vmem [resolvable:$true] %s408_s13  ;;  %s2217_s10 = int_to_ptr.hbm [resolvable:$true] %s2216_s10 }
  0x50   : > { %s2218_s27 = scalar_lea.hbm %s2217_s10, 128  ;;  %s2223_s1 = scalar_lea.hbm %s3123_s2, 256 }
  0x51   : > { %p2219_p5 = scmp.ne.s32.totalorder %s2217_s10, %s2218_s27  ;;  %p2224_p2 = scmp.lt.s32.totalorder %s2217_s10, %s3123_s2 }
  0x52   : > { %p2225_p10 = scmp.lt.s32.totalorder %s2223_s1, %s2218_s27 }
  0x53   : > { %p2221_p1 = pnand %p2219_p5, %p2130_p12 }
  0x54   : > { %p2226_p13 = por %p2225_p10, %p2224_p2 }
  0x55   : > { %p2222_p11 = pneg %p2221_p1 }
  0x57   : > { %p2227_p0 = pnand %p2226_p13, %p2222_p11 }
  0x59   : > { %2230 = shalt.err (!%p2227_p0)
}
  0x5a   : > { %2005 = dma.hbm_to_vmem [thread:$0]  (!%p2535_p9), %s407_s20, 2048, %s409_s13, %s2548_s8, %s3172_s3, %s3172_s3, %s2386_s25  }
  0x5b   : > { %420 = sbr.rel (%p2490_p8) target bundleno = 752 (0x2f0), region = 48  ;;  %s2616_s18 = sand.u32 (!%p2490_p8), 1, %s2372_s14  }
  0x5c   : > { %s2619_s23 = sshll.u32 (!%p2490_p8), %s2616_s18, 7  ;;  %s423_s11 = scalar_lea.sflag (!%p2490_p8), [#allocation3], %s2616_s18 }
  0x5d   : > { %s2623_s29 = scalar_lea.vmem (!%p2490_p8), [#allocation2], %s2619_s23 }
  0x60   : > { %2347 = dma.done.wait (%p2477_p4), %s423_s11, 2048  }
  0x61   : > { %2349 = vsyncadd (%p2477_p4), %s423_s11, 4294965248  ;;  %s432_s8 = sand.u32 1, %s2466_s17   ;;  %s2633_s26 = scalar_lea.vmem [#allocation5], %s2619_s23 }
  0x62   : > { %s433_s24 = scalar_lea.sflag [#allocation6], %s432_s8 }
  0x63   : > { %2351 = dma.done.wait (%p2477_p4), %s433_s24, 4096  }
  0x64   : > { %2353 = vsyncadd (%p2477_p4), %s433_s24, 4294963200  ;;  %s2640_s25 = scalar_lea.vmem [#allocation7], %s2619_s23  ;;  %p3173_p8 = scmp.eq.s32.totalorder %s2466_s17, 0 }
  0x66   : > { %2355 = dma.done.wait (%p3173_p8), [#allocation9], 2048   ;;  %p3174_p9 = pmov %p3173_p8 }
  0x67   : > { %v1941_v0 = vld [vmem:[#allocation8 + $0x38] sm:$0xff]  ;;  %v1940_v1 = vld [vmem:[#allocation8 + $0x30] sm:$0xff]  ;;  %v1939_v2 = vld [vmem:[#allocation8 + $0x28] sm:$0xff]  ;;  %s2743_s28 = scalar_lea.vmem [#allocation11], %s2619_s23  ;;  %s2832_s13 = scalar_lea.vmem [#allocation14], %s2619_s23  ;;  %vm1313_vm0 = vcmask 7168  }
  0x68   : > { %2357 = vsyncadd (%p3174_p9), [#allocation9], 4294965248  ;;  %640 = vmatpush.bf16.msra.mxu0 %v1941_v0  ;;  %1953 = vmatpush.bf16.msra.mxu2 %v1941_v0  ;;  %v1938_v3 = vld [vmem:[#allocation8 + $0x20] sm:$0xff]  ;;  %v1937_v4 = vld [vmem:[#allocation8 + $0x18] sm:$0xff]  ;;  %s2846_s20 = scalar_lea.vmem [#allocation12], %s2619_s23  ;;  %s1854_s10 = sshll.u32 %s2466_s17, 4 }
  0x69   : > { %v1936_v5 = vld [vmem:[#allocation8 + $0x10] sm:$0xff]  ;;  %v1935_v6 = vld [vmem:[#allocation8 + $0x8] sm:$0xff]  ;;  %v1934_v7 = vld [vmem:[#allocation8] sm:$0xff]  ;;  %p523_p4 = scmp.lt.s32.totalorder %s1854_s10, 31  ;;  %s2944_s16 = sshll.u32 %s2466_s17, 7  ;;  %vm1522_vm1 = vcmask 15360  }
  0x6a   : > { %v565_v8 = vld [vmem:[%s2623_s29] sm:$0xff]  ;;  %v566_v9 = vld [vmem:[%s2623_s29 + $0x8] sm:$0xff]  ;;  %v567_v14 = vld [vmem:[%s2623_s29 + $0x10] sm:$0xff]  ;;  %s1587_s11 = scalar_lea.hbm %s3130_s9, %s2944_s16  ;;  %s3176_s3 = sld [smem:[#allocation30_spill]] }
  0x6b   : > { %v573_v10 = vld [vmem:[%s2623_s29 + $0x40] sm:$0xff]  ;;  %v574_v11 = vld [vmem:[%s2623_s29 + $0x48] sm:$0xff]  ;;  %v581_v12 = vpack.c.bf16 %v566_v9, %v565_v8  ;;  %v568_v15 = vld [vmem:[%s2623_s29 + $0x18] sm:$0xff]  ;;  %s3189_s10 = smov (!%p523_p4, %s1854_s10), 31  ;;  %s2972_s12 = scalar_lea.sflag [#allocation13], %s432_s8 }
  0x6c   : > { %641 = vmatpush.bf16.msra.mxu0 %v1940_v1  ;;  %1954 = vmatpush.bf16.msra.mxu2 %v1940_v1  ;;  %v585_v13 = vpack.c.bf16 %v574_v11, %v573_v10  ;;  %v575_v16 = vld [vmem:[%s2623_s29 + $0x50] sm:$0xff]  ;;  %v576_v17 = vld [vmem:[%s2623_s29 + $0x58] sm:$0xff]  ;;  %v582_v18 = vpack.c.bf16 %v568_v15, %v567_v14  ;;  %v569_v20 = vld [vmem:[%s2623_s29 + $0x20] sm:$0xff]  ;;  %s1855_s27 = sshll.u32 %s3189_s10, 3  ;;  %s2266_s1 = scalar_lea.hbm %s3130_s9, 256 }
  0x6d   : > { %v586_v19 = vpack.c.bf16 %v576_v17, %v575_v16  ;;  %v570_v21 = vld [vmem:[%s2623_s29 + $0x28] sm:$0xff]  ;;  %v577_v22 = vld [vmem:[%s2623_s29 + $0x60] sm:$0xff]  ;;  %v571_v26 = vld [vmem:[%s2623_s29 + $0x30] sm:$0xff]  ;;  %s2949_s5 = scalar_lea.vmem %s3128_s7, %s1855_s27 }
  0x6e   : > { %v578_v23 = vld [vmem:[%s2623_s29 + $0x68] sm:$0xff]  ;;  %v583_v24 = vpack.c.bf16 %v570_v21, %v569_v20  ;;  %v572_v27 = vld [vmem:[%s2623_s29 + $0x38] sm:$0xff]  ;;  %v579_v28 = vld [vmem:[%s2623_s29 + $0x70] sm:$0xff] }
  0x6f   : > { %v587_v25 = vpack.c.bf16 %v578_v23, %v577_v22  ;;  %v580_v29 = vld [vmem:[%s2623_s29 + $0x78] sm:$0xff]  ;;  %v584_v30 = vpack.c.bf16 %v572_v27, %v571_v26  ;;  %v813_v32 = vld [vmem:[%s2633_s26] sm:$0xff]  ;;  %v814_v33 = vld [vmem:[%s2633_s26 + $0x8] sm:$0xff]  ;;  %s1588_s29 = sshll.u32 %s2846_s20, 4  ;;  %s1589_s29 = int_to_ptr.vmem [resolvable:$true] %s1588_s29 }
  0x70   : > { %642 = vmatpush.bf16.msra.mxu0 %v1939_v2  ;;  %1955 = vmatpush.bf16.msra.mxu2 %v1939_v2  ;;  %v588_v31 = vpack.c.bf16 %v580_v29, %v579_v28  ;;  %v959_v34 = vld [vmem:[%s2640_s25] sm:$0xff]  ;;  %v960_v35 = vld [vmem:[%s2640_s25 + $0x8] sm:$0xff]  ;;  %v829_v36 = vpack.c.bf16 %v814_v33, %v813_v32  ;;  %v1949_v38 = vld [vmem:[#allocation10 + $0x38] sm:$0xff]  ;;  %s1604_s30 = scalar_lea.hbm %s3176_s3, %s2944_s16 }
  0x71   : > { %v975_v37 = vpack.c.bf16 %v960_v35, %v959_v34  ;;  %764 = vmatpush.bf16.msra.mxu1 %v1949_v38  ;;  %1961 = vmatpush.bf16.msra.mxu3 %v1949_v38  ;;  %v815_v39 = vld [vmem:[%s2633_s26 + $0x10] sm:$0xff]  ;;  %v816_v40 = vld [vmem:[%s2633_s26 + $0x18] sm:$0xff]  ;;  %v1947_v46 = vld [vmem:[#allocation10 + $0x28] sm:$0xff] }
  0x72   : > { %v961_v41 = vld [vmem:[%s2640_s25 + $0x10] sm:$0xff]  ;;  %v962_v42 = vld [vmem:[%s2640_s25 + $0x18] sm:$0xff]  ;;  %v830_v43 = vpack.c.bf16 %v816_v40, %v815_v39  ;;  %v1946_v47 = vld [vmem:[#allocation10 + $0x20] sm:$0xff] }
  0x73   : > { %v976_v44 = vpack.c.bf16 %v962_v42, %v961_v41  ;;  %v1948_v45 = vld [vmem:[#allocation10 + $0x30] sm:$0xff]  ;;  %v817_v48 = vld [vmem:[%s2633_s26 + $0x20] sm:$0xff]  ;;  %v818_v49 = vld [vmem:[%s2633_s26 + $0x28] sm:$0xff] }
  0x74   : > { %643 = vmatpush.bf16.msra.mxu0 %v1938_v3  ;;  %1956 = vmatpush.bf16.msra.mxu2 %v1938_v3  ;;  %v963_v50 = vld [vmem:[%s2640_s25 + $0x20] sm:$0xff]  ;;  %v964_v51 = vld [vmem:[%s2640_s25 + $0x28] sm:$0xff]  ;;  %v1945_v52 = vld [vmem:[#allocation10 + $0x18] sm:$0xff]  ;;  %v831_v53 = vpack.c.bf16 %v818_v49, %v817_v48 }
  0x75   : > { %765 = vmatpush.bf16.msra.mxu1 %v1948_v45  ;;  %1962 = vmatpush.bf16.msra.mxu3 %v1948_v45  ;;  %v977_v54 = vpack.c.bf16 %v964_v51, %v963_v50  ;;  %v1944_v55 = vld [vmem:[#allocation10 + $0x10] sm:$0xff]  ;;  %v1943_v56 = vld [vmem:[#allocation10 + $0x8] sm:$0xff]  ;;  %v1942_v57 = vld [vmem:[#allocation10] sm:$0xff] }
  0x76   : > { %v819_v58 = vld [vmem:[%s2633_s26 + $0x30] sm:$0xff]  ;;  %v820_v59 = vld [vmem:[%s2633_s26 + $0x38] sm:$0xff]  ;;  %v825_v34 = vld [vmem:[%s2633_s26 + $0x60] sm:$0xff] }
  0x77   : > { %v965_v60 = vld [vmem:[%s2640_s25 + $0x30] sm:$0xff]  ;;  %v966_v61 = vld [vmem:[%s2640_s25 + $0x38] sm:$0xff]  ;;  %v832_v62 = vpack.c.bf16 %v820_v59, %v819_v58  ;;  %v826_v35 = vld [vmem:[%s2633_s26 + $0x68] sm:$0xff] }
  0x78   : > { %644 = vmatpush.bf16.msra.mxu0 %v1937_v4  ;;  %1957 = vmatpush.bf16.msra.mxu2 %v1937_v4  ;;  %v978_v63 = vpack.c.bf16 %v966_v61, %v965_v60  ;;  %v823_v14 = vld [vmem:[%s2633_s26 + $0x50] sm:$0xff]  ;;  %v824_v15 = vld [vmem:[%s2633_s26 + $0x58] sm:$0xff]  ;;  %v835_v42 = vpack.c.bf16 %v826_v35, %v825_v34 }
  0x79   : > { %766 = vmatpush.bf16.msra.mxu1 %v1947_v46  ;;  %1963 = vmatpush.bf16.msra.mxu3 %v1947_v46  ;;  %v969_v16 = vld [vmem:[%s2640_s25 + $0x50] sm:$0xff]  ;;  %v970_v17 = vld [vmem:[%s2640_s25 + $0x58] sm:$0xff]  ;;  %v834_v22 = vpack.c.bf16 %v824_v15, %v823_v14 }
  0x7a   : > { %v980_v23 = vpack.c.bf16 %v970_v17, %v969_v16 }
  0x7c   : > { %645 = vmatpush.bf16.msra.mxu0 %v1936_v5  ;;  %1958 = vmatpush.bf16.msra.mxu2 %v1936_v5 }
  0x7d   : > { %767 = vmatpush.bf16.msra.mxu1 %v1946_v47  ;;  %1964 = vmatpush.bf16.msra.mxu3 %v1946_v47 }
  0x80   : > { %646 = vmatpush.bf16.msra.mxu0 %v1935_v6  ;;  %1959 = vmatpush.bf16.msra.mxu2 %v1935_v6 }
  0x81   : > { %768 = vmatpush.bf16.msra.mxu1 %v1945_v52  ;;  %1965 = vmatpush.bf16.msra.mxu3 %v1945_v52 }
  0x84   : > { %647 = vmatpush.bf16.msra.mxu0 %v1934_v7  ;;  %1960 = vmatpush.bf16.msra.mxu2 %v1934_v7 }
  0x85   : > { %769 = vmatpush.bf16.msra.mxu1 %v1944_v55  ;;  %1966 = vmatpush.bf16.msra.mxu3 %v1944_v55 }
  0x87   : > { %648 = vmatmul.bf16.vlgmr.msra.gmra.mxu0 %v581_v12  ;;  %668 = vmatmul.bf16.vlgmr.msra.gmra.mxu2 %v585_v13 }
  0x88   : > { %837 = vmatpush.bf16.msrb.mxu2 %v1941_v0  ;;  %983 = vmatpush.bf16.msrb.mxu0 %v1941_v0  ;;  %v821_v0 = vld [vmem:[%s2633_s26 + $0x40] sm:$0xff] }
  0x89   : > { %770 = vmatpush.bf16.msra.mxu1 %v1943_v56  ;;  %1967 = vmatpush.bf16.msra.mxu3 %v1943_v56 }
  0x8c   : > { %838 = vmatpush.bf16.msrb.mxu2 %v1940_v1  ;;  %984 = vmatpush.bf16.msrb.mxu0 %v1940_v1  ;;  %v822_v1 = vld [vmem:[%s2633_s26 + $0x48] sm:$0xff] }
  0x8d   : > { %771 = vmatpush.bf16.msra.mxu1 %v1942_v57  ;;  %1968 = vmatpush.bf16.msra.mxu3 %v1942_v57 }
  0x90   : > { %839 = vmatpush.bf16.msrb.mxu2 %v1939_v2  ;;  %985 = vmatpush.bf16.msrb.mxu0 %v1939_v2  ;;  %v967_v2 = vld [vmem:[%s2640_s25 + $0x40] sm:$0xff] }
  0x91   : > { %910 = vmatpush.bf16.msrb.mxu3 %v1949_v38  ;;  %1056 = vmatpush.bf16.msrb.mxu1 %v1949_v38 }
  0x94   : > { %840 = vmatpush.bf16.msrb.mxu2 %v1938_v3  ;;  %986 = vmatpush.bf16.msrb.mxu0 %v1938_v3  ;;  %v968_v3 = vld [vmem:[%s2640_s25 + $0x48] sm:$0xff] }
  0x95   : > { %911 = vmatpush.bf16.msrb.mxu3 %v1948_v45  ;;  %1057 = vmatpush.bf16.msrb.mxu1 %v1948_v45 }
  0x97   : > { %653 = vmatmul.bf16.gmra.mxu0 %v582_v18  ;;  %673 = vmatmul.bf16.gmra.mxu2 %v586_v19 }
  0x98   : > { %841 = vmatpush.bf16.msrb.mxu2 %v1937_v4  ;;  %987 = vmatpush.bf16.msrb.mxu0 %v1937_v4  ;;  %v833_v4 = vpack.c.bf16 %v822_v1, %v821_v0 }
  0x99   : > { %912 = vmatpush.bf16.msrb.mxu3 %v1947_v46  ;;  %1058 = vmatpush.bf16.msrb.mxu1 %v1947_v46 }
  0x9c   : > { %842 = vmatpush.bf16.msrb.mxu2 %v1936_v5  ;;  %988 = vmatpush.bf16.msrb.mxu0 %v1936_v5  ;;  %v979_v5 = vpack.c.bf16 %v968_v3, %v967_v2 }
  0x9d   : > { %913 = vmatpush.bf16.msrb.mxu3 %v1946_v47  ;;  %1059 = vmatpush.bf16.msrb.mxu1 %v1946_v47 }
  0xa0   : > { %843 = vmatpush.bf16.msrb.mxu2 %v1935_v6  ;;  %989 = vmatpush.bf16.msrb.mxu0 %v1935_v6 }
  0xa1   : > { %914 = vmatpush.bf16.msrb.mxu3 %v1945_v52  ;;  %1060 = vmatpush.bf16.msrb.mxu1 %v1945_v52 }
  0xa4   : > { %844 = vmatpush.bf16.msrb.mxu2 %v1934_v7  ;;  %990 = vmatpush.bf16.msrb.mxu0 %v1934_v7  ;;  %v2685_v7 = vld [vmem:[%s3125_s4] ss:$0 sm:$0xff] }
  0xa5   : > { %915 = vmatpush.bf16.msrb.mxu3 %v1944_v55  ;;  %1061 = vmatpush.bf16.msrb.mxu1 %v1944_v55  ;;  %v828_v55 = vld [vmem:[%s2633_s26 + $0x78] sm:$0xff] }
  0xa7   : > { %658 = vmatmul.bf16.gmra.mxu0 %v583_v24  ;;  %678 = vmatmul.bf16.gmra.mxu2 %v587_v25 }
  0xa9   : > { %916 = vmatpush.bf16.msrb.mxu3 %v1943_v56  ;;  %1062 = vmatpush.bf16.msrb.mxu1 %v1943_v56  ;;  %v973_v56 = vld [vmem:[%s2640_s25 + $0x70] sm:$0xff] }
  0xad   : > { %1063 = vmatpush.bf16.msrb.mxu1 %v1942_v57  ;;  %917 = vmatpush.bf16.msrb.mxu3 %v1942_v57  ;;  %v974_v57 = vld [vmem:[%s2640_s25 + $0x78] sm:$0xff] }
  0xb7   : > { %663 = vmatmul.bf16.gmra.mxu0 %v584_v30  ;;  %683 = vmatmul.bf16.gmra.mxu2 %v588_v31 }
  0xc7   : > { %845 = vmatmul.bf16.vlgmr.msrb.gmra.mxu2 %v829_v36  ;;  %991 = vmatmul.bf16.vlgmr.msrb.gmra.mxu0 %v975_v37  ;;  %v971_v36 = vld [vmem:[%s2640_s25 + $0x60] sm:$0xff]  ;;  %v972_v37 = vld [vmem:[%s2640_s25 + $0x68] sm:$0xff] }
  0xd7   : > { %850 = vmatmul.bf16.gmra.mxu2 %v830_v43  ;;  %996 = vmatmul.bf16.gmra.mxu0 %v976_v44  ;;  %v981_v43 = vpack.c.bf16 %v972_v37, %v971_v36 }
  0xe7   : > { %855 = vmatmul.bf16.gmra.mxu2 %v831_v53  ;;  %1001 = vmatmul.bf16.gmra.mxu0 %v977_v54  ;;  %v827_v54 = vld [vmem:[%s2633_s26 + $0x70] sm:$0xff]  ;;  %s2959_s26 = sshll.u32 %s1587_s11, 4  ;;  %s1591_s26 = int_to_ptr.hbm [resolvable:$true] %s2959_s26 }
  0xf7   : > { %860 = vmatmul.bf16.gmra.mxu2 %v832_v62  ;;  %1006 = vmatmul.bf16.gmra.mxu0 %v978_v63  ;;  %v836_v62 = vpack.c.bf16 %v828_v55, %v827_v54  ;;  %v982_v63 = vpack.c.bf16 %v974_v57, %v973_v56 }
 0x104   : > { %v649_v6 = vpop.f32.mrf.mxu0 }
 0x105   : > { %v650_v8 = vadd.f32 %v2685_v7, %v649_v6 }
 0x107   : > { %865 = vmatmul.bf16.gmra.mxu2 %v833_v4  ;;  %1011 = vmatmul.bf16.gmra.mxu0 %v979_v5  ;;  %v689_v11 = vmax.f32 %v650_v8, 0.0 }
 0x10a   : > { %v669_v9 = vpop.f32.mrf.mxu2 }
 0x10b   : > { %v670_v18 = vadd.f32 %v2685_v7, %v669_v9 }
 0x10c   : > { %v651_v10 = vpop.f32.mrf.mxu0 }
 0x10d   : > { %v652_v12 = vadd.f32 %v2685_v7, %v651_v10  ;;  %v697_v25 = vmax.f32 %v670_v18, 0.0 }
 0x10f   : > { %v690_v13 = vmax.f32 %v652_v12, 0.0 }
 0x111   : > { %v705_v19 = vpack.c.bf16 %v690_v13, %v689_v11 }
 0x112   : > { %v671_v20 = vpop.f32.mrf.mxu2 }
 0x113   : > { %v672_v21 = vadd.f32 %v2685_v7, %v671_v20  ;;  %772 = vmatmul.bf16.vlgmr.msra.gmra.mxu1 %v705_v19 }
 0x114   : > { %v654_v24 = vpop.f32.mrf.mxu0 }
 0x115   : > { %v698_v26 = vmax.f32 %v672_v21, 0.0  ;;  %v655_v28 = vadd.f32 %v2685_v7, %v654_v24 }
 0x117   : > { %870 = vmatmul.bf16.gmra.mxu2 %v834_v22  ;;  %1016 = vmatmul.bf16.gmra.mxu0 %v980_v23  ;;  %v709_v27 = vpack.c.bf16 %v698_v26, %v697_v25  ;;  %v691_v31 = vmax.f32 %v655_v28, 0.0 }
 0x119   : > { %792 = vmatmul.bf16.vlgmr.msra.gmra.mxu3 %v709_v27 }
 0x11a   : > { %v674_v29 = vpop.f32.mrf.mxu2 }
 0x11b   : > { %v675_v38 = vadd.f32 %v2685_v7, %v674_v29 }
 0x11c   : > { %v656_v30 = vpop.f32.mrf.mxu0 }
 0x11d   : > { %v657_v32 = vadd.f32 %v2685_v7, %v656_v30  ;;  %v699_v45 = vmax.f32 %v675_v38, 0.0 }
 0x11f   : > { %v692_v33 = vmax.f32 %v657_v32, 0.0 }
 0x121   : > { %v706_v39 = vpack.c.bf16 %v692_v33, %v691_v31 }
 0x122   : > { %v676_v40 = vpop.f32.mrf.mxu2 }
 0x123   : > { %v677_v41 = vadd.f32 %v2685_v7, %v676_v40  ;;  %777 = vmatmul.bf16.gmra.mxu1 %v706_v39 }
 0x124   : > { %v659_v44 = vpop.f32.mrf.mxu0 }
 0x125   : > { %v700_v46 = vmax.f32 %v677_v41, 0.0  ;;  %v660_v48 = vadd.f32 %v2685_v7, %v659_v44 }
 0x127   : > { %875 = vmatmul.bf16.gmra.mxu2 %v835_v42  ;;  %1021 = vmatmul.bf16.gmra.mxu0 %v981_v43  ;;  %v710_v47 = vpack.c.bf16 %v700_v46, %v699_v45  ;;  %v693_v51 = vmax.f32 %v660_v48, 0.0 }
 0x129   : > { %797 = vmatmul.bf16.gmra.mxu3 %v710_v47 }
 0x12a   : > { %v679_v49 = vpop.f32.mrf.mxu2 }
 0x12b   : > { %v680_v58 = vadd.f32 %v2685_v7, %v679_v49 }
 0x12c   : > { %v661_v50 = vpop.f32.mrf.mxu0 }
 0x12d   : > { %v662_v52 = vadd.f32 %v2685_v7, %v661_v50  ;;  %v701_v1 = vmax.f32 %v680_v58, 0.0 }
 0x12f   : > { %v694_v53 = vmax.f32 %v662_v52, 0.0 }
 0x131   : > { %v707_v59 = vpack.c.bf16 %v694_v53, %v693_v51 }
 0x132   : > { %v681_v60 = vpop.f32.mrf.mxu2 }
 0x133   : > { %v682_v61 = vadd.f32 %v2685_v7, %v681_v60  ;;  %782 = vmatmul.bf16.gmra.mxu1 %v707_v59 }
 0x134   : > { %v664_v0 = vpop.f32.mrf.mxu0 }
 0x135   : > { %v702_v2 = vmax.f32 %v682_v61, 0.0  ;;  %v665_v4 = vadd.f32 %v2685_v7, %v664_v0 }
 0x137   : > { %880 = vmatmul.bf16.gmra.mxu2 %v836_v62  ;;  %1026 = vmatmul.bf16.gmra.mxu0 %v982_v63  ;;  %v711_v3 = vpack.c.bf16 %v702_v2, %v701_v1  ;;  %v695_v8 = vmax.f32 %v665_v4, 0.0 }
 0x139   : > { %802 = vmatmul.bf16.gmra.mxu3 %v711_v3 }
 0x13a   : > { %v684_v5 = vpop.f32.mrf.mxu2 }
 0x13b   : > { %v685_v11 = vadd.f32 %v2685_v7, %v684_v5 }
 0x13c   : > { %v666_v6 = vpop.f32.mrf.mxu0 }
 0x13d   : > { %v667_v9 = vadd.f32 %v2685_v7, %v666_v6  ;;  %v703_v16 = vmax.f32 %v685_v11, 0.0 }
 0x13f   : > { %v696_v10 = vmax.f32 %v667_v9, 0.0 }
 0x141   : > { %v708_v12 = vpack.c.bf16 %v696_v10, %v695_v8 }
 0x142   : > { %v686_v13 = vpop.f32.mrf.mxu2 }
 0x143   : > { %v687_v14 = vadd.f32 %v2685_v7, %v686_v13  ;;  %787 = vmatmul.bf16.gmra.mxu1 %v708_v12 }
 0x144   : > { %v992_v15 = vpop.f32.mrf.mxu0 }
 0x145   : > { %v704_v17 = vmax.f32 %v687_v14, 0.0  ;;  %v993_v19 = vadd.f32 %v2685_v7, %v992_v15 }
 0x147   : > { %v712_v18 = vpack.c.bf16 %v704_v17, %v703_v16  ;;  %v1032_v22 = vmax.f32 %v993_v19, 0.0  ;;  %v2736_v17 = vld [vmem:[%s3127_s6] ss:$0 sm:$0xff] }
 0x149   : > { %807 = vmatmul.bf16.gmra.mxu3 %v712_v18 }
 0x14a   : > { %v846_v20 = vpop.f32.mrf.mxu2 }
 0x14b   : > { %v847_v25 = vadd.f32 %v2685_v7, %v846_v20 }
 0x14c   : > { %v994_v21 = vpop.f32.mrf.mxu0 }
 0x14d   : > { %v995_v23 = vadd.f32 %v2685_v7, %v994_v21  ;;  %v886_v30 = vmax.f32 %v847_v25, 0.0 }
 0x14f   : > { %v1033_v24 = vmax.f32 %v995_v23, 0.0 }
 0x151   : > { %v1048_v26 = vpack.c.bf16 %v1033_v24, %v1032_v22 }
 0x152   : > { %v848_v27 = vpop.f32.mrf.mxu2 }
 0x153   : > { %v849_v28 = vadd.f32 %v2685_v7, %v848_v27  ;;  %1064 = vmatmul.bf16.vlgmr.msrb.gmra.mxu1 %v1048_v26 }
 0x154   : > { %v997_v29 = vpop.f32.mrf.mxu0 }
 0x155   : > { %v887_v31 = vmax.f32 %v849_v28, 0.0  ;;  %v998_v33 = vadd.f32 %v2685_v7, %v997_v29 }
 0x157   : > { %v902_v32 = vpack.c.bf16 %v887_v31, %v886_v30  ;;  %v1034_v36 = vmax.f32 %v998_v33, 0.0 }
 0x159   : > { %918 = vmatmul.bf16.vlgmr.msrb.gmra.mxu3 %v902_v32 }
 0x15a   : > { %v851_v34 = vpop.f32.mrf.mxu2 }
 0x15b   : > { %v852_v39 = vadd.f32 %v2685_v7, %v851_v34 }
 0x15c   : > { %v999_v35 = vpop.f32.mrf.mxu0 }
 0x15d   : > { %v1000_v37 = vadd.f32 %v2685_v7, %v999_v35  ;;  %v888_v44 = vmax.f32 %v852_v39, 0.0 }
 0x15f   : > { %v1035_v38 = vmax.f32 %v1000_v37, 0.0 }
 0x161   : > { %v1049_v40 = vpack.c.bf16 %v1035_v38, %v1034_v36 }
 0x162   : > { %v853_v41 = vpop.f32.mrf.mxu2 }
 0x163   : > { %v854_v42 = vadd.f32 %v2685_v7, %v853_v41  ;;  %1069 = vmatmul.bf16.gmra.mxu1 %v1049_v40 }
 0x164   : > { %v1002_v43 = vpop.f32.mrf.mxu0 }
 0x165   : > { %v889_v45 = vmax.f32 %v854_v42, 0.0  ;;  %v1003_v47 = vadd.f32 %v2685_v7, %v1002_v43 }
 0x167   : > { %v903_v46 = vpack.c.bf16 %v889_v45, %v888_v44  ;;  %v1036_v50 = vmax.f32 %v1003_v47, 0.0 }
 0x169   : > { %923 = vmatmul.bf16.gmra.mxu3 %v903_v46 }
 0x16a   : > { %v856_v48 = vpop.f32.mrf.mxu2 }
 0x16b   : > { %v857_v53 = vadd.f32 %v2685_v7, %v856_v48 }
 0x16c   : > { %v1004_v49 = vpop.f32.mrf.mxu0 }
 0x16d   : > { %v1005_v51 = vadd.f32 %v2685_v7, %v1004_v49  ;;  %v890_v58 = vmax.f32 %v857_v53, 0.0 }
 0x16f   : > { %v1037_v52 = vmax.f32 %v1005_v51, 0.0 }
 0x171   : > { %v1050_v54 = vpack.c.bf16 %v1037_v52, %v1036_v50 }
 0x172   : > { %v858_v55 = vpop.f32.mrf.mxu2 }
 0x173   : > { %v859_v56 = vadd.f32 %v2685_v7, %v858_v55  ;;  %1074 = vmatmul.bf16.gmra.mxu1 %v1050_v54 }
 0x174   : > { %v1007_v57 = vpop.f32.mrf.mxu0 }
 0x175   : > { %v891_v59 = vmax.f32 %v859_v56, 0.0  ;;  %v1008_v61 = vadd.f32 %v2685_v7, %v1007_v57 }
 0x177   : > { %v904_v60 = vpack.c.bf16 %v891_v59, %v890_v58  ;;  %v1038_v0 = vmax.f32 %v1008_v61, 0.0 }
 0x179   : > { %928 = vmatmul.bf16.gmra.mxu3 %v904_v60 }
 0x17a   : > { %v861_v62 = vpop.f32.mrf.mxu2 }
 0x17b   : > { %v862_v3 = vadd.f32 %v2685_v7, %v861_v62 }
 0x17c   : > { %v1009_v63 = vpop.f32.mrf.mxu0 }
 0x17d   : > { %v1010_v1 = vadd.f32 %v2685_v7, %v1009_v63  ;;  %v892_v9 = vmax.f32 %v862_v3, 0.0 }
 0x17f   : > { %v1039_v2 = vmax.f32 %v1010_v1, 0.0 }
 0x181   : > { %v1051_v4 = vpack.c.bf16 %v1039_v2, %v1038_v0 }
 0x182   : > { %v863_v5 = vpop.f32.mrf.mxu2 }
 0x183   : > { %v864_v6 = vadd.f32 %v2685_v7, %v863_v5  ;;  %1079 = vmatmul.bf16.gmra.mxu1 %v1051_v4 }
 0x184   : > { %v1012_v8 = vpop.f32.mrf.mxu0 }
 0x185   : > { %v893_v10 = vmax.f32 %v864_v6, 0.0  ;;  %v1013_v12 = vadd.f32 %v2685_v7, %v1012_v8 }
 0x187   : > { %v905_v11 = vpack.c.bf16 %v893_v10, %v892_v9  ;;  %v1040_v15 = vmax.f32 %v1013_v12, 0.0 }
 0x189   : > { %933 = vmatmul.bf16.gmra.mxu3 %v905_v11 }
 0x18a   : > { %v866_v13 = vpop.f32.mrf.mxu2 }
 0x18b   : > { %v867_v20 = vadd.f32 %v2685_v7, %v866_v13 }
 0x18c   : > { %v1014_v14 = vpop.f32.mrf.mxu0 }
 0x18d   : > { %v1015_v16 = vadd.f32 %v2685_v7, %v1014_v14  ;;  %v894_v26 = vmax.f32 %v867_v20, 0.0 }
 0x18f   : > { %v1041_v18 = vmax.f32 %v1015_v16, 0.0 }
 0x190   : > { %v773_v19 = vpop.f32.mrf.mxu1 }
 0x191   : > { %v2740_v21 = vadd.f32 %v2736_v17, %v773_v19  ;;  %v1052_v22 = vpack.c.bf16 %v1041_v18, %v1040_v15 }
 0x192   : > { %v868_v23 = vpop.f32.mrf.mxu2 }
 0x193   : > { %1105 = vst [vmem:[%s2743_s28] sm:$0xff] %v2740_v21  ;;  %v869_v24 = vadd.f32 %v2685_v7, %v868_v23  ;;  %1084 = vmatmul.bf16.gmra.mxu1 %v1052_v22 }
 0x194   : > { %v1017_v25 = vpop.f32.mrf.mxu0 }
 0x195   : > { %v895_v27 = vmax.f32 %v869_v24, 0.0  ;;  %v1018_v30 = vadd.f32 %v2685_v7, %v1017_v25 }
 0x197   : > { %v906_v28 = vpack.c.bf16 %v895_v27, %v894_v26  ;;  %v1042_v35 = vmax.f32 %v1018_v30, 0.0 }
 0x198   : > { %v775_v29 = vpop.f32.mrf.mxu1 }
 0x199   : > { %v2750_v31 = vadd.f32 %v2736_v17, %v775_v29  ;;  %938 = vmatmul.bf16.gmra.mxu3 %v906_v28 }
 0x19a   : > { %v871_v32 = vpop.f32.mrf.mxu2 }
 0x19b   : > { %1106 = vst [vmem:[%s2743_s28 + $0x8] sm:$0xff] %v2750_v31  ;;  %v872_v40 = vadd.f32 %v2685_v7, %v871_v32 }
 0x19c   : > { %v793_v33 = vpop.f32.mrf.mxu3  ;;  %v1019_v34 = vpop.f32.mrf.mxu0 }
 0x19d   : > { %v2755_v36 = vadd.f32 %v2736_v17, %v793_v33  ;;  %v1020_v37 = vadd.f32 %v2685_v7, %v1019_v34  ;;  %v896_v47 = vmax.f32 %v872_v40, 0.0 }
 0x19f   : > { %1113 = vst [vmem:[%s2743_s28 + $0x40] sm:$0xff] %v2755_v36  ;;  %v1043_v38 = vmax.f32 %v1020_v37, 0.0 }
 0x1a0   : > { %v778_v39 = vpop.f32.mrf.mxu1 }
 0x1a1   : > { %v2762_v41 = vadd.f32 %v2736_v17, %v778_v39  ;;  %v1053_v42 = vpack.c.bf16 %v1043_v38, %v1042_v35 }
 0x1a2   : > { %v873_v43 = vpop.f32.mrf.mxu2 }
 0x1a3   : > { %1107 = vst [vmem:[%s2743_s28 + $0x10] sm:$0xff] %v2762_v41  ;;  %v874_v44 = vadd.f32 %v2685_v7, %v873_v43  ;;  %1089 = vmatmul.bf16.gmra.mxu1 %v1053_v42 }
 0x1a4   : > { %v795_v45 = vpop.f32.mrf.mxu3  ;;  %v1022_v46 = vpop.f32.mrf.mxu0 }
 0x1a5   : > { %v897_v48 = vmax.f32 %v874_v44, 0.0  ;;  %v2768_v49 = vadd.f32 %v2736_v17, %v795_v45  ;;  %v1023_v52 = vadd.f32 %v2685_v7, %v1022_v46 }
 0x1a7   : > { %1114 = vst [vmem:[%s2743_s28 + $0x48] sm:$0xff] %v2768_v49  ;;  %v907_v50 = vpack.c.bf16 %v897_v48, %v896_v47  ;;  %v1044_v57 = vmax.f32 %v1023_v52, 0.0 }
 0x1a8   : > { %v780_v51 = vpop.f32.mrf.mxu1 }
 0x1a9   : > { %v2774_v53 = vadd.f32 %v2736_v17, %v780_v51  ;;  %943 = vmatmul.bf16.gmra.mxu3 %v907_v50 }
 0x1aa   : > { %v876_v54 = vpop.f32.mrf.mxu2 }
 0x1ab   : > { %1108 = vst [vmem:[%s2743_s28 + $0x18] sm:$0xff] %v2774_v53  ;;  %v877_v62 = vadd.f32 %v2685_v7, %v876_v54 }
 0x1ac   : > { %v798_v55 = vpop.f32.mrf.mxu3  ;;  %v1024_v56 = vpop.f32.mrf.mxu0 }
 0x1ad   : > { %v2779_v58 = vadd.f32 %v2736_v17, %v798_v55  ;;  %v1025_v59 = vadd.f32 %v2685_v7, %v1024_v56  ;;  %v898_v5 = vmax.f32 %v877_v62, 0.0 }
 0x1af   : > { %1115 = vst [vmem:[%s2743_s28 + $0x50] sm:$0xff] %v2779_v58  ;;  %v1045_v60 = vmax.f32 %v1025_v59, 0.0 }
 0x1b0   : > { %v783_v61 = vpop.f32.mrf.mxu1 }
 0x1b1   : > { %v2786_v63 = vadd.f32 %v2736_v17, %v783_v61  ;;  %v1054_v0 = vpack.c.bf16 %v1045_v60, %v1044_v57 }
 0x1b2   : > { %v878_v1 = vpop.f32.mrf.mxu2 }
 0x1b3   : > { %1109 = vst [vmem:[%s2743_s28 + $0x20] sm:$0xff] %v2786_v63  ;;  %v879_v2 = vadd.f32 %v2685_v7, %v878_v1  ;;  %1094 = vmatmul.bf16.gmra.mxu1 %v1054_v0 }
 0x1b4   : > { %v800_v3 = vpop.f32.mrf.mxu3  ;;  %v1027_v4 = vpop.f32.mrf.mxu0 }
 0x1b5   : > { %v899_v6 = vmax.f32 %v879_v2, 0.0  ;;  %v2792_v8 = vadd.f32 %v2736_v17, %v800_v3  ;;  %v1028_v11 = vadd.f32 %v2685_v7, %v1027_v4 }
 0x1b7   : > { %1116 = vst [vmem:[%s2743_s28 + $0x58] sm:$0xff] %v2792_v8  ;;  %v908_v9 = vpack.c.bf16 %v899_v6, %v898_v5  ;;  %v1046_v16 = vmax.f32 %v1028_v11, 0.0 }
 0x1b8   : > { %v785_v10 = vpop.f32.mrf.mxu1 }
 0x1b9   : > { %v2798_v12 = vadd.f32 %v2736_v17, %v785_v10  ;;  %948 = vmatmul.bf16.gmra.mxu3 %v908_v9 }
 0x1ba   : > { %v881_v13 = vpop.f32.mrf.mxu2 }
 0x1bb   : > { %1110 = vst [vmem:[%s2743_s28 + $0x28] sm:$0xff] %v2798_v12  ;;  %v882_v23 = vadd.f32 %v2685_v7, %v881_v13 }
 0x1bc   : > { %v803_v14 = vpop.f32.mrf.mxu3  ;;  %v1029_v15 = vpop.f32.mrf.mxu0 }
 0x1bd   : > { %v2803_v18 = vadd.f32 %v2736_v17, %v803_v14  ;;  %v1030_v19 = vadd.f32 %v2685_v7, %v1029_v15  ;;  %v900_v29 = vmax.f32 %v882_v23, 0.0 }
 0x1bf   : > { %1117 = vst [vmem:[%s2743_s28 + $0x60] sm:$0xff] %v2803_v18  ;;  %v1047_v20 = vmax.f32 %v1030_v19, 0.0 }
 0x1c0   : > { %v788_v22 = vpop.f32.mrf.mxu1 }
 0x1c1   : > { %v2810_v24 = vadd.f32 %v2736_v17, %v788_v22  ;;  %v1055_v25 = vpack.c.bf16 %v1047_v20, %v1046_v16 }
 0x1c2   : > { %v883_v26 = vpop.f32.mrf.mxu2 }
 0x1c3   : > { %1111 = vst [vmem:[%s2743_s28 + $0x30] sm:$0xff] %v2810_v24  ;;  %v884_v27 = vadd.f32 %v2685_v7, %v883_v26  ;;  %1099 = vmatmul.bf16.gmra.mxu1 %v1055_v25 }
 0x1c4   : > { %v805_v28 = vpop.f32.mrf.mxu3 }
 0x1c5   : > { %v901_v30 = vmax.f32 %v884_v27, 0.0  ;;  %v2816_v32 = vadd.f32 %v2736_v17, %v805_v28 }
 0x1c7   : > { %1118 = vst [vmem:[%s2743_s28 + $0x68] sm:$0xff] %v2816_v32  ;;  %v909_v33 = vpack.c.bf16 %v901_v30, %v900_v29 }
 0x1c8   : > { %v790_v34 = vpop.f32.mrf.mxu1 }
 0x1c9   : > { %v2821_v35 = vadd.f32 %v2736_v17, %v790_v34  ;;  %953 = vmatmul.bf16.gmra.mxu3 %v909_v33 }
 0x1cb   : > { %1112 = vst [vmem:[%s2743_s28 + $0x38] sm:$0xff] %v2821_v35 }
 0x1cc   : > { %v808_v7 = vpop.f32.mrf.mxu3 }
 0x1cd   : > { %v2826_v37 = vadd.f32 %v2736_v17, %v808_v7 }
 0x1cf   : > { %1119 = vst [vmem:[%s2743_s28 + $0x70] sm:$0xff] %v2826_v37 }
 0x1d0   : > { %v1065_v38 = vpop.f32.mrf.mxu1 }
 0x1d1   : > { %v1066_v39 = vadd.f32 %v2736_v17, %v1065_v38 }
 0x1d3   : > { %1137 = vst [vmem:[%s2832_s13] sm:$0xff] %v1066_v39  ;;  %v1185_v40 = vsub.f32 %v2740_v21, %v1066_v39 }
 0x1d4   : > { %v810_v42 = vpop.f32.mrf.mxu3 }
 0x1d5   : > { %v2837_v43 = vadd.f32 %v2736_v17, %v810_v42  ;;  %v1201_v44 = vadd.f32 1e-06, %v1185_v40 }
 0x1d7   : > { %1120 = vst [vmem:[%s2743_s28 + $0x78] sm:$0xff] %v2837_v43  ;;  %v1265_v45 = vmul.f32 %v1201_v44, %v1201_v44 }
 0x1d8   : > { %v1067_v46 = vpop.f32.mrf.mxu1 }
 0x1d9   : > { %v1068_v47 = vadd.f32 %v2736_v17, %v1067_v46  ;;  %1281 = vadd.xlane.f32.xlu1 %v1265_v45 }
 0x1db   : > { %1138 = vst [vmem:[%s2832_s13 + $0x8] sm:$0xff] %v1068_v47  ;;  %v1186_v48 = vsub.f32 %v2750_v31, %v1068_v47 }
 0x1dc   : > { %v919_v50 = vpop.f32.mrf.mxu3 }
 0x1dd   : > { %v920_v51 = vadd.f32 %v2736_v17, %v919_v50  ;;  %v1202_v52 = vadd.f32 1e-06, %v1186_v48 }
 0x1df   : > { %1121 = vst [vmem:[%s2846_s20] sm:$0xff] %v920_v51  ;;  %v1266_v54 = vmul.f32 %v1202_v52, %v1202_v52  ;;  %v1153_v55 = vsub.f32 %v2740_v21, %v920_v51 }
 0x1e0   : > { %v1070_v56 = vpop.f32.mrf.mxu1 }
 0x1e1   : > { %v1071_v57 = vadd.f32 %v2736_v17, %v1070_v56  ;;  %1283 = vadd.xlane.f32.xlu2 %v1266_v54  ;;  %v1169_v59 = vadd.f32 1e-06, %v1153_v55 }
 0x1e3   : > { %1139 = vst [vmem:[%s2832_s13 + $0x10] sm:$0xff] %v1071_v57  ;;  %v1217_v60 = vmul.f32 %v1169_v59, %v1169_v59  ;;  %v1187_v61 = vsub.f32 %v2762_v41, %v1071_v57 }
 0x1e4   : > { %v921_v62 = vpop.f32.mrf.mxu3 }
 0x1e5   : > { %v922_v0 = vadd.f32 %v2736_v17, %v921_v62  ;;  %1233 = vadd.xlane.f32.xlu0 %v1217_v60  ;;  %v1203_v1 = vadd.f32 1e-06, %v1187_v61 }
 0x1e7   : > { %1122 = vst [vmem:[%s2846_s20 + $0x8] sm:$0xff] %v922_v0  ;;  %v1267_v21 = vmul.f32 %v1203_v1, %v1203_v1  ;;  %v1154_v5 = vsub.f32 %v2750_v31, %v922_v0 }
 0x1e8   : > { %v1072_v2 = vpop.f32.mrf.mxu1 }
 0x1e9   : > { %v1073_v3 = vadd.f32 %v2736_v17, %v1072_v2  ;;  %v1170_v13 = vadd.f32 1e-06, %v1154_v5 }
 0x1eb   : > { %1140 = vst [vmem:[%s2832_s13 + $0x18] sm:$0xff] %v1073_v3  ;;  %v1188_v4 = vsub.f32 %v2774_v53, %v1073_v3  ;;  %v1218_v19 = vmul.f32 %v1170_v13, %v1170_v13 }
 0x1ec   : > { %v924_v6 = vpop.f32.mrf.mxu3 }
 0x1ed   : > { %v925_v9 = vadd.f32 %v2736_v17, %v924_v6  ;;  %1285 = vadd.xlane.f32.xlu0 %v1267_v21  ;;  %v1204_v10 = vadd.f32 1e-06, %v1188_v4 }
 0x1ef   : > { %1123 = vst [vmem:[%s2846_s20 + $0x10] sm:$0xff] %v925_v9  ;;  %v1268_v11 = vmul.f32 %v1204_v10, %v1204_v10  ;;  %v1155_v14 = vsub.f32 %v2762_v41, %v925_v9 }
 0x1f0   : > { %v1075_v15 = vpop.f32.mrf.mxu1 }
 0x1f1   : > { %v1076_v16 = vadd.f32 %v2736_v17, %v1075_v15  ;;  %1287 = vadd.xlane.f32.xlu1 %v1268_v11  ;;  %v1171_v20 = vadd.f32 1e-06, %v1155_v14 }
 0x1f3   : > { %1141 = vst [vmem:[%s2832_s13 + $0x20] sm:$0xff] %v1076_v16  ;;  %v1189_v31 = vsub.f32 %v2786_v63, %v1076_v16  ;;  %v1219_v27 = vmul.f32 %v1171_v20, %v1171_v20 }
 0x1f4   : > { %v926_v22 = vpop.f32.mrf.mxu3 }
 0x1f5   : > { %v927_v23 = vadd.f32 %v2736_v17, %v926_v22  ;;  %1235 = vadd.xlane.f32.xlu0 %v1218_v19  ;;  %v1205_v25 = vadd.f32 1e-06, %v1189_v31 }
 0x1f7   : > { %1124 = vst [vmem:[%s2846_s20 + $0x18] sm:$0xff] %v927_v23  ;;  %v1269_v26 = vmul.f32 %v1205_v25, %v1205_v25  ;;  %v1156_v41 = vsub.f32 %v2774_v53, %v927_v23 }
 0x1f8   : > { %v1077_v28 = vpop.f32.mrf.mxu1 }
 0x1f9   : > { %v1078_v29 = vadd.f32 %v2736_v17, %v1077_v28  ;;  %1289 = vadd.xlane.f32.xlu2 %v1269_v26  ;;  %1237 = vadd.xlane.f32.xlu1 %v1219_v27  ;;  %v1172_v30 = vadd.f32 1e-06, %v1156_v41 }
 0x1fb   : > { %1142 = vst [vmem:[%s2832_s13 + $0x28] sm:$0xff] %v1078_v29  ;;  %v1190_v33 = vsub.f32 %v2798_v12, %v1078_v29  ;;  %v1220_v39 = vmul.f32 %v1172_v30, %v1172_v30 }
 0x1fc   : > { %v929_v34 = vpop.f32.mrf.mxu3 }
 0x1fd   : > { %v930_v7 = vadd.f32 %v2736_v17, %v929_v34  ;;  %v1206_v38 = vadd.f32 1e-06, %v1190_v33 }
 0x1ff   : > { %1125 = vst [vmem:[%s2846_s20 + $0x20] sm:$0xff] %v930_v7  ;;  %v1270_v40 = vmul.f32 %v1206_v38, %v1206_v38  ;;  %v1157_v53 = vsub.f32 %v2786_v63, %v930_v7 }
 0x200   : > { %v1080_v42 = vpop.f32.mrf.mxu1 }
 0x201   : > { %v1081_v44 = vadd.f32 %v2736_v17, %v1080_v42  ;;  %1239 = vadd.xlane.f32.xlu1 %v1220_v39  ;;  %1291 = vadd.xlane.f32.xlu0 %v1270_v40  ;;  %v1173_v45 = vadd.f32 1e-06, %v1157_v53 }
 0x203   : > { %1143 = vst [vmem:[%s2832_s13 + $0x30] sm:$0xff] %v1081_v44  ;;  %v1221_v46 = vmul.f32 %v1173_v45, %v1173_v45  ;;  %v1191_v47 = vsub.f32 %v2810_v24, %v1081_v44 }
 0x204   : > { %v931_v48 = vpop.f32.mrf.mxu3 }
 0x205   : > { %v932_v50 = vadd.f32 %v2736_v17, %v931_v48  ;;  %1241 = vadd.xlane.f32.xlu2 %v1221_v46  ;;  %v1207_v51 = vadd.f32 1e-06, %v1191_v47 }
 0x207   : > { %1126 = vst [vmem:[%s2846_s20 + $0x28] sm:$0xff] %v932_v50  ;;  %v1271_v52 = vmul.f32 %v1207_v51, %v1207_v51  ;;  %v1158_v63 = vsub.f32 %v2798_v12, %v932_v50 }
 0x208   : > { %v1082_v54 = vpop.f32.mrf.mxu1 }
 0x209   : > { %v1083_v55 = vadd.f32 %v2736_v17, %v1082_v54  ;;  %1293 = vadd.xlane.f32.xlu1 %v1271_v52  ;;  %v1174_v56 = vadd.f32 1e-06, %v1158_v63 }
 0x20b   : > { %1144 = vst [vmem:[%s2832_s13 + $0x38] sm:$0xff] %v1083_v55  ;;  %v1222_v57 = vmul.f32 %v1174_v56, %v1174_v56  ;;  %v1192_v59 = vsub.f32 %v2821_v35, %v1083_v55 }
 0x20c   : > { %v934_v60 = vpop.f32.mrf.mxu3 }
 0x20d   : > { %v935_v61 = vadd.f32 %v2736_v17, %v934_v60  ;;  %1243 = vadd.xlane.f32.xlu2 %v1222_v57  ;;  %v1208_v62 = vadd.f32 1e-06, %v1192_v59 }
 0x20f   : > { %1127 = vst [vmem:[%s2846_s20 + $0x30] sm:$0xff] %v935_v61  ;;  %v1159_v0 = vsub.f32 %v2810_v24, %v935_v61  ;;  %v1272_v3 = vmul.f32 %v1208_v62, %v1208_v62 }
 0x210   : > { %v1085_v12 = vpop.f32.mrf.mxu1 }
 0x211   : > { %v1086_v1 = vadd.f32 %v2736_v17, %v1085_v12  ;;  %v1175_v2 = vadd.f32 1e-06, %v1159_v0 }
 0x213   : > { %1145 = vst [vmem:[%s2832_s13 + $0x40] sm:$0xff] %v1086_v1  ;;  %v1223_v21 = vmul.f32 %v1175_v2, %v1175_v2  ;;  %v1193_v4 = vsub.f32 %v2755_v36, %v1086_v1 }
 0x214   : > { %v936_v5 = vpop.f32.mrf.mxu3 }
 0x215   : > { %v937_v6 = vadd.f32 %v2736_v17, %v936_v5  ;;  %1295 = vadd.xlane.f32.xlu2 %v1272_v3  ;;  %1245 = vadd.xlane.f32.xlu0 %v1223_v21  ;;  %v1209_v24 = vadd.f32 1e-06, %v1193_v4 }
 0x217   : > { %1128 = vst [vmem:[%s2846_s20 + $0x38] sm:$0xff] %v937_v6  ;;  %v1160_v9 = vsub.f32 %v2821_v35, %v937_v6  ;;  %v1273_v15 = vmul.f32 %v1209_v24, %v1209_v24 }
 0x218   : > { %v1087_v10 = vpop.f32.mrf.mxu1 }
 0x219   : > { %v1088_v11 = vadd.f32 %v2736_v17, %v1087_v10  ;;  %v1176_v13 = vadd.f32 1e-06, %v1160_v9 }
 0x21b   : > { %1146 = vst [vmem:[%s2832_s13 + $0x48] sm:$0xff] %v1088_v11  ;;  %v1224_v14 = vmul.f32 %v1176_v13, %v1176_v13  ;;  %v1194_v16 = vsub.f32 %v2768_v49, %v1088_v11 }
 0x21c   : > { %v939_v19 = vpop.f32.mrf.mxu3 }
 0x21d   : > { %v940_v31 = vadd.f32 %v2736_v17, %v939_v19  ;;  %1247 = vadd.xlane.f32.xlu1 %v1224_v14  ;;  %1297 = vadd.xlane.f32.xlu0 %v1273_v15  ;;  %v1210_v20 = vadd.f32 1e-06, %v1194_v16 }
 0x21f   : > { %1129 = vst [vmem:[%s2846_s20 + $0x40] sm:$0xff] %v940_v31  ;;  %v1161_v35 = vsub.f32 %v2755_v36, %v940_v31  ;;  %v1274_v27 = vmul.f32 %v1210_v20, %v1210_v20 }
 0x220   : > { %v1090_v22 = vpop.f32.mrf.mxu1 }
 0x221   : > { %v1091_v23 = vadd.f32 %v2736_v17, %v1090_v22  ;;  %v1177_v25 = vadd.f32 1e-06, %v1161_v35 }
 0x223   : > { %1147 = vst [vmem:[%s2832_s13 + $0x50] sm:$0xff] %v1091_v23  ;;  %v1225_v26 = vmul.f32 %v1177_v25, %v1177_v25  ;;  %v1195_v41 = vsub.f32 %v2779_v58, %v1091_v23 }
 0x224   : > { %v941_v28 = vpop.f32.mrf.mxu3 }
 0x225   : > { %v942_v29 = vadd.f32 %v2736_v17, %v941_v28  ;;  %1249 = vadd.xlane.f32.xlu2 %v1225_v26  ;;  %1299 = vadd.xlane.f32.xlu1 %v1274_v27  ;;  %v1211_v30 = vadd.f32 1e-06, %v1195_v41 }
 0x227   : > { %1130 = vst [vmem:[%s2846_s20 + $0x48] sm:$0xff] %v942_v29  ;;  %v1162_v36 = vsub.f32 %v2768_v49, %v942_v29  ;;  %v1275_v38 = vmul.f32 %v1211_v30, %v1211_v30 }
 0x228   : > { %v1092_v33 = vpop.f32.mrf.mxu1 }
 0x229   : > { %v1093_v34 = vadd.f32 %v2736_v17, %v1092_v33  ;;  %v1178_v7 = vadd.f32 1e-06, %v1162_v36 }
 0x22b   : > { %1148 = vst [vmem:[%s2832_s13 + $0x58] sm:$0xff] %v1093_v34  ;;  %v1226_v39 = vmul.f32 %v1178_v7, %v1178_v7  ;;  %v1196_v40 = vsub.f32 %v2792_v8, %v1093_v34 }
 0x22c   : > { %v944_v53 = vpop.f32.mrf.mxu3 }
 0x22d   : > { %v945_v42 = vadd.f32 %v2736_v17, %v944_v53  ;;  %1301 = vadd.xlane.f32.xlu2 %v1275_v38  ;;  %1251 = vadd.xlane.f32.xlu0 %v1226_v39  ;;  %v1212_v49 = vadd.f32 1e-06, %v1196_v40 }
 0x22f   : > { %1131 = vst [vmem:[%s2846_s20 + $0x50] sm:$0xff] %v945_v42  ;;  %v1163_v44 = vsub.f32 %v2779_v58, %v945_v42  ;;  %v1276_v50 = vmul.f32 %v1212_v49, %v1212_v49 }
 0x230   : > { %v1095_v45 = vpop.f32.mrf.mxu1 }
 0x231   : > { %v1096_v46 = vadd.f32 %v2736_v17, %v1095_v45  ;;  %v1179_v47 = vadd.f32 1e-06, %v1163_v44 }
 0x233   : > { %1149 = vst [vmem:[%s2832_s13 + $0x60] sm:$0xff] %v1096_v46  ;;  %v1227_v48 = vmul.f32 %v1179_v47, %v1179_v47  ;;  %v1197_v51 = vsub.f32 %v2803_v18, %v1096_v46 }
 0x234   : > { %v946_v52 = vpop.f32.mrf.mxu3 }
 0x235   : > { %v947_v63 = vadd.f32 %v2736_v17, %v946_v52  ;;  %1253 = vadd.xlane.f32.xlu1 %v1227_v48  ;;  %1303 = vadd.xlane.f32.xlu0 %v1276_v50  ;;  %v1213_v54 = vadd.f32 1e-06, %v1197_v51 }
 0x237   : > { %1132 = vst [vmem:[%s2846_s20 + $0x58] sm:$0xff] %v947_v63  ;;  %v1164_v58 = vsub.f32 %v2792_v8, %v947_v63  ;;  %v1277_v60 = vmul.f32 %v1213_v54, %v1213_v54 }
 0x238   : > { %v1097_v55 = vpop.f32.mrf.mxu1 }
 0x239   : > { %v1098_v56 = vadd.f32 %v2736_v17, %v1097_v55  ;;  %v1180_v57 = vadd.f32 1e-06, %v1164_v58 }
 0x23b   : > { %1150 = vst [vmem:[%s2832_s13 + $0x68] sm:$0xff] %v1098_v56  ;;  %v1228_v59 = vmul.f32 %v1180_v57, %v1180_v57  ;;  %v1198_v31 = vsub.f32 %v2816_v32, %v1098_v56 }
 0x23c   : > { %v949_v61 = vpop.f32.mrf.mxu3 }
 0x23d   : > { %v950_v62 = vadd.f32 %v2736_v17, %v949_v61  ;;  %1255 = vadd.xlane.f32.xlu2 %v1228_v59  ;;  %1305 = vadd.xlane.f32.xlu1 %v1277_v60  ;;  %v1214_v22 = vadd.f32 1e-06, %v1198_v31 }
 0x23f   : > { %1133 = vst [vmem:[%s2846_s20 + $0x60] sm:$0xff] %v950_v62  ;;  %v1165_v0 = vsub.f32 %v2803_v18, %v950_v62  ;;  %v1278_v28 = vmul.f32 %v1214_v22, %v1214_v22 }
 0x240   : > { %v1100_v8 = vpop.f32.mrf.mxu1 }
 0x241   : > { %v1101_v12 = vadd.f32 %v2736_v17, %v1100_v8  ;;  %v1181_v1 = vadd.f32 1e-06, %v1165_v0 }
 0x243   : > { %1151 = vst [vmem:[%s2832_s13 + $0x70] sm:$0xff] %v1101_v12  ;;  %v1229_v2 = vmul.f32 %v1181_v1, %v1181_v1 }
 0x244   : > { %v951_v3 = vpop.f32.mrf.mxu3 }
 0x245   : > { %v952_v21 = vadd.f32 %v2736_v17, %v951_v3  ;;  %1257 = vadd.xlane.f32.xlu0 %v1229_v2 }
 0x247   : > { %1134 = vst [vmem:[%s2846_s20 + $0x68] sm:$0xff] %v952_v21  ;;  %v1166_v4 = vsub.f32 %v2816_v32, %v952_v21  ;;  %v1199_v32 = vsub.f32 %v2826_v37, %v1101_v12 }
 0x248   : > { %v1102_v5 = vpop.f32.mrf.mxu1 }
 0x249   : > { %v1103_v6 = vadd.f32 %v2736_v17, %v1102_v5  ;;  %v1182_v9 = vadd.f32 1e-06, %v1166_v4 }
 0x24b   : > { %1152 = vst [vmem:[%s2832_s13 + $0x78] sm:$0xff] %v1103_v6  ;;  %v1230_v18 = vmul.f32 %v1182_v9, %v1182_v9  ;;  %v1200_v24 = vsub.f32 %v2837_v43, %v1103_v6 }
 0x24c   : > { %v954_v10 = vpop.f32.mrf.mxu3  ;;  %v1282_v25 = vpop.xlane.xlu1 %1281 }
 0x24d   : > { %v955_v11 = vadd.f32 %v2736_v17, %v954_v10  ;;  %1259 = vadd.xlane.f32.xlu1 %v1230_v18  ;;  %v1216_v14 = vadd.f32 1e-06, %v1200_v24 }
 0x24f   : > { %1135 = vst [vmem:[%s2846_s20 + $0x70] sm:$0xff] %v955_v11  ;;  %v1167_v13 = vsub.f32 %v2826_v37, %v955_v11  ;;  %v1280_v19 = vmul.f32 %v1216_v14, %v1216_v14 }
 0x251   : > { %v1183_v15 = vadd.f32 1e-06, %v1167_v13 }
 0x253   : > { %v1231_v16 = vmul.f32 %v1183_v15, %v1183_v15 }
 0x254   : > { %v956_v35 = vpop.f32.mrf.mxu3  ;;  %v1284_v40 = vpop.xlane.xlu2 %1283 }
 0x255   : > { %v957_v20 = vadd.f32 %v2736_v17, %v956_v35  ;;  %1261 = vadd.xlane.f32.xlu2 %v1231_v16  ;;  %1311 = vadd.xlane.f32.xlu1 %v1280_v19  ;;  %v1215_v17 = vadd.f32 1e-06, %v1199_v32 }
 0x257   : > { %1136 = vst [vmem:[%s2846_s20 + $0x78] sm:$0xff] %v957_v20  ;;  %v1168_v23 = vsub.f32 %v2837_v43, %v957_v20  ;;  %v1279_v34 = vmul.f32 %v1215_v17, %v1215_v17  ;;  %s2260_s20 = sshra.s32 %s1591_s26, 4  ;;  %s2261_s20 = int_to_ptr.hbm [resolvable:$true] %s2260_s20 }
 0x258   : > { %v1234_v26 = vpop.xlane.xlu0 %1233  ;;  %s2262_s10 = scalar_lea.hbm %s2261_s20, 128  ;;  %p2267_p1 = scmp.lt.s32.totalorder %s2261_s20, %s3130_s9 }
 0x259   : > { %v1314_v27 = vsel %vm1313_vm0, %v1234_v26, %v1282_v25  ;;  %v1184_v41 = vadd.f32 1e-06, %v1168_v23  ;;  %p2263_p12 = scmp.ne.s32.totalorder %s2261_s20, %s2262_s10  ;;  %p2268_p11 = scmp.lt.s32.totalorder %s2266_s1, %s2262_s10 }
 0x25a   : > { %2064 = vrsqrt.f32 %v1314_v27  ;;  %vm1337_vm2 = vcmp.eq.f32.partialorder %v1314_v27, inf  ;;  %v1340_v49 = vand.u32 2147483648, %v1314_v27  ;;  %vm1339_vm3 = vcmp.eq.f32.partialorder %v1314_v27, 0.0 }
 0x25b   : > { %v1232_v29 = vmul.f32 %v1184_v41, %v1184_v41  ;;  %p2264_p3 = pnand %p2263_p12, %p2523_p7  ;;  %p2269_p2 = por %p2268_p11, %p2267_p1 }
 0x25d   : > { %1307 = vadd.xlane.f32.xlu2 %v1278_v28  ;;  %1263 = vadd.xlane.f32.xlu0 %v1232_v29  ;;  %p2265_p5 = pneg %p2264_p3 }
 0x25f   : > { %p2270_p10 = pnand %p2269_p2, %p2265_p5 }
 0x260   : > { %v2065_v30 = vpop.eup %2064  ;;  %v1286_v36 = vpop.xlane.xlu0 %1285 }
 0x261   : > { %v1331_v33 = vmul.f32 %v2065_v30, %v1314_v27 }
 0x263   : > { %v1332_v43 = vmul.f32 %v2065_v30, %v1331_v33 }
 0x264   : > { %v1288_v7 = vpop.xlane.xlu1 %1287 }
 0x265   : > { %v1333_v38 = vmul.f32 0.5, %v1332_v43  ;;  %1309 = vadd.xlane.f32.xlu0 %v1279_v34 }
 0x267   : > { %v1334_v39 = vsub.f32 1.5, %v1333_v38 }
 0x268   : > { %v1236_v53 = vpop.xlane.xlu0 %1235 }
 0x269   : > { %v1335_v37 = vmul.f32 %v2065_v30, %v1334_v39  ;;  %v2940_v42 = vsel %vm1313_vm0, %v1236_v53, %v1284_v40 }
 0x26a   : > { %2066 = vrsqrt.f32 %v2940_v42 }
 0x26b   : > { %v1336_v44 = vmul.f32 %v1335_v37, %v1314_v27 }
 0x26c   : > { %v1238_v45 = vpop.xlane.xlu1 %1237  ;;  %v1290_v51 = vpop.xlane.xlu2 %1289 }
 0x26d   : > { %v1338_v46 = vsel %vm1337_vm2, %v1314_v27, %v1336_v44  ;;  %v2956_v47 = vsel %vm1313_vm0, %v1238_v45, %v1286_v36 }
 0x26e   : > { %v1341_v48 = vsel %vm1339_vm3, %v1340_v49, %v1338_v46  ;;  %2068 = vrsqrt.f32 %v2956_v47 }
 0x26f   : > { %1523 = vst.msk [vmem:[%s2949_s5] sm:$0xff] %vm1522_vm1, %v1341_v48 }
 0x270   : > { %v2067_v50 = vpop.eup %2066 }
 0x271   : > { %v1343_v52 = vmul.f32 %v2067_v50, %v2940_v42 }
 0x272   : > { %2273 = shalt.err (!%p2270_p10)
}
 0x273   : > { %s2388_s17 = smov 128   ;;  %s2389_s8 = smov 8   ;;  %v1344_v63 = vmul.f32 %v2067_v50, %v1343_v52 }
 0x274   : > { %1984 = dma.vmem_to_hbm [thread:$0]  (%p2523_p7), %s1589_s29, 2048, %s1591_s26, %s2972_s12, %s2388_s17, %s2388_s17, %s2389_s8   ;;  %v2069_v58 = vpop.eup %2068  ;;  %v1240_v54 = vpop.xlane.xlu1 %1239 }
 0x275   : > { %s2988_s11 = sshll.u32 %s1604_s30, 4  ;;  %s3177_s20 = sld [smem:[#allocation29_spill]]  ;;  %v1345_v55 = vmul.f32 0.5, %v1344_v63  ;;  %v1355_v56 = vmul.f32 %v2069_v58, %v2956_v47  ;;  %v2998_v57 = vsel %vm1313_vm0, %v1240_v54, %v1288_v7  ;;  %s1608_s11 = int_to_ptr.hbm [resolvable:$true] %s2988_s11 }
 0x276   : > { %s1571_s27 = sshll.u32 %s2743_s28, 4  ;;  %2070 = vrsqrt.f32 %v2998_v57  ;;  %s1545_s29 = scalar_lea.sflag [#allocation4], %s2616_s18  ;;  %s1572_s27 = int_to_ptr.vmem [resolvable:$true] %s1571_s27 }
 0x27b   : > { %s1570_s10 = scalar_lea.hbm %s3177_s20, %s2944_s16  ;;  %s2294_s1 = scalar_lea.hbm %s3177_s20, 256 }
 0x27c   : > { %s1573_s22 = sshll.u32 %s1570_s10, 4  ;;  %s1574_s22 = int_to_ptr.hbm [resolvable:$true] %s1573_s22 }
 0x27d   : > { %s2288_s26 = sshra.s32 %s1574_s22, 4  ;;  %s2289_s26 = int_to_ptr.hbm [resolvable:$true] %s2288_s26 }
 0x27e   : > { %s2290_s30 = scalar_lea.hbm %s2289_s26, 128  ;;  %p2295_p9 = scmp.lt.s32.totalorder %s2289_s26, %s3177_s20 }
 0x27f   : > { %p2291_p13 = scmp.ne.s32.totalorder %s2289_s26, %s2290_s30  ;;  %p2296_p4 = scmp.lt.s32.totalorder %s2294_s1, %s2290_s30 }
 0x281   : > { %p2292_p0 = pnand %p2291_p13, %p2523_p7  ;;  %p2297_p12 = por %p2296_p4, %p2295_p9 }
 0x283   : > { %p2293_p8 = pneg %p2292_p0 }
 0x285   : > { %p2298_p3 = pnand %p2297_p12, %p2293_p8 }
 0x287   : > { %2301 = shalt.err (!%p2298_p3)
}
 0x288   : > { %1983 = dma.vmem_to_hbm [thread:$0]  (%p2523_p7), %s1572_s27, 2048, %s1574_s22, %s1545_s29, %s2388_s17, %s2388_s17, %s2389_s8   ;;  %v1346_v59 = vsub.f32 1.5, %v1345_v55  ;;  %v1356_v60 = vmul.f32 %v2069_v58, %v1355_v56  ;;  %v1242_v61 = vpop.xlane.xlu2 %1241 }
 0x289   : > { %s1605_s18 = sshll.u32 %s2832_s13, 4  ;;  %v3017_v8 = vsel %vm1313_vm0, %v1242_v61, %v1290_v51  ;;  %s2316_s25 = sshra.s32 %s1608_s11, 4  ;;  %s1606_s18 = int_to_ptr.vmem [resolvable:$true] %s1605_s18  ;;  %s2317_s25 = int_to_ptr.hbm [resolvable:$true] %s2316_s25 }
 0x28a   : > { %v1347_v62 = vmul.f32 %v2067_v50, %v1346_v59  ;;  %v1357_v0 = vmul.f32 0.5, %v1356_v60  ;;  %s2318_s19 = scalar_lea.hbm %s2317_s25, 128  ;;  %s2322_s22 = scalar_lea.hbm %s3176_s3, 256 }
 0x28b   : > { %p2319_p5 = scmp.ne.s32.totalorder %s2317_s25, %s2318_s19  ;;  %p2323_p2 = scmp.lt.s32.totalorder %s2317_s25, %s3176_s3 }
 0x28c   : > { %p2324_p10 = scmp.lt.s32.totalorder %s2322_s22, %s2318_s19 }
 0x28d   : > { %p2320_p1 = pnand %p2319_p5, %p2523_p7 }
 0x28e   : > { %p2325_p13 = por %p2324_p10, %p2323_p2 }
 0x28f   : > { %p2321_p11 = pneg %p2320_p1 }
 0x291   : > { %p2326_p0 = pnand %p2325_p13, %p2321_p11 }
 0x293   : > { %2329 = shalt.err (!%p2326_p0)
}
 0x294   : > { %1985 = dma.vmem_to_hbm [thread:$0]  (%p2523_p7), %s1606_s18, 2048, %s1608_s11, %s2972_s12, %s2388_s17, %s2388_s17, %s2389_s8   ;;  %2072 = vrsqrt.f32 %v3017_v8  ;;  %v1348_v12 = vmul.f32 %v1347_v62, %v2940_v42  ;;  %v1358_v1 = vsub.f32 1.5, %v1357_v0  ;;  %v2071_v2 = vpop.eup %2070  ;;  %vm1349_vm4 = vcmp.eq.f32.partialorder %v2940_v42, inf  ;;  %v1292_v11 = vpop.xlane.xlu0 %1291 }
 0x295   : > { %v1352_v3 = vand.u32 2147483648, %v2940_v42  ;;  %vm1351_vm5 = vcmp.eq.f32.partialorder %v2940_v42, 0.0  ;;  %v1367_v5 = vmul.f32 %v2071_v2, %v2998_v57  ;;  %vm1361_vm6 = vcmp.eq.f32.partialorder %v2956_v47, inf  ;;  %v1244_v13 = vpop.xlane.xlu2 %1243  ;;  %v1294_v28 = vpop.xlane.xlu1 %1293 }
 0x296   : > { %v1350_v21 = vsel %vm1349_vm4, %v2940_v42, %v1348_v12  ;;  %v1359_v4 = vmul.f32 %v2069_v58, %v1358_v1  ;;  %vm1363_vm7 = vcmp.eq.f32.partialorder %v2956_v47, 0.0  ;;  %v1364_v10 = vand.u32 2147483648, %v2956_v47 }
 0x297   : > { %v1353_v6 = vsel %vm1351_vm5, %v1352_v3, %v1350_v21  ;;  %v1368_v18 = vmul.f32 %v2071_v2, %v1367_v5  ;;  %v1319_v19 = vsel %vm1313_vm0, %v1244_v13, %v1292_v11  ;;  %vm1373_vm8 = vcmp.eq.f32.partialorder %v2998_v57, inf }
 0x298   : > { %1524 = vst.msk [vmem:[%s2949_s5 + $0x8] sm:$0xff] %vm1522_vm1, %v1353_v6  ;;  %v1360_v9 = vmul.f32 %v1359_v4, %v2956_v47  ;;  %2074 = vrsqrt.f32 %v1319_v19  ;;  %vm1375_vm9 = vcmp.eq.f32.partialorder %v2998_v57, 0.0  ;;  %v1376_v41 = vand.u32 2147483648, %v2998_v57 }
 0x299   : > { %v1369_v15 = vmul.f32 0.5, %v1368_v18  ;;  %vm1385_vm10 = vcmp.eq.f32.partialorder %v3017_v8, inf  ;;  %v1388_v7 = vand.u32 2147483648, %v3017_v8  ;;  %vm1387_vm11 = vcmp.eq.f32.partialorder %v3017_v8, 0.0 }
 0x29a   : > { %v2073_v24 = vpop.eup %2072  ;;  %v1362_v14 = vsel %vm1361_vm6, %v2956_v47, %v1360_v9  ;;  %vm1397_vm12 = vcmp.eq.f32.partialorder %v1319_v19, inf  ;;  %v1400_v50 = vand.u32 2147483648, %v1319_v19  ;;  %vm1399_vm13 = vcmp.eq.f32.partialorder %v1319_v19, 0.0 }
 0x29b   : > { %v1379_v16 = vmul.f32 %v2073_v24, %v3017_v8  ;;  %v1365_v31 = vsel %vm1363_vm7, %v1364_v10, %v1362_v14  ;;  %v1370_v35 = vsub.f32 1.5, %v1369_v15 }
 0x29c   : > { %1525 = vst.msk [vmem:[%s2949_s5 + $0x10] sm:$0xff] %vm1522_vm1, %v1365_v31  ;;  %v1246_v29 = vpop.xlane.xlu0 %1245 }
 0x29d   : > { %v1380_v20 = vmul.f32 %v2073_v24, %v1379_v16  ;;  %v1371_v22 = vmul.f32 %v2071_v2, %v1370_v35  ;;  %v1320_v36 = vsel %vm1313_vm0, %v1246_v29, %v1294_v28  ;;  %v1296_v42 = vpop.xlane.xlu2 %1295  ;;  %v1248_v44 = vpop.xlane.xlu1 %1247 }
 0x29e   : > { %v2075_v27 = vpop.eup %2074  ;;  %2076 = vrsqrt.f32 %v1320_v36  ;;  %v1321_v46 = vsel %vm1313_vm0, %v1248_v44, %v1296_v42  ;;  %vm1409_vm14 = vcmp.eq.f32.partialorder %v1320_v36, inf  ;;  %v1412_v0 = vand.u32 2147483648, %v1320_v36 }
 0x29f   : > { %v1381_v23 = vmul.f32 0.5, %v1380_v20  ;;  %v1372_v25 = vmul.f32 %v1371_v22, %v2998_v57  ;;  %v1391_v30 = vmul.f32 %v2075_v27, %v1319_v19  ;;  %2078 = vrsqrt.f32 %v1321_v46 }
 0x2a0   : > { %vm1411_vm15 = vcmp.eq.f32.partialorder %v1320_v36, 0.0  ;;  %vm1421_vm2 = vcmp.eq.f32.partialorder %v1321_v46, inf  ;;  %v1424_v10 = vand.u32 2147483648, %v1321_v46  ;;  %vm1423_vm3 = vcmp.eq.f32.partialorder %v1321_v46, 0.0 }
 0x2a1   : > { %v1382_v26 = vsub.f32 1.5, %v1381_v23  ;;  %v1374_v32 = vsel %vm1373_vm8, %v2998_v57, %v1372_v25  ;;  %v1392_v34 = vmul.f32 %v2075_v27, %v1391_v30 }
 0x2a2   : > { %v1377_v33 = vsel %vm1375_vm9, %v1376_v41, %v1374_v32 }
 0x2a3   : > { %v1383_v17 = vmul.f32 %v2073_v24, %v1382_v26  ;;  %1526 = vst.msk [vmem:[%s2949_s5 + $0x18] sm:$0xff] %vm1522_vm1, %v1377_v33  ;;  %v1393_v39 = vmul.f32 0.5, %v1392_v34 }
 0x2a4   : > { %v2077_v37 = vpop.eup %2076  ;;  %v1298_v55 = vpop.xlane.xlu0 %1297 }
 0x2a5   : > { %v1384_v43 = vmul.f32 %v1383_v17, %v3017_v8  ;;  %v1394_v53 = vsub.f32 1.5, %v1393_v39  ;;  %v1403_v45 = vmul.f32 %v2077_v37, %v1320_v36  ;;  %v2079_v54 = vpop.eup %2078  ;;  %v1250_v56 = vpop.xlane.xlu2 %1249 }
 0x2a6   : > { %v1415_v59 = vmul.f32 %v2079_v54, %v1321_v46  ;;  %v1322_v60 = vsel %vm1313_vm0, %v1250_v56, %v1298_v55  ;;  %v1300_v21 = vpop.xlane.xlu1 %1299 }
 0x2a7   : > { %v1386_v38 = vsel %vm1385_vm10, %v3017_v8, %v1384_v43  ;;  %v1395_v49 = vmul.f32 %v2075_v27, %v1394_v53  ;;  %v1404_v48 = vmul.f32 %v2077_v37, %v1403_v45  ;;  %2080 = vrsqrt.f32 %v1322_v60 }
 0x2a8   : > { %v1389_v40 = vsel %vm1387_vm11, %v1388_v7, %v1386_v38  ;;  %v1416_v62 = vmul.f32 %v2079_v54, %v1415_v59  ;;  %vm1433_vm4 = vcmp.eq.f32.partialorder %v1322_v60, inf  ;;  %v1436_v26 = vand.u32 2147483648, %v1322_v60 }
 0x2a9   : > { %1527 = vst.msk [vmem:[%s2949_s5 + $0x20] sm:$0xff] %vm1522_vm1, %v1389_v40  ;;  %v1396_v47 = vmul.f32 %v1395_v49, %v1319_v19  ;;  %v1405_v52 = vmul.f32 0.5, %v1404_v48  ;;  %vm1435_vm5 = vcmp.eq.f32.partialorder %v1322_v60, 0.0 }
 0x2aa   : > { %v1417_v12 = vmul.f32 0.5, %v1416_v62 }
 0x2ab   : > { %v1398_v51 = vsel %vm1397_vm12, %v1319_v19, %v1396_v47  ;;  %v1406_v58 = vsub.f32 1.5, %v1405_v52 }
 0x2ac   : > { %v1401_v63 = vsel %vm1399_vm13, %v1400_v50, %v1398_v51  ;;  %v1418_v2 = vsub.f32 1.5, %v1417_v12  ;;  %v1252_v4 = vpop.xlane.xlu0 %1251 }
 0x2ad   : > { %1528 = vst.msk [vmem:[%s2949_s5 + $0x28] sm:$0xff] %vm1522_vm1, %v1401_v63  ;;  %v1407_v57 = vmul.f32 %v2077_v37, %v1406_v58  ;;  %v2081_v3 = vpop.eup %2080  ;;  %v1323_v9 = vsel %vm1313_vm0, %v1252_v4, %v1300_v21  ;;  %v1302_v19 = vpop.xlane.xlu2 %1301 }
 0x2ae   : > { %v1419_v5 = vmul.f32 %v2079_v54, %v1418_v2  ;;  %v1427_v6 = vmul.f32 %v2081_v3, %v1322_v60  ;;  %2082 = vrsqrt.f32 %v1323_v9  ;;  %v1254_v31 = vpop.xlane.xlu1 %1253  ;;  %vm1445_vm6 = vcmp.eq.f32.partialorder %v1323_v9, inf }
 0x2af   : > { %v1408_v61 = vmul.f32 %v1407_v57, %v1320_v36  ;;  %v1324_v22 = vsel %vm1313_vm0, %v1254_v31, %v1302_v19  ;;  %v1448_v38 = vand.u32 2147483648, %v1323_v9  ;;  %vm1447_vm7 = vcmp.eq.f32.partialorder %v1323_v9, 0.0 }
 0x2b0   : > { %v1420_v18 = vmul.f32 %v1419_v5, %v1321_v46  ;;  %v1428_v24 = vmul.f32 %v2081_v3, %v1427_v6  ;;  %2084 = vrsqrt.f32 %v1324_v22  ;;  %vm1457_vm8 = vcmp.eq.f32.partialorder %v1324_v22, inf }
 0x2b1   : > { %v1410_v8 = vsel %vm1409_vm14, %v1320_v36, %v1408_v61  ;;  %v1460_v51 = vand.u32 2147483648, %v1324_v22  ;;  %vm1459_vm9 = vcmp.eq.f32.partialorder %v1324_v22, 0.0 }
 0x2b2   : > { %v1413_v1 = vsel %vm1411_vm15, %v1412_v0, %v1410_v8  ;;  %v1422_v11 = vsel %vm1421_vm2, %v1321_v46, %v1420_v18  ;;  %v1429_v13 = vmul.f32 0.5, %v1428_v24 }
 0x2b3   : > { %1529 = vst.msk [vmem:[%s2949_s5 + $0x30] sm:$0xff] %vm1522_vm1, %v1413_v1  ;;  %v1425_v14 = vsel %vm1423_vm3, %v1424_v10, %v1422_v11 }
 0x2b4   : > { %1530 = vst.msk [vmem:[%s2949_s5 + $0x38] sm:$0xff] %vm1522_vm1, %v1425_v14  ;;  %v1430_v15 = vsub.f32 1.5, %v1429_v13  ;;  %v2083_v16 = vpop.eup %2082  ;;  %v1304_v17 = vpop.xlane.xlu0 %1303 }
 0x2b5   : > { %v1439_v20 = vmul.f32 %v2083_v16, %v1323_v9  ;;  %v1256_v30 = vpop.xlane.xlu2 %1255 }
 0x2b6   : > { %v1431_v35 = vmul.f32 %v2081_v3, %v1430_v15  ;;  %v2085_v32 = vpop.eup %2084  ;;  %v1325_v43 = vsel %vm1313_vm0, %v1256_v30, %v1304_v17  ;;  %v1306_v44 = vpop.xlane.xlu1 %1305 }
 0x2b7   : > { %v1440_v25 = vmul.f32 %v2083_v16, %v1439_v20  ;;  %v1451_v33 = vmul.f32 %v2085_v32, %v1324_v22  ;;  %2086 = vrsqrt.f32 %v1325_v43  ;;  %vm1469_vm10 = vcmp.eq.f32.partialorder %v1325_v43, inf }
 0x2b8   : > { %v1432_v23 = vmul.f32 %v1431_v35, %v1322_v60  ;;  %v1472_v61 = vand.u32 2147483648, %v1325_v43  ;;  %vm1471_vm11 = vcmp.eq.f32.partialorder %v1325_v43, 0.0 }
 0x2b9   : > { %v1441_v41 = vmul.f32 0.5, %v1440_v25  ;;  %v1452_v7 = vmul.f32 %v2085_v32, %v1451_v33 }
 0x2ba   : > { %v1434_v27 = vsel %vm1433_vm4, %v1322_v60, %v1432_v23 }
 0x2bb   : > { %v1437_v28 = vsel %vm1435_vm5, %v1436_v26, %v1434_v27  ;;  %v1442_v29 = vsub.f32 1.5, %v1441_v41  ;;  %v1453_v40 = vmul.f32 0.5, %v1452_v7 }
 0x2bc   : > { %1531 = vst.msk [vmem:[%s2949_s5 + $0x40] sm:$0xff] %vm1522_vm1, %v1437_v28  ;;  %v1258_v49 = vpop.xlane.xlu0 %1257 }
 0x2bd   : > { %v1443_v36 = vmul.f32 %v2083_v16, %v1442_v29  ;;  %v1454_v37 = vsub.f32 1.5, %v1453_v40  ;;  %v2087_v42 = vpop.eup %2086  ;;  %v1326_v47 = vsel %vm1313_vm0, %v1258_v49, %v1306_v44 }
 0x2be   : > { %v1463_v46 = vmul.f32 %v2087_v42, %v1325_v43  ;;  %2088 = vrsqrt.f32 %v1326_v47  ;;  %vm1481_vm12 = vcmp.eq.f32.partialorder %v1326_v47, inf  ;;  %v1484_v4 = vand.u32 2147483648, %v1326_v47 }
 0x2bf   : > { %v1444_v34 = vmul.f32 %v1443_v36, %v1323_v9  ;;  %v1455_v45 = vmul.f32 %v2085_v32, %v1454_v37  ;;  %vm1483_vm13 = vcmp.eq.f32.partialorder %v1326_v47, 0.0 }
 0x2c0   : > { %v1464_v50 = vmul.f32 %v2087_v42, %v1463_v46  ;;  %v1260_v8 = vpop.xlane.xlu1 %1259 }
 0x2c1   : > { %v1446_v39 = vsel %vm1445_vm6, %v1323_v9, %v1444_v34  ;;  %v1456_v48 = vmul.f32 %v1455_v45, %v1324_v22 }
 0x2c2   : > { %v1449_v53 = vsel %vm1447_vm7, %v1448_v38, %v1446_v39  ;;  %v1465_v63 = vmul.f32 0.5, %v1464_v50 }
 0x2c3   : > { %1532 = vst.msk [vmem:[%s2949_s5 + $0x48] sm:$0xff] %vm1522_vm1, %v1449_v53  ;;  %v1458_v52 = vsel %vm1457_vm8, %v1324_v22, %v1456_v48 }
 0x2c4   : > { %v1461_v58 = vsel %vm1459_vm9, %v1460_v51, %v1458_v52  ;;  %v1466_v54 = vsub.f32 1.5, %v1465_v63  ;;  %v2089_v55 = vpop.eup %2088 }
 0x2c5   : > { %1533 = vst.msk [vmem:[%s2949_s5 + $0x50] sm:$0xff] %vm1522_vm1, %v1461_v58  ;;  %v1475_v57 = vmul.f32 %v2089_v55, %v1326_v47 }
 0x2c6   : > { %v1467_v56 = vmul.f32 %v2087_v42, %v1466_v54 }
 0x2c7   : > { %v1476_v60 = vmul.f32 %v2089_v55, %v1475_v57 }
 0x2c8   : > { %v1468_v59 = vmul.f32 %v1467_v56, %v1325_v43  ;;  %v1262_v2 = vpop.xlane.xlu2 %1261  ;;  %v1312_v9 = vpop.xlane.xlu1 %1311 }
 0x2c9   : > { %v1477_v0 = vmul.f32 0.5, %v1476_v60 }
 0x2ca   : > { %v1470_v62 = vsel %vm1469_vm10, %v1325_v43, %v1468_v59 }
 0x2cb   : > { %v1473_v12 = vsel %vm1471_vm11, %v1472_v61, %v1470_v62  ;;  %v1478_v1 = vsub.f32 1.5, %v1477_v0 }
 0x2cc   : > { %1534 = vst.msk [vmem:[%s2949_s5 + $0x58] sm:$0xff] %vm1522_vm1, %v1473_v12 }
 0x2cd   : > { %v1479_v3 = vmul.f32 %v2089_v55, %v1478_v1 }
 0x2cf   : > { %v1480_v21 = vmul.f32 %v1479_v3, %v1326_v47 }
 0x2d0   : > { %v1308_v18 = vpop.xlane.xlu2 %1307  ;;  %v1264_v24 = vpop.xlane.xlu0 %1263 }
 0x2d1   : > { %v1482_v5 = vsel %vm1481_vm12, %v1326_v47, %v1480_v21  ;;  %v1327_v10 = vsel %vm1313_vm0, %v1260_v8, %v1308_v18  ;;  %v1329_v11 = vsel %vm1313_vm0, %v1264_v24, %v1312_v9 }
 0x2d2   : > { %v1485_v6 = vsel %vm1483_vm13, %v1484_v4, %v1482_v5  ;;  %2090 = vrsqrt.f32 %v1327_v10  ;;  %vm1493_vm14 = vcmp.eq.f32.partialorder %v1327_v10, inf  ;;  %vm1495_vm15 = vcmp.eq.f32.partialorder %v1327_v10, 0.0 }
 0x2d3   : > { %1535 = vst.msk [vmem:[%s2949_s5 + $0x60] sm:$0xff] %vm1522_vm1, %v1485_v6  ;;  %2092 = vrsqrt.f32 %v1329_v11  ;;  %v1496_v30 = vand.u32 2147483648, %v1327_v10  ;;  %v1520_v43 = vand.u32 2147483648, %v1329_v11  ;;  %vm1519_vm2 = vcmp.eq.f32.partialorder %v1329_v11, 0.0 }
 0x2d8   : > { %v2091_v13 = vpop.eup %2090  ;;  %v1310_v14 = vpop.xlane.xlu0 %1309 }
 0x2d9   : > { %v2093_v15 = vpop.eup %2092  ;;  %v1487_v16 = vmul.f32 %v2091_v13, %v1327_v10  ;;  %v1328_v19 = vsel %vm1313_vm0, %v1262_v2, %v1310_v14  ;;  %vm1517_vm0 = vcmp.eq.f32.partialorder %v1329_v11, inf }
 0x2da   : > { %v1511_v31 = vmul.f32 %v2093_v15, %v1329_v11  ;;  %2094 = vrsqrt.f32 %v1328_v19  ;;  %vm1505_vm3 = vcmp.eq.f32.partialorder %v1328_v19, inf  ;;  %v1508_v42 = vand.u32 2147483648, %v1328_v19 }
 0x2db   : > { %v1488_v35 = vmul.f32 %v2091_v13, %v1487_v16  ;;  %vm1507_vm4 = vcmp.eq.f32.partialorder %v1328_v19, 0.0 }
 0x2dc   : > { %v1512_v20 = vmul.f32 %v2093_v15, %v1511_v31 }
 0x2dd   : > { %v1489_v22 = vmul.f32 0.5, %v1488_v35 }
 0x2de   : > { %v1513_v23 = vmul.f32 0.5, %v1512_v20 }
 0x2df   : > { %v1490_v25 = vsub.f32 1.5, %v1489_v22 }
 0x2e0   : > { %v2095_v26 = vpop.eup %2094  ;;  %v1514_v27 = vsub.f32 1.5, %v1513_v23 }
 0x2e1   : > { %v1491_v41 = vmul.f32 %v2091_v13, %v1490_v25  ;;  %v1499_v28 = vmul.f32 %v2095_v26, %v1328_v19 }
 0x2e2   : > { %v1515_v29 = vmul.f32 %v2093_v15, %v1514_v27 }
 0x2e3   : > { %v1492_v32 = vmul.f32 %v1491_v41, %v1327_v10  ;;  %v1500_v17 = vmul.f32 %v2095_v26, %v1499_v28 }
 0x2e4   : > { %v1516_v36 = vmul.f32 %v1515_v29, %v1329_v11 }
 0x2e5   : > { %v1494_v33 = vsel %vm1493_vm14, %v1327_v10, %v1492_v32  ;;  %v1501_v34 = vmul.f32 0.5, %v1500_v17 }
 0x2e6   : > { %v1497_v7 = vsel %vm1495_vm15, %v1496_v30, %v1494_v33  ;;  %v1518_v38 = vsel %vm1517_vm0, %v1329_v11, %v1516_v36 }
 0x2e7   : > { %1536 = vst.msk [vmem:[%s2949_s5 + $0x68] sm:$0xff] %vm1522_vm1, %v1497_v7  ;;  %v1521_v39 = vsel %vm1519_vm2, %v1520_v43, %v1518_v38  ;;  %v1502_v40 = vsub.f32 1.5, %v1501_v34 }
 0x2e8   : > { %1538 = vst.msk [vmem:[%s2949_s5 + $0x78] sm:$0xff] %vm1522_vm1, %v1521_v39 }
 0x2e9   : > { %v1503_v53 = vmul.f32 %v2095_v26, %v1502_v40 }
 0x2eb   : > { %v1504_v37 = vmul.f32 %v1503_v53, %v1328_v19 }
 0x2ed   : > { %v1506_v44 = vsel %vm1505_vm3, %v1328_v19, %v1504_v37 }
 0x2ee   : > { %v1509_v49 = vsel %vm1507_vm4, %v1508_v42, %v1506_v44 }
 0x2ef   : > { %1537 = vst.msk [vmem:[%s2949_s5 + $0x70] sm:$0xff] %vm1522_vm1, %v1509_v49 }
 0x2f0 PF: > { %s3178_s24 = sld [smem:[#allocation20_spill]] }
 0x2f1   : > { %s3180_s17 = sld [smem:[#allocation21_spill]] }
 0x2f6   : > { %s1630_s8 = sand.u32 1, %s3178_s24  }
 0x2f7   : > { %p3181_p7 = scmp.ge.s32.totalorder %s3180_s17, 2  ;;  %s1631_s11 = scalar_lea.sflag [#allocation4], %s1630_s8 }
 0x2f9   : > { %p2007_p8 = pnand %p3181_p7, %p2482_p6 }
 0x2fb   : > { %p2008_p9 = pneg %p2007_p8 }
 0x2fd   : > { %2359 = dma.done.wait (%p2008_p9), %s1631_s11, 2048  }
 0x2fe   : > { %2361 = vsyncadd (%p2008_p9), %s1631_s11, 4294965248  ;;  %s3182_s26 = sadd.s32 4294967294, %s3180_s17  }
 0x2ff   : > { %s1640_s30 = sand.u32 1, %s3182_s26  }
 0x300   : > { %s1641_s28 = scalar_lea.sflag [#allocation13], %s1640_s30 }
 0x301   : > { %2363 = dma.done.wait (%p2008_p9), %s1641_s28, 4096  }
 0x302   : > { %2365 = vsyncadd (%p2008_p9), %s1641_s28, 4294963200  ;;  %s3183_s16 = sld [smem:[#allocation23_spill]]  ;;  %s3185_s13 = smov %s2372_s14 }
 0x303   : > { %s3184_s5 = sld [smem:[#allocation24_spill]]  ;;  %s3186_s14 = smov %s2376_s15 }
 0x308   : > { %p31_p4 = scmp.ge.s32.totalorder %s3183_s16, 4  }
 0x309   : > { %s3187_s15 = smov %s3184_s5 }
 0x30a   :  { %33 = sbr.rel (!%p31_p4) target bundleno = 16 (0x10), region = 169 }
 0x30f   :  { %1657 = vsyncpa [#allocation3], 1 }
 0x310   :  { %1659 = vsyncpa [#allocation3 + $0x1], 1 }
 0x311   :  { %1660 = vsyncpa [#allocation6], 1 }
 0x312   :  { %1662 = vsyncpa [#allocation6 + $0x1], 1 }
 0x313   :  { %1663 = vsyncpa [#allocation9], 1 }
 0x314   :  { %1664 = vsyncpa [#allocation4], 1 }
 0x315   :  { %1666 = vsyncpa [#allocation4 + $0x1], 1 }
 0x316   :  { %1667 = vsyncpa [#allocation13], 1 }
 0x317   :  { %1669 = vsyncpa [#allocation13 + $0x1], 1 }

</bundles_post_ra>
